<compile_context>
chip_gen: v7x
topology: tpu7x:2x2x1
jax: 0.10.0
libtpu: 0.0.40
codegen_flags: <defaults>
</compile_context>

<pallas_src>
import functools
import math

import jax
import jax.numpy as jnp
from jax.experimental import pallas as pl
from jax.experimental.pallas import tpu as pltpu

# -------------------- small config (same structure as FrModel defaults) -----
WINDOW_HOP = 16
PERIODS = (3, 5, 9, 17)
FR_FEATURES = 8          # fr_features_size
RNN_UNITS = 32           # rnn_units
FC_HIDDEN = 16           # fc_hidden_dim
BATCH = 2
SEQ_LEN = 160

PMAX = max(PERIODS)
FEAT_DIM = len(PERIODS) * FR_FEATURES   # GRU input size


def get_min_seq_len(seq_len, periods, window_hop):
    # TODO(synk): original helper not provided; assume 'valid' conv length per period.
    return min((seq_len - p) // window_hop + 1 for p in periods)


# -------------------- the single fused forward kernel ------------------------
def _fr_fused_kernel(signal_ref, win0_ref, bin0_ref, whh0_ref, bhn0_ref,
                     wih1_ref, bih1_ref, whh1_ref, bhn1_ref,
                     wfc_ref, bfc_ref, wcls_ref, bcls_ref,
                     o_ref, *, batch, min_len, hidden, hop, pmax):
    B, L, H = batch, min_len, hidden
    H2 = 2 * H

    # Hoist all weight/bias loads out of the unrolled recurrence.
    w_in0 = win0_ref[...]          # (PMAX, 3H)  conv folded into layer-0 input proj
    b_in0 = bin0_ref[...]          # (1, 3H)
    w_hh0 = whh0_ref[...]          # (H, 3H)     fused [r|z|n] hidden weights
    b_hn0 = bhn0_ref[...]          # (1, H)
    w_ih1 = wih1_ref[...]          # (H, 3H)
    b_ih1 = bih1_ref[...]          # (1, 3H)
    w_hh1 = whh1_ref[...]          # (H, 3H)
    b_hn1 = bhn1_ref[...]          # (1, H)
    w_fc = wfc_ref[...]            # (H, FC)
    b_fc = bfc_ref[...]            # (1, FC)
    w_cls = wcls_ref[...]          # (1, FC)
    b_cls = bcls_ref[...]          # (1, 1)

    h0 = jnp.zeros((B, H), jnp.float32)   # nn.GRU default h0 = zeros
    h1 = jnp.zeros((B, H), jnp.float32)
    c = 0.7978845608028654                # sqrt(2/pi) for tanh-GELU

    # Fully unrolled static loop.  Layer-1 step t depends only on layer-0 step
    # t (per-step input projection), so the dependent chain is ~L+1 GRU steps;
    # the LLO scheduler overlaps layer-1 step t-1 with layer-0 step t.
    for t in range(L):
        # -- in-kernel im2col for this frame: static 17-wide window slice ----
        fr_t = signal_ref[:, t * hop: t * hop + pmax]                   # (B, PMAX)

        # -- GRU layer 0, timestep t (conv + input proj folded: 1 MXU push) --
        g0 = jnp.dot(fr_t, w_in0, preferred_element_type=jnp.float32) + b_in0   # (B, 3H)
        hh0 = jnp.dot(h0, w_hh0, preferred_element_type=jnp.float32)            # (B, 3H)
        rz0 = jax.nn.sigmoid(g0[:, :H2] + hh0[:, :H2])                  # one EUP slab [r|z]
        n0 = jnp.tanh(g0[:, H2:] + rz0[:, :H] * (hh0[:, H2:] + b_hn0))
        h0 = (1.0 - rz0[:, H:]) * n0 + rz0[:, H:] * h0

        # -- GRU layer 1, timestep t (per-step input projection) -------------
        g1 = jnp.dot(h0, w_ih1, preferred_element_type=jnp.float32) + b_ih1     # (B, 3H)
        hh1 = jnp.dot(h1, w_hh1, preferred_element_type=jnp.float32)            # (B, 3H)
        rz1 = jax.nn.sigmoid(g1[:, :H2] + hh1[:, :H2])
        n1 = jnp.tanh(g1[:, H2:] + rz1[:, :H] * (hh1[:, H2:] + b_hn1))
        h1 = (1.0 - rz1[:, H:]) * n1 + rz1[:, H:] * h1

        # -- classification head for this timestep (off the serial path) -----
        hfc = jnp.dot(h1, w_fc, preferred_element_type=jnp.float32) + b_fc      # (B, FC)
        act = 0.5 * hfc * (1.0 + jnp.tanh(c * (hfc + 0.044715 * hfc * hfc * hfc)))
        # 1-wide projection as mul + lane-reduce (XLU/VPU) -> keeps MXU free.
        logit = jnp.sum(act * w_cls, axis=-1, keepdims=True) + b_cls            # (B, 1)
        o_ref[:, pl.ds(t, 1)] = jax.nn.sigmoid(logit)


# -------------------- deterministic parameter init ---------------------------
def _uniform(key, shape, fan_in):
    bound = 1.0 / math.sqrt(fan_in)
    return jax.random.uniform(key, shape, jnp.float32, -bound, bound)


def init_params(key):
    keys = iter(jax.random.split(key, 64))
    H = RNN_UNITS
    D = FEAT_DIM

    # FreqFilter convs: Conv1d(1, F, kernel=p, stride=hop). Each (p, F) weight
    # is zero-padded to (PMAX, F) (every p-window is a prefix of the shared
    # PMAX window) and concatenated along F -> one fused (PMAX, D) conv weight.
    w_cols, b_cols = [], []
    for p in PERIODS:
        w_p = _uniform(next(keys), (p, FR_FEATURES), p)
        b_p = _uniform(next(keys), (1, FR_FEATURES), p)
        w_cols.append(jnp.pad(w_p, ((0, PMAX - p), (0, 0))))
        b_cols.append(b_p)
    w_freq = jnp.concatenate(w_cols, axis=1)           # (PMAX, D)
    b_freq = jnp.concatenate(b_cols, axis=1)           # (1, D)

    def gru_layer_params(in_dim):
        # Weights pre-transposed: (in, 3H) / (H, 3H), PyTorch gate order [r|z|n].
        wih = _uniform(next(keys), (in_dim, 3 * H), H)
        whh = _uniform(next(keys), (H, 3 * H), H)
        bih = _uniform(next(keys), (1, 3 * H), H)
        bhh = _uniform(next(keys), (1, 3 * H), H)
        # Fold b_hr, b_hz into the input bias; b_hn stays inside r*(W_hn h + b_hn).
        bih_f = bih + jnp.concatenate(
            [bhh[:, :H], bhh[:, H:2 * H], jnp.zeros((1, H), jnp.float32)], axis=1)
        bhn = bhh[:, 2 * H:]
        return wih, bih_f, whh, bhn

    wih0, bih0_f, whh0, bhn0 = gru_layer_params(D)
    wih1, bih1_f, whh1, bhn1 = gru_layer_params(H)

    # Fold the (purely linear) frequency convs into the layer-0 input proj:
    #   gi0 = (frames @ Wf + bf) @ Wih0 + bih0 = frames @ (Wf@Wih0) + (bf@Wih0 + bih0)
    w_in0 = w_freq @ wih0                   # (PMAX, 3H)
    b_in0 = b_freq @ wih0 + bih0_f          # (1, 3H)

    return dict(
        w_in0=w_in0, b_in0=b_in0, whh0=whh0, bhn0=bhn0,
        wih1=wih1, bih1=bih1_f, whh1=whh1, bhn1=bhn1,
        w_fc=_uniform(next(keys), (H, FC_HIDDEN), H),           # Linear(H, FC).weight.T
        b_fc=_uniform(next(keys), (1, FC_HIDDEN), H),
        w_cls=_uniform(next(keys), (1, FC_HIDDEN), FC_HIDDEN),  # Linear(FC, 1).weight
        b_cls=_uniform(next(keys), (1, 1), FC_HIDDEN),
    )


# -------------------- full forward (one pallas_call) -------------------------
def fr_model_forward(params, signal):
    assert signal.ndim == 2
    B, T = signal.shape
    L = get_min_seq_len(T, PERIODS, WINDOW_HOP)
    H = RNN_UNITS
    assert (L - 1) * WINDOW_HOP + PMAX <= T

    kernel = functools.partial(_fr_fused_kernel, batch=B, min_len=L, hidden=H,
                               hop=WINDOW_HOP, pmax=PMAX)
    out = pl.pallas_call(
        kernel,
        out_shape=jax.ShapeDtypeStruct((B, L), jnp.float32),
        grid=(1,),
        in_specs=[
            pl.BlockSpec((B, T), lambda i: (0, 0)),               # raw signal
            pl.BlockSpec((PMAX, 3 * H), lambda i: (0, 0)),        # w_in0 (conv ∘ wih0)
            pl.BlockSpec((1, 3 * H), lambda i: (0, 0)),           # b_in0 (folded)
            pl.BlockSpec((H, 3 * H), lambda i: (0, 0)),           # whh0 fused [r|z|n]
            pl.BlockSpec((1, H), lambda i: (0, 0)),               # bhn0
            pl.BlockSpec((H, 3 * H), lambda i: (0, 0)),           # wih1
            pl.BlockSpec((1, 3 * H), lambda i: (0, 0)),           # bih1 (folded)
            pl.BlockSpec((H, 3 * H), lambda i: (0, 0)),           # whh1 fused [r|z|n]
            pl.BlockSpec((1, H), lambda i: (0, 0)),               # bhn1
            pl.BlockSpec((H, FC_HIDDEN), lambda i: (0, 0)),       # w_fc
            pl.BlockSpec((1, FC_HIDDEN), lambda i: (0, 0)),       # b_fc
            pl.BlockSpec((1, FC_HIDDEN), lambda i: (0, 0)),       # w_cls
            pl.BlockSpec((1, 1), lambda i: (0, 0)),               # b_cls
        ],
        out_specs=pl.BlockSpec((B, L), lambda i: (0, 0)),
        compiler_params=pltpu.CompilerParams(dimension_semantics=("arbitrary",)),
    )(signal, params["w_in0"], params["b_in0"], params["whh0"], params["bhn0"],
      params["wih1"], params["bih1"], params["whh1"], params["bhn1"],
      params["w_fc"], params["b_fc"], params["w_cls"], params["b_cls"])

    # Kernel already emits (B, L); only a layout-trivial trailing unit dim left.
    return out[..., None]                                         # (B, L, 1)


if __name__ == "__main__":
    key = jax.random.PRNGKey(0)
    pkey, skey = jax.random.split(key)
    params = init_params(pkey)
    signal = jax.random.normal(skey, (BATCH, SEQ_LEN), jnp.float32)

    out = jax.jit(fr_model_forward)(params, signal)
    out = jax.block_until_ready(out)

    expected_len = get_min_seq_len(SEQ_LEN, PERIODS, WINDOW_HOP)
    assert out.shape == (BATCH, expected_len, 1), out.shape
    assert out.dtype == jnp.float32
    assert bool(jnp.all(jnp.isfinite(out)))
    assert bool(jnp.all((out >= 0.0) & (out <= 1.0)))
    print("KERNEL_OK")
</pallas_src>

<mosaic_0001>
module attributes {stable_mosaic.version = 11 : i64} {
  func.func @_fr_fused_kernel(%arg0: i32, %arg1: memref<2x160xf32, #tpu.memory_space<vmem>>, %arg2: memref<17x96xf32, #tpu.memory_space<vmem>>, %arg3: memref<1x96xf32, #tpu.memory_space<vmem>>, %arg4: memref<32x96xf32, #tpu.memory_space<vmem>>, %arg5: memref<1x32xf32, #tpu.memory_space<vmem>>, %arg6: memref<32x96xf32, #tpu.memory_space<vmem>>, %arg7: memref<1x96xf32, #tpu.memory_space<vmem>>, %arg8: memref<32x96xf32, #tpu.memory_space<vmem>>, %arg9: memref<1x32xf32, #tpu.memory_space<vmem>>, %arg10: memref<32x16xf32, #tpu.memory_space<vmem>>, %arg11: memref<1x16xf32, #tpu.memory_space<vmem>>, %arg12: memref<1x16xf32, #tpu.memory_space<vmem>>, %arg13: memref<1x1xf32, #tpu.memory_space<vmem>>, %arg14: memref<2x9xf32, #tpu.memory_space<vmem>>) attributes {dimension_semantics = [#tpu.dimension_semantics<arbitrary>], iteration_bounds = array<i64: 1>, scalar_prefetch = 0 : i64, scratch_operands = 0 : i64, tpu.core_type = #tpu.core_type<tc>, window_params = [{pipeline_mode = #tpu.pipeline_mode<synchronous>, transform_indices = @transform_0, window_bounds = array<i64: 2, 160>}, {pipeline_mode = #tpu.pipeline_mode<synchronous>, transform_indices = @transform_1, window_bounds = array<i64: 17, 96>}, {pipeline_mode = #tpu.pipeline_mode<synchronous>, transform_indices = @transform_2, window_bounds = array<i64: 1, 96>}, {pipeline_mode = #tpu.pipeline_mode<synchronous>, transform_indices = @transform_3, window_bounds = array<i64: 32, 96>}, {pipeline_mode = #tpu.pipeline_mode<synchronous>, transform_indices = @transform_4, window_bounds = array<i64: 1, 32>}, {pipeline_mode = #tpu.pipeline_mode<synchronous>, transform_indices = @transform_5, window_bounds = array<i64: 32, 96>}, {pipeline_mode = #tpu.pipeline_mode<synchronous>, transform_indices = @transform_6, window_bounds = array<i64: 1, 96>}, {pipeline_mode = #tpu.pipeline_mode<synchronous>, transform_indices = @transform_7, window_bounds = array<i64: 32, 96>}, {pipeline_mode = #tpu.pipeline_mode<synchronous>, transform_indices = @transform_8, window_bounds = array<i64: 1, 32>}, {pipeline_mode = #tpu.pipeline_mode<synchronous>, transform_indices = @transform_9, window_bounds = array<i64: 32, 16>}, {pipeline_mode = #tpu.pipeline_mode<synchronous>, transform_indices = @transform_10, window_bounds = array<i64: 1, 16>}, {pipeline_mode = #tpu.pipeline_mode<synchronous>, transform_indices = @transform_11, window_bounds = array<i64: 1, 16>}, {pipeline_mode = #tpu.pipeline_mode<synchronous>, transform_indices = @transform_12, window_bounds = array<i64: 1, 1>}, {pipeline_mode = #tpu.pipeline_mode<synchronous>, transform_indices = @transform_13, window_bounds = array<i64: 2, 9>}]} {
    %c0 = arith.constant 0 : index
    %c0_0 = arith.constant 0 : index
    %0 = vector.load %arg2[%c0, %c0_0] : memref<17x96xf32, #tpu.memory_space<vmem>>, vector<17x96xf32>
    %c0_1 = arith.constant 0 : index
    %c0_2 = arith.constant 0 : index
    %1 = vector.load %arg3[%c0_1, %c0_2] : memref<1x96xf32, #tpu.memory_space<vmem>>, vector<1x96xf32>
    %c0_3 = arith.constant 0 : index
    %c0_4 = arith.constant 0 : index
    %2 = vector.load %arg4[%c0_3, %c0_4] : memref<32x96xf32, #tpu.memory_space<vmem>>, vector<32x96xf32>
    %c0_5 = arith.constant 0 : index
    %c0_6 = arith.constant 0 : index
    %3 = vector.load %arg5[%c0_5, %c0_6] : memref<1x32xf32, #tpu.memory_space<vmem>>, vector<1x32xf32>
    %c0_7 = arith.constant 0 : index
    %c0_8 = arith.constant 0 : index
    %4 = vector.load %arg6[%c0_7, %c0_8] : memref<32x96xf32, #tpu.memory_space<vmem>>, vector<32x96xf32>
    %c0_9 = arith.constant 0 : index
    %c0_10 = arith.constant 0 : index
    %5 = vector.load %arg7[%c0_9, %c0_10] : memref<1x96xf32, #tpu.memory_space<vmem>>, vector<1x96xf32>
    %c0_11 = arith.constant 0 : index
    %c0_12 = arith.constant 0 : index
    %6 = vector.load %arg8[%c0_11, %c0_12] : memref<32x96xf32, #tpu.memory_space<vmem>>, vector<32x96xf32>
    %c0_13 = arith.constant 0 : index
    %c0_14 = arith.constant 0 : index
    %7 = vector.load %arg9[%c0_13, %c0_14] : memref<1x32xf32, #tpu.memory_space<vmem>>, vector<1x32xf32>
    %c0_15 = arith.constant 0 : index
    %c0_16 = arith.constant 0 : index
    %8 = vector.load %arg10[%c0_15, %c0_16] : memref<32x16xf32, #tpu.memory_space<vmem>>, vector<32x16xf32>
    %c0_17 = arith.constant 0 : index
    %c0_18 = arith.constant 0 : index
    %9 = vector.load %arg11[%c0_17, %c0_18] : memref<1x16xf32, #tpu.memory_space<vmem>>, vector<1x16xf32>
    %c0_19 = arith.constant 0 : index
    %c0_20 = arith.constant 0 : index
    %10 = vector.load %arg12[%c0_19, %c0_20] : memref<1x16xf32, #tpu.memory_space<vmem>>, vector<1x16xf32>
    %c0_21 = arith.constant 0 : index
    %c0_22 = arith.constant 0 : index
    %11 = vector.load %arg13[%c0_21, %c0_22] : memref<1x1xf32, #tpu.memory_space<vmem>>, vector<1x1xf32>
    %cst = arith.constant 0.000000e+00 : f32
    %12 = vector.broadcast %cst : f32 to vector<2x32xf32>
    %cst_23 = arith.constant 0.000000e+00 : f32
    %13 = vector.broadcast %cst_23 : f32 to vector<2x32xf32>
    %c0_24 = arith.constant 0 : index
    %c0_25 = arith.constant 0 : index
    %14 = vector.load %arg1[%c0_24, %c0_25] : memref<2x160xf32, #tpu.memory_space<vmem>>, vector<2x17xf32>
    %cst_26 = arith.constant dense<0.000000e+00> : vector<2x96xf32>
    %15 = tpu.matmul %14, %0, %cst_26 {dimension_numbers = #tpu.dot_dimension_numbers<[1], [0], [0], [1], [0, 0, 1, 1], [], []>} : vector<2x17xf32>, vector<17x96xf32>, vector<2x96xf32> -> vector<2x96xf32>
    %16 = vector.broadcast %1 : vector<1x96xf32> to vector<2x96xf32>
    %17 = arith.addf %15, %16 : vector<2x96xf32>
    %cst_27 = arith.constant dense<0.000000e+00> : vector<2x96xf32>
    %18 = tpu.matmul %12, %2, %cst_27 {dimension_numbers = #tpu.dot_dimension_numbers<[1], [0], [0], [1], [0, 0, 1, 1], [], []>} : vector<2x32xf32>, vector<32x96xf32>, vector<2x96xf32> -> vector<2x96xf32>
    %19 = vector.extract_strided_slice %17 {offsets = [0, 0], sizes = [2, 64], strides = [1, 1]} : vector<2x96xf32> to vector<2x64xf32>
    %20 = vector.extract_strided_slice %18 {offsets = [0, 0], sizes = [2, 64], strides = [1, 1]} : vector<2x96xf32> to vector<2x64xf32>
    %21 = arith.addf %19, %20 : vector<2x64xf32>
    %22 = arith.negf %21 : vector<2x64xf32>
    %23 = math.exp %22 : vector<2x64xf32>
    %cst_28 = arith.constant 1.000000e+00 : f32
    %24 = vector.broadcast %cst_28 : f32 to vector<2x64xf32>
    %25 = arith.addf %24, %23 : vector<2x64xf32>
    %26 = arith.divf %24, %25 : vector<2x64xf32>
    %27 = vector.extract_strided_slice %17 {offsets = [0, 64], sizes = [2, 32], strides = [1, 1]} : vector<2x96xf32> to vector<2x32xf32>
    %28 = vector.extract_strided_slice %26 {offsets = [0, 0], sizes = [2, 32], strides = [1, 1]} : vector<2x64xf32> to vector<2x32xf32>
    %29 = vector.extract_strided_slice %18 {offsets = [0, 64], sizes = [2, 32], strides = [1, 1]} : vector<2x96xf32> to vector<2x32xf32>
    %30 = vector.broadcast %3 : vector<1x32xf32> to vector<2x32xf32>
    %31 = arith.addf %29, %30 : vector<2x32xf32>
    %32 = arith.mulf %28, %31 : vector<2x32xf32>
    %33 = arith.addf %27, %32 : vector<2x32xf32>
    %34 = math.tanh %33 : vector<2x32xf32>
    %35 = vector.extract_strided_slice %26 {offsets = [0, 32], sizes = [2, 32], strides = [1, 1]} : vector<2x64xf32> to vector<2x32xf32>
    %cst_29 = arith.constant 1.000000e+00 : f32
    %36 = vector.broadcast %cst_29 : f32 to vector<2x32xf32>
    %37 = arith.subf %36, %35 : vector<2x32xf32>
    %38 = arith.mulf %37, %34 : vector<2x32xf32>
    %39 = vector.extract_strided_slice %26 {offsets = [0, 32], sizes = [2, 32], strides = [1, 1]} : vector<2x64xf32> to vector<2x32xf32>
    %40 = arith.mulf %39, %12 : vector<2x32xf32>
    %41 = arith.addf %38, %40 : vector<2x32xf32>
    %cst_30 = arith.constant dense<0.000000e+00> : vector<2x96xf32>
    %42 = tpu.matmul %41, %4, %cst_30 {dimension_numbers = #tpu.dot_dimension_numbers<[1], [0], [0], [1], [0, 0, 1, 1], [], []>} : vector<2x32xf32>, vector<32x96xf32>, vector<2x96xf32> -> vector<2x96xf32>
    %43 = vector.broadcast %5 : vector<1x96xf32> to vector<2x96xf32>
    %44 = arith.addf %42, %43 : vector<2x96xf32>
    %cst_31 = arith.constant dense<0.000000e+00> : vector<2x96xf32>
    %45 = tpu.matmul %13, %6, %cst_31 {dimension_numbers = #tpu.dot_dimension_numbers<[1], [0], [0], [1], [0, 0, 1, 1], [], []>} : vector<2x32xf32>, vector<32x96xf32>, vector<2x96xf32> -> vector<2x96xf32>
    %46 = vector.extract_strided_slice %44 {offsets = [0, 0], sizes = [2, 64], strides = [1, 1]} : vector<2x96xf32> to vector<2x64xf32>
    %47 = vector.extract_strided_slice %45 {offsets = [0, 0], sizes = [2, 64], strides = [1, 1]} : vector<2x96xf32> to vector<2x64xf32>
    %48 = arith.addf %46, %47 : vector<2x64xf32>
    %49 = arith.negf %48 : vector<2x64xf32>
    %50 = math.exp %49 : vector<2x64xf32>
    %cst_32 = arith.constant 1.000000e+00 : f32
    %51 = vector.broadcast %cst_32 : f32 to vector<2x64xf32>
    %52 = arith.addf %51, %50 : vector<2x64xf32>
    %53 = arith.divf %51, %52 : vector<2x64xf32>
    %54 = vector.extract_strided_slice %44 {offsets = [0, 64], sizes = [2, 32], strides = [1, 1]} : vector<2x96xf32> to vector<2x32xf32>
    %55 = vector.extract_strided_slice %53 {offsets = [0, 0], sizes = [2, 32], strides = [1, 1]} : vector<2x64xf32> to vector<2x32xf32>
    %56 = vector.extract_strided_slice %45 {offsets = [0, 64], sizes = [2, 32], strides = [1, 1]} : vector<2x96xf32> to vector<2x32xf32>
    %57 = vector.broadcast %7 : vector<1x32xf32> to vector<2x32xf32>
    %58 = arith.addf %56, %57 : vector<2x32xf32>
    %59 = arith.mulf %55, %58 : vector<2x32xf32>
    %60 = arith.addf %54, %59 : vector<2x32xf32>
    %61 = math.tanh %60 : vector<2x32xf32>
    %62 = vector.extract_strided_slice %53 {offsets = [0, 32], sizes = [2, 32], strides = [1, 1]} : vector<2x64xf32> to vector<2x32xf32>
    %cst_33 = arith.constant 1.000000e+00 : f32
    %63 = vector.broadcast %cst_33 : f32 to vector<2x32xf32>
    %64 = arith.subf %63, %62 : vector<2x32xf32>
    %65 = arith.mulf %64, %61 : vector<2x32xf32>
    %66 = vector.extract_strided_slice %53 {offsets = [0, 32], sizes = [2, 32], strides = [1, 1]} : vector<2x64xf32> to vector<2x32xf32>
    %67 = arith.mulf %66, %13 : vector<2x32xf32>
    %68 = arith.addf %65, %67 : vector<2x32xf32>
    %cst_34 = arith.constant dense<0.000000e+00> : vector<2x16xf32>
    %69 = tpu.matmul %68, %8, %cst_34 {dimension_numbers = #tpu.dot_dimension_numbers<[1], [0], [0], [1], [0, 0, 1, 1], [], []>} : vector<2x32xf32>, vector<32x16xf32>, vector<2x16xf32> -> vector<2x16xf32>
    %70 = vector.broadcast %9 : vector<1x16xf32> to vector<2x16xf32>
    %71 = arith.addf %69, %70 : vector<2x16xf32>
    %cst_35 = arith.constant 5.000000e-01 : f32
    %72 = vector.broadcast %cst_35 : f32 to vector<2x16xf32>
    %73 = arith.mulf %72, %71 : vector<2x16xf32>
    %cst_36 = arith.constant 4.471500e-02 : f32
    %74 = vector.broadcast %cst_36 : f32 to vector<2x16xf32>
    %75 = arith.mulf %74, %71 : vector<2x16xf32>
    %76 = arith.mulf %75, %71 : vector<2x16xf32>
    %77 = arith.mulf %76, %71 : vector<2x16xf32>
    %78 = arith.addf %71, %77 : vector<2x16xf32>
    %cst_37 = arith.constant 0.797884583 : f32
    %79 = vector.broadcast %cst_37 : f32 to vector<2x16xf32>
    %80 = arith.mulf %79, %78 : vector<2x16xf32>
    %81 = math.tanh %80 : vector<2x16xf32>
    %cst_38 = arith.constant 1.000000e+00 : f32
    %82 = vector.broadcast %cst_38 : f32 to vector<2x16xf32>
    %83 = arith.addf %82, %81 : vector<2x16xf32>
    %84 = arith.mulf %73, %83 : vector<2x16xf32>
    %85 = vector.broadcast %10 : vector<1x16xf32> to vector<2x16xf32>
    %86 = arith.mulf %84, %85 : vector<2x16xf32>
    %cst_39 = arith.constant dense<0.000000e+00> : vector<2xf32>
    %87 = vector.multi_reduction <add>, %86, %cst_39 [1] : vector<2x16xf32> to vector<2xf32>
    %88 = vector.shape_cast %87 : vector<2xf32> to vector<2x1xf32>
    %89 = vector.broadcast %11 : vector<1x1xf32> to vector<2x1xf32>
    %90 = arith.addf %88, %89 : vector<2x1xf32>
    %91 = arith.negf %90 : vector<2x1xf32>
    %92 = math.exp %91 : vector<2x1xf32>
    %cst_40 = arith.constant 1.000000e+00 : f32
    %93 = vector.broadcast %cst_40 : f32 to vector<2x1xf32>
    %94 = arith.addf %93, %92 : vector<2x1xf32>
    %95 = arith.divf %93, %94 : vector<2x1xf32>
    %c0_41 = arith.constant 0 : index
    %c0_42 = arith.constant 0 : index
    %96 = vector.load %arg14[%c0_41, %c0_42] : memref<2x9xf32, #tpu.memory_space<vmem>>, vector<2x1xf32>
    tpu.vector_store %arg14[%c0_41, %c0_42], %95 {strides = array<i32>} : memref<2x9xf32, #tpu.memory_space<vmem>>, vector<2x1xf32>,
    %c0_43 = arith.constant 0 : index
    %c16 = arith.constant 16 : index
    %97 = vector.load %arg1[%c0_43, %c16] : memref<2x160xf32, #tpu.memory_space<vmem>>, vector<2x17xf32>
    %cst_44 = arith.constant dense<0.000000e+00> : vector<2x96xf32>
    %98 = tpu.matmul %97, %0, %cst_44 {dimension_numbers = #tpu.dot_dimension_numbers<[1], [0], [0], [1], [0, 0, 1, 1], [], []>} : vector<2x17xf32>, vector<17x96xf32>, vector<2x96xf32> -> vector<2x96xf32>
    %99 = vector.broadcast %1 : vector<1x96xf32> to vector<2x96xf32>
    %100 = arith.addf %98, %99 : vector<2x96xf32>
    %cst_45 = arith.constant dense<0.000000e+00> : vector<2x96xf32>
    %101 = tpu.matmul %41, %2, %cst_45 {dimension_numbers = #tpu.dot_dimension_numbers<[1], [0], [0], [1], [0, 0, 1, 1], [], []>} : vector<2x32xf32>, vector<32x96xf32>, vector<2x96xf32> -> vector<2x96xf32>
    %102 = vector.extract_strided_slice %100 {offsets = [0, 0], sizes = [2, 64], strides = [1, 1]} : vector<2x96xf32> to vector<2x64xf32>
    %103 = vector.extract_strided_slice %101 {offsets = [0, 0], sizes = [2, 64], strides = [1, 1]} : vector<2x96xf32> to vector<2x64xf32>
    %104 = arith.addf %102, %103 : vector<2x64xf32>
    %105 = arith.negf %104 : vector<2x64xf32>
    %106 = math.exp %105 : vector<2x64xf32>
    %cst_46 = arith.constant 1.000000e+00 : f32
    %107 = vector.broadcast %cst_46 : f32 to vector<2x64xf32>
    %108 = arith.addf %107, %106 : vector<2x64xf32>
    %109 = arith.divf %107, %108 : vector<2x64xf32>
    %110 = vector.extract_strided_slice %100 {offsets = [0, 64], sizes = [2, 32], strides = [1, 1]} : vector<2x96xf32> to vector<2x32xf32>
    %111 = vector.extract_strided_slice %109 {offsets = [0, 0], sizes = [2, 32], strides = [1, 1]} : vector<2x64xf32> to vector<2x32xf32>
    %112 = vector.extract_strided_slice %101 {offsets = [0, 64], sizes = [2, 32], strides = [1, 1]} : vector<2x96xf32> to vector<2x32xf32>
    %113 = vector.broadcast %3 : vector<1x32xf32> to vector<2x32xf32>
    %114 = arith.addf %112, %113 : vector<2x32xf32>
    %115 = arith.mulf %111, %114 : vector<2x32xf32>
    %116 = arith.addf %110, %115 : vector<2x32xf32>
    %117 = math.tanh %116 : vector<2x32xf32>
    %118 = vector.extract_strided_slice %109 {offsets = [0, 32], sizes = [2, 32], strides = [1, 1]} : vector<2x64xf32> to vector<2x32xf32>
    %cst_47 = arith.constant 1.000000e+00 : f32
    %119 = vector.broadcast %cst_47 : f32 to vector<2x32xf32>
    %120 = arith.subf %119, %118 : vector<2x32xf32>
    %121 = arith.mulf %120, %117 : vector<2x32xf32>
    %122 = vector.extract_strided_slice %109 {offsets = [0, 32], sizes = [2, 32], strides = [1, 1]} : vector<2x64xf32> to vector<2x32xf32>
    %123 = arith.mulf %122, %41 : vector<2x32xf32>
    %124 = arith.addf %121, %123 : vector<2x32xf32>
    %cst_48 = arith.constant dense<0.000000e+00> : vector<2x96xf32>
    %125 = tpu.matmul %124, %4, %cst_48 {dimension_numbers = #tpu.dot_dimension_numbers<[1], [0], [0], [1], [0, 0, 1, 1], [], []>} : vector<2x32xf32>, vector<32x96xf32>, vector<2x96xf32> -> vector<2x96xf32>
    %126 = vector.broadcast %5 : vector<1x96xf32> to vector<2x96xf32>
    %127 = arith.addf %125, %126 : vector<2x96xf32>
    %cst_49 = arith.constant dense<0.000000e+00> : vector<2x96xf32>
    %128 = tpu.matmul %68, %6, %cst_49 {dimension_numbers = #tpu.dot_dimension_numbers<[1], [0], [0], [1], [0, 0, 1, 1], [], []>} : vector<2x32xf32>, vector<32x96xf32>, vector<2x96xf32> -> vector<2x96xf32>
    %129 = vector.extract_strided_slice %127 {offsets = [0, 0], sizes = [2, 64], strides = [1, 1]} : vector<2x96xf32> to vector<2x64xf32>
    %130 = vector.extract_strided_slice %128 {offsets = [0, 0], sizes = [2, 64], strides = [1, 1]} : vector<2x96xf32> to vector<2x64xf32>
    %131 = arith.addf %129, %130 : vector<2x64xf32>
    %132 = arith.negf %131 : vector<2x64xf32>
    %133 = math.exp %132 : vector<2x64xf32>
    %cst_50 = arith.constant 1.000000e+00 : f32
    %134 = vector.broadcast %cst_50 : f32 to vector<2x64xf32>
    %135 = arith.addf %134, %133 : vector<2x64xf32>
    %136 = arith.divf %134, %135 : vector<2x64xf32>
    %137 = vector.extract_strided_slice %127 {offsets = [0, 64], sizes = [2, 32], strides = [1, 1]} : vector<2x96xf32> to vector<2x32xf32>
    %138 = vector.extract_strided_slice %136 {offsets = [0, 0], sizes = [2, 32], strides = [1, 1]} : vector<2x64xf32> to vector<2x32xf32>
    %139 = vector.extract_strided_slice %128 {offsets = [0, 64], sizes = [2, 32], strides = [1, 1]} : vector<2x96xf32> to vector<2x32xf32>
    %140 = vector.broadcast %7 : vector<1x32xf32> to vector<2x32xf32>
    %141 = arith.addf %139, %140 : vector<2x32xf32>
    %142 = arith.mulf %138, %141 : vector<2x32xf32>
    %143 = arith.addf %137, %142 : vector<2x32xf32>
    %144 = math.tanh %143 : vector<2x32xf32>
    %145 = vector.extract_strided_slice %136 {offsets = [0, 32], sizes = [2, 32], strides = [1, 1]} : vector<2x64xf32> to vector<2x32xf32>
    %cst_51 = arith.constant 1.000000e+00 : f32
    %146 = vector.broadcast %cst_51 : f32 to vector<2x32xf32>
    %147 = arith.subf %146, %145 : vector<2x32xf32>
    %148 = arith.mulf %147, %144 : vector<2x32xf32>
    %149 = vector.extract_strided_slice %136 {offsets = [0, 32], sizes = [2, 32], strides = [1, 1]} : vector<2x64xf32> to vector<2x32xf32>
    %150 = arith.mulf %149, %68 : vector<2x32xf32>
    %151 = arith.addf %148, %150 : vector<2x32xf32>
    %cst_52 = arith.constant dense<0.000000e+00> : vector<2x16xf32>
    %152 = tpu.matmul %151, %8, %cst_52 {dimension_numbers = #tpu.dot_dimension_numbers<[1], [0], [0], [1], [0, 0, 1, 1], [], []>} : vector<2x32xf32>, vector<32x16xf32>, vector<2x16xf32> -> vector<2x16xf32>
    %153 = vector.broadcast %9 : vector<1x16xf32> to vector<2x16xf32>
    %154 = arith.addf %152, %153 : vector<2x16xf32>
    %cst_53 = arith.constant 5.000000e-01 : f32
    %155 = vector.broadcast %cst_53 : f32 to vector<2x16xf32>
    %156 = arith.mulf %155, %154 : vector<2x16xf32>
    %cst_54 = arith.constant 4.471500e-02 : f32
    %157 = vector.broadcast %cst_54 : f32 to vector<2x16xf32>
    %158 = arith.mulf %157, %154 : vector<2x16xf32>
    %159 = arith.mulf %158, %154 : vector<2x16xf32>
    %160 = arith.mulf %159, %154 : vector<2x16xf32>
    %161 = arith.addf %154, %160 : vector<2x16xf32>
    %cst_55 = arith.constant 0.797884583 : f32
    %162 = vector.broadcast %cst_55 : f32 to vector<2x16xf32>
    %163 = arith.mulf %162, %161 : vector<2x16xf32>
    %164 = math.tanh %163 : vector<2x16xf32>
    %cst_56 = arith.constant 1.000000e+00 : f32
    %165 = vector.broadcast %cst_56 : f32 to vector<2x16xf32>
    %166 = arith.addf %165, %164 : vector<2x16xf32>
    %167 = arith.mulf %156, %166 : vector<2x16xf32>
    %168 = vector.broadcast %10 : vector<1x16xf32> to vector<2x16xf32>
    %169 = arith.mulf %167, %168 : vector<2x16xf32>
    %cst_57 = arith.constant dense<0.000000e+00> : vector<2xf32>
    %170 = vector.multi_reduction <add>, %169, %cst_57 [1] : vector<2x16xf32> to vector<2xf32>
    %171 = vector.shape_cast %170 : vector<2xf32> to vector<2x1xf32>
    %172 = vector.broadcast %11 : vector<1x1xf32> to vector<2x1xf32>
    %173 = arith.addf %171, %172 : vector<2x1xf32>
    %174 = arith.negf %173 : vector<2x1xf32>
    %175 = math.exp %174 : vector<2x1xf32>
    %cst_58 = arith.constant 1.000000e+00 : f32
    %176 = vector.broadcast %cst_58 : f32 to vector<2x1xf32>
    %177 = arith.addf %176, %175 : vector<2x1xf32>
    %178 = arith.divf %176, %177 : vector<2x1xf32>
    %c0_59 = arith.constant 0 : index
    %c1 = arith.constant 1 : index
    %179 = vector.load %arg14[%c0_59, %c1] : memref<2x9xf32, #tpu.memory_space<vmem>>, vector<2x1xf32>
    tpu.vector_store %arg14[%c0_59, %c1], %178 {strides = array<i32>} : memref<2x9xf32, #tpu.memory_space<vmem>>, vector<2x1xf32>,
    %c0_60 = arith.constant 0 : index
    %c32 = arith.constant 32 : index
    %180 = vector.load %arg1[%c0_60, %c32] : memref<2x160xf32, #tpu.memory_space<vmem>>, vector<2x17xf32>
    %cst_61 = arith.constant dense<0.000000e+00> : vector<2x96xf32>
    %181 = tpu.matmul %180, %0, %cst_61 {dimension_numbers = #tpu.dot_dimension_numbers<[1], [0], [0], [1], [0, 0, 1, 1], [], []>} : vector<2x17xf32>, vector<17x96xf32>, vector<2x96xf32> -> vector<2x96xf32>
    %182 = vector.broadcast %1 : vector<1x96xf32> to vector<2x96xf32>
    %183 = arith.addf %181, %182 : vector<2x96xf32>
    %cst_62 = arith.constant dense<0.000000e+00> : vector<2x96xf32>
    %184 = tpu.matmul %124, %2, %cst_62 {dimension_numbers = #tpu.dot_dimension_numbers<[1], [0], [0], [1], [0, 0, 1, 1], [], []>} : vector<2x32xf32>, vector<32x96xf32>, vector<2x96xf32> -> vector<2x96xf32>
    %185 = vector.extract_strided_slice %183 {offsets = [0, 0], sizes = [2, 64], strides = [1, 1]} : vector<2x96xf32> to vector<2x64xf32>
    %186 = vector.extract_strided_slice %184 {offsets = [0, 0], sizes = [2, 64], strides = [1, 1]} : vector<2x96xf32> to vector<2x64xf32>
    %187 = arith.addf %185, %186 : vector<2x64xf32>
    %188 = arith.negf %187 : vector<2x64xf32>
    %189 = math.exp %188 : vector<2x64xf32>
    %cst_63 = arith.constant 1.000000e+00 : f32
    %190 = vector.broadcast %cst_63 : f32 to vector<2x64xf32>
    %191 = arith.addf %190, %189 : vector<2x64xf32>
    %192 = arith.divf %190, %191 : vector<2x64xf32>
    %193 = vector.extract_strided_slice %183 {offsets = [0, 64], sizes = [2, 32], strides = [1, 1]} : vector<2x96xf32> to vector<2x32xf32>
    %194 = vector.extract_strided_slice %192 {offsets = [0, 0], sizes = [2, 32], strides = [1, 1]} : vector<2x64xf32> to vector<2x32xf32>
    %195 = vector.extract_strided_slice %184 {offsets = [0, 64], sizes = [2, 32], strides = [1, 1]} : vector<2x96xf32> to vector<2x32xf32>
    %196 = vector.broadcast %3 : vector<1x32xf32> to vector<2x32xf32>
    %197 = arith.addf %195, %196 : vector<2x32xf32>
    %198 = arith.mulf %194, %197 : vector<2x32xf32>
    %199 = arith.addf %193, %198 : vector<2x32xf32>
    %200 = math.tanh %199 : vector<2x32xf32>
    %201 = vector.extract_strided_slice %192 {offsets = [0, 32], sizes = [2, 32], strides = [1, 1]} : vector<2x64xf32> to vector<2x32xf32>
    %cst_64 = arith.constant 1.000000e+00 : f32
    %202 = vector.broadcast %cst_64 : f32 to vector<2x32xf32>
    %203 = arith.subf %202, %201 : vector<2x32xf32>
    %204 = arith.mulf %203, %200 : vector<2x32xf32>
    %205 = vector.extract_strided_slice %192 {offsets = [0, 32], sizes = [2, 32], strides = [1, 1]} : vector<2x64xf32> to vector<2x32xf32>
    %206 = arith.mulf %205, %124 : vector<2x32xf32>
    %207 = arith.addf %204, %206 : vector<2x32xf32>
    %cst_65 = arith.constant dense<0.000000e+00> : vector<2x96xf32>
    %208 = tpu.matmul %207, %4, %cst_65 {dimension_numbers = #tpu.dot_dimension_numbers<[1], [0], [0], [1], [0, 0, 1, 1], [], []>} : vector<2x32xf32>, vector<32x96xf32>, vector<2x96xf32> -> vector<2x96xf32>
    %209 = vector.broadcast %5 : vector<1x96xf32> to vector<2x96xf32>
    %210 = arith.addf %208, %209 : vector<2x96xf32>
    %cst_66 = arith.constant dense<0.000000e+00> : vector<2x96xf32>
    %211 = tpu.matmul %151, %6, %cst_66 {dimension_numbers = #tpu.dot_dimension_numbers<[1], [0], [0], [1], [0, 0, 1, 1], [], []>} : vector<2x32xf32>, vector<32x96xf32>, vector<2x96xf32> -> vector<2x96xf32>
    %212 = vector.extract_strided_slice %210 {offsets = [0, 0], sizes = [2, 64], strides = [1, 1]} : vector<2x96xf32> to vector<2x64xf32>
    %213 = vector.extract_strided_slice %211 {offsets = [0, 0], sizes = [2, 64], strides = [1, 1]} : vector<2x96xf32> to vector<2x64xf32>
    %214 = arith.addf %212, %213 : vector<2x64xf32>
    %215 = arith.negf %214 : vector<2x64xf32>
    %216 = math.exp %215 : vector<2x64xf32>
    %cst_67 = arith.constant 1.000000e+00 : f32
    %217 = vector.broadcast %cst_67 : f32 to vector<2x64xf32>
    %218 = arith.addf %217, %216 : vector<2x64xf32>
    %219 = arith.divf %217, %218 : vector<2x64xf32>
    %220 = vector.extract_strided_slice %210 {offsets = [0, 64], sizes = [2, 32], strides = [1, 1]} : vector<2x96xf32> to vector<2x32xf32>
    %221 = vector.extract_strided_slice %219 {offsets = [0, 0], sizes = [2, 32], strides = [1, 1]} : vector<2x64xf32> to vector<2x32xf32>
    %222 = vector.extract_strided_slice %211 {offsets = [0, 64], sizes = [2, 32], strides = [1, 1]} : vector<2x96xf32> to vector<2x32xf32>
    %223 = vector.broadcast %7 : vector<1x32xf32> to vector<2x32xf32>
    %224 = arith.addf %222, %223 : vector<2x32xf32>
    %225 = arith.mulf %221, %224 : vector<2x32xf32>
    %226 = arith.addf %220, %225 : vector<2x32xf32>
    %227 = math.tanh %226 : vector<2x32xf32>
    %228 = vector.extract_strided_slice %219 {offsets = [0, 32], sizes = [2, 32], strides = [1, 1]} : vector<2x64xf32> to vector<2x32xf32>
    %cst_68 = arith.constant 1.000000e+00 : f32
    %229 = vector.broadcast %cst_68 : f32 to vector<2x32xf32>
    %230 = arith.subf %229, %228 : vector<2x32xf32>
    %231 = arith.mulf %230, %227 : vector<2x32xf32>
    %232 = vector.extract_strided_slice %219 {offsets = [0, 32], sizes = [2, 32], strides = [1, 1]} : vector<2x64xf32> to vector<2x32xf32>
    %233 = arith.mulf %232, %151 : vector<2x32xf32>
    %234 = arith.addf %231, %233 : vector<2x32xf32>
    %cst_69 = arith.constant dense<0.000000e+00> : vector<2x16xf32>
    %235 = tpu.matmul %234, %8, %cst_69 {dimension_numbers = #tpu.dot_dimension_numbers<[1], [0], [0], [1], [0, 0, 1, 1], [], []>} : vector<2x32xf32>, vector<32x16xf32>, vector<2x16xf32> -> vector<2x16xf32>
    %236 = vector.broadcast %9 : vector<1x16xf32> to vector<2x16xf32>
    %237 = arith.addf %235, %236 : vector<2x16xf32>
    %cst_70 = arith.constant 5.000000e-01 : f32
    %238 = vector.broadcast %cst_70 : f32 to vector<2x16xf32>
    %239 = arith.mulf %238, %237 : vector<2x16xf32>
    %cst_71 = arith.constant 4.471500e-02 : f32
    %240 = vector.broadcast %cst_71 : f32 to vector<2x16xf32>
    %241 = arith.mulf %240, %237 : vector<2x16xf32>
    %242 = arith.mulf %241, %237 : vector<2x16xf32>
    %243 = arith.mulf %242, %237 : vector<2x16xf32>
    %244 = arith.addf %237, %243 : vector<2x16xf32>
    %cst_72 = arith.constant 0.797884583 : f32
    %245 = vector.broadcast %cst_72 : f32 to vector<2x16xf32>
    %246 = arith.mulf %245, %244 : vector<2x16xf32>
    %247 = math.tanh %246 : vector<2x16xf32>
    %cst_73 = arith.constant 1.000000e+00 : f32
    %248 = vector.broadcast %cst_73 : f32 to vector<2x16xf32>
    %249 = arith.addf %248, %247 : vector<2x16xf32>
    %250 = arith.mulf %239, %249 : vector<2x16xf32>
    %251 = vector.broadcast %10 : vector<1x16xf32> to vector<2x16xf32>
    %252 = arith.mulf %250, %251 : vector<2x16xf32>
    %cst_74 = arith.constant dense<0.000000e+00> : vector<2xf32>
    %253 = vector.multi_reduction <add>, %252, %cst_74 [1] : vector<2x16xf32> to vector<2xf32>
    %254 = vector.shape_cast %253 : vector<2xf32> to vector<2x1xf32>
    %255 = vector.broadcast %11 : vector<1x1xf32> to vector<2x1xf32>
    %256 = arith.addf %254, %255 : vector<2x1xf32>
    %257 = arith.negf %256 : vector<2x1xf32>
    %258 = math.exp %257 : vector<2x1xf32>
    %cst_75 = arith.constant 1.000000e+00 : f32
    %259 = vector.broadcast %cst_75 : f32 to vector<2x1xf32>
    %260 = arith.addf %259, %258 : vector<2x1xf32>
    %261 = arith.divf %259, %260 : vector<2x1xf32>
    %c0_76 = arith.constant 0 : index
    %c2 = arith.constant 2 : index
    %262 = vector.load %arg14[%c0_76, %c2] : memref<2x9xf32, #tpu.memory_space<vmem>>, vector<2x1xf32>
    tpu.vector_store %arg14[%c0_76, %c2], %261 {strides = array<i32>} : memref<2x9xf32, #tpu.memory_space<vmem>>, vector<2x1xf32>,
    %c0_77 = arith.constant 0 : index
    %c48 = arith.constant 48 : index
    %263 = vector.load %arg1[%c0_77, %c48] : memref<2x160xf32, #tpu.memory_space<vmem>>, vector<2x17xf32>
    %cst_78 = arith.constant dense<0.000000e+00> : vector<2x96xf32>
    %264 = tpu.matmul %263, %0, %cst_78 {dimension_numbers = #tpu.dot_dimension_numbers<[1], [0], [0], [1], [0, 0, 1, 1], [], []>} : vector<2x17xf32>, vector<17x96xf32>, vector<2x96xf32> -> vector<2x96xf32>
    %265 = vector.broadcast %1 : vector<1x96xf32> to vector<2x96xf32>
    %266 = arith.addf %264, %265 : vector<2x96xf32>
    %cst_79 = arith.constant dense<0.000000e+00> : vector<2x96xf32>
    %267 = tpu.matmul %207, %2, %cst_79 {dimension_numbers = #tpu.dot_dimension_numbers<[1], [0], [0], [1], [0, 0, 1, 1], [], []>} : vector<2x32xf32>, vector<32x96xf32>, vector<2x96xf32> -> vector<2x96xf32>
    %268 = vector.extract_strided_slice %266 {offsets = [0, 0], sizes = [2, 64], strides = [1, 1]} : vector<2x96xf32> to vector<2x64xf32>
    %269 = vector.extract_strided_slice %267 {offsets = [0, 0], sizes = [2, 64], strides = [1, 1]} : vector<2x96xf32> to vector<2x64xf32>
    %270 = arith.addf %268, %269 : vector<2x64xf32>
    %271 = arith.negf %270 : vector<2x64xf32>
    %272 = math.exp %271 : vector<2x64xf32>
    %cst_80 = arith.constant 1.000000e+00 : f32
    %273 = vector.broadcast %cst_80 : f32 to vector<2x64xf32>
    %274 = arith.addf %273, %272 : vector<2x64xf32>
    %275 = arith.divf %273, %274 : vector<2x64xf32>
    %276 = vector.extract_strided_slice %266 {offsets = [0, 64], sizes = [2, 32], strides = [1, 1]} : vector<2x96xf32> to vector<2x32xf32>
    %277 = vector.extract_strided_slice %275 {offsets = [0, 0], sizes = [2, 32], strides = [1, 1]} : vector<2x64xf32> to vector<2x32xf32>
    %278 = vector.extract_strided_slice %267 {offsets = [0, 64], sizes = [2, 32], strides = [1, 1]} : vector<2x96xf32> to vector<2x32xf32>
    %279 = vector.broadcast %3 : vector<1x32xf32> to vector<2x32xf32>
    %280 = arith.addf %278, %279 : vector<2x32xf32>
    %281 = arith.mulf %277, %280 : vector<2x32xf32>
    %282 = arith.addf %276, %281 : vector<2x32xf32>
    %283 = math.tanh %282 : vector<2x32xf32>
    %284 = vector.extract_strided_slice %275 {offsets = [0, 32], sizes = [2, 32], strides = [1, 1]} : vector<2x64xf32> to vector<2x32xf32>
    %cst_81 = arith.constant 1.000000e+00 : f32
    %285 = vector.broadcast %cst_81 : f32 to vector<2x32xf32>
    %286 = arith.subf %285, %284 : vector<2x32xf32>
    %287 = arith.mulf %286, %283 : vector<2x32xf32>
    %288 = vector.extract_strided_slice %275 {offsets = [0, 32], sizes = [2, 32], strides = [1, 1]} : vector<2x64xf32> to vector<2x32xf32>
    %289 = arith.mulf %288, %207 : vector<2x32xf32>
    %290 = arith.addf %287, %289 : vector<2x32xf32>
    %cst_82 = arith.constant dense<0.000000e+00> : vector<2x96xf32>
    %291 = tpu.matmul %290, %4, %cst_82 {dimension_numbers = #tpu.dot_dimension_numbers<[1], [0], [0], [1], [0, 0, 1, 1], [], []>} : vector<2x32xf32>, vector<32x96xf32>, vector<2x96xf32> -> vector<2x96xf32>
    %292 = vector.broadcast %5 : vector<1x96xf32> to vector<2x96xf32>
    %293 = arith.addf %291, %292 : vector<2x96xf32>
    %cst_83 = arith.constant dense<0.000000e+00> : vector<2x96xf32>
    %294 = tpu.matmul %234, %6, %cst_83 {dimension_numbers = #tpu.dot_dimension_numbers<[1], [0], [0], [1], [0, 0, 1, 1], [], []>} : vector<2x32xf32>, vector<32x96xf32>, vector<2x96xf32> -> vector<2x96xf32>
    %295 = vector.extract_strided_slice %293 {offsets = [0, 0], sizes = [2, 64], strides = [1, 1]} : vector<2x96xf32> to vector<2x64xf32>
    %296 = vector.extract_strided_slice %294 {offsets = [0, 0], sizes = [2, 64], strides = [1, 1]} : vector<2x96xf32> to vector<2x64xf32>
    %297 = arith.addf %295, %296 : vector<2x64xf32>
    %298 = arith.negf %297 : vector<2x64xf32>
    %299 = math.exp %298 : vector<2x64xf32>
    %cst_84 = arith.constant 1.000000e+00 : f32
    %300 = vector.broadcast %cst_84 : f32 to vector<2x64xf32>
    %301 = arith.addf %300, %299 : vector<2x64xf32>
    %302 = arith.divf %300, %301 : vector<2x64xf32>
    %303 = vector.extract_strided_slice %293 {offsets = [0, 64], sizes = [2, 32], strides = [1, 1]} : vector<2x96xf32> to vector<2x32xf32>
    %304 = vector.extract_strided_slice %302 {offsets = [0, 0], sizes = [2, 32], strides = [1, 1]} : vector<2x64xf32> to vector<2x32xf32>
    %305 = vector.extract_strided_slice %294 {offsets = [0, 64], sizes = [2, 32], strides = [1, 1]} : vector<2x96xf32> to vector<2x32xf32>
    %306 = vector.broadcast %7 : vector<1x32xf32> to vector<2x32xf32>
    %307 = arith.addf %305, %306 : vector<2x32xf32>
    %308 = arith.mulf %304, %307 : vector<2x32xf32>
    %309 = arith.addf %303, %308 : vector<2x32xf32>
    %310 = math.tanh %309 : vector<2x32xf32>
    %311 = vector.extract_strided_slice %302 {offsets = [0, 32], sizes = [2, 32], strides = [1, 1]} : vector<2x64xf32> to vector<2x32xf32>
    %cst_85 = arith.constant 1.000000e+00 : f32
    %312 = vector.broadcast %cst_85 : f32 to vector<2x32xf32>
    %313 = arith.subf %312, %311 : vector<2x32xf32>
    %314 = arith.mulf %313, %310 : vector<2x32xf32>
    %315 = vector.extract_strided_slice %302 {offsets = [0, 32], sizes = [2, 32], strides = [1, 1]} : vector<2x64xf32> to vector<2x32xf32>
    %316 = arith.mulf %315, %234 : vector<2x32xf32>
    %317 = arith.addf %314, %316 : vector<2x32xf32>
    %cst_86 = arith.constant dense<0.000000e+00> : vector<2x16xf32>
    %318 = tpu.matmul %317, %8, %cst_86 {dimension_numbers = #tpu.dot_dimension_numbers<[1], [0], [0], [1], [0, 0, 1, 1], [], []>} : vector<2x32xf32>, vector<32x16xf32>, vector<2x16xf32> -> vector<2x16xf32>
    %319 = vector.broadcast %9 : vector<1x16xf32> to vector<2x16xf32>
    %320 = arith.addf %318, %319 : vector<2x16xf32>
    %cst_87 = arith.constant 5.000000e-01 : f32
    %321 = vector.broadcast %cst_87 : f32 to vector<2x16xf32>
    %322 = arith.mulf %321, %320 : vector<2x16xf32>
    %cst_88 = arith.constant 4.471500e-02 : f32
    %323 = vector.broadcast %cst_88 : f32 to vector<2x16xf32>
    %324 = arith.mulf %323, %320 : vector<2x16xf32>
    %325 = arith.mulf %324, %320 : vector<2x16xf32>
    %326 = arith.mulf %325, %320 : vector<2x16xf32>
    %327 = arith.addf %320, %326 : vector<2x16xf32>
    %cst_89 = arith.constant 0.797884583 : f32
    %328 = vector.broadcast %cst_89 : f32 to vector<2x16xf32>
    %329 = arith.mulf %328, %327 : vector<2x16xf32>
    %330 = math.tanh %329 : vector<2x16xf32>
    %cst_90 = arith.constant 1.000000e+00 : f32
    %331 = vector.broadcast %cst_90 : f32 to vector<2x16xf32>
    %332 = arith.addf %331, %330 : vector<2x16xf32>
    %333 = arith.mulf %322, %332 : vector<2x16xf32>
    %334 = vector.broadcast %10 : vector<1x16xf32> to vector<2x16xf32>
    %335 = arith.mulf %333, %334 : vector<2x16xf32>
    %cst_91 = arith.constant dense<0.000000e+00> : vector<2xf32>
    %336 = vector.multi_reduction <add>, %335, %cst_91 [1] : vector<2x16xf32> to vector<2xf32>
    %337 = vector.shape_cast %336 : vector<2xf32> to vector<2x1xf32>
    %338 = vector.broadcast %11 : vector<1x1xf32> to vector<2x1xf32>
    %339 = arith.addf %337, %338 : vector<2x1xf32>
    %340 = arith.negf %339 : vector<2x1xf32>
    %341 = math.exp %340 : vector<2x1xf32>
    %cst_92 = arith.constant 1.000000e+00 : f32
    %342 = vector.broadcast %cst_92 : f32 to vector<2x1xf32>
    %343 = arith.addf %342, %341 : vector<2x1xf32>
    %344 = arith.divf %342, %343 : vector<2x1xf32>
    %c0_93 = arith.constant 0 : index
    %c3 = arith.constant 3 : index
    %345 = vector.load %arg14[%c0_93, %c3] : memref<2x9xf32, #tpu.memory_space<vmem>>, vector<2x1xf32>
    tpu.vector_store %arg14[%c0_93, %c3], %344 {strides = array<i32>} : memref<2x9xf32, #tpu.memory_space<vmem>>, vector<2x1xf32>,
    %c0_94 = arith.constant 0 : index
    %c64 = arith.constant 64 : index
    %346 = vector.load %arg1[%c0_94, %c64] : memref<2x160xf32, #tpu.memory_space<vmem>>, vector<2x17xf32>
    %cst_95 = arith.constant dense<0.000000e+00> : vector<2x96xf32>
    %347 = tpu.matmul %346, %0, %cst_95 {dimension_numbers = #tpu.dot_dimension_numbers<[1], [0], [0], [1], [0, 0, 1, 1], [], []>} : vector<2x17xf32>, vector<17x96xf32>, vector<2x96xf32> -> vector<2x96xf32>
    %348 = vector.broadcast %1 : vector<1x96xf32> to vector<2x96xf32>
    %349 = arith.addf %347, %348 : vector<2x96xf32>
    %cst_96 = arith.constant dense<0.000000e+00> : vector<2x96xf32>
    %350 = tpu.matmul %290, %2, %cst_96 {dimension_numbers = #tpu.dot_dimension_numbers<[1], [0], [0], [1], [0, 0, 1, 1], [], []>} : vector<2x32xf32>, vector<32x96xf32>, vector<2x96xf32> -> vector<2x96xf32>
    %351 = vector.extract_strided_slice %349 {offsets = [0, 0], sizes = [2, 64], strides = [1, 1]} : vector<2x96xf32> to vector<2x64xf32>
    %352 = vector.extract_strided_slice %350 {offsets = [0, 0], sizes = [2, 64], strides = [1, 1]} : vector<2x96xf32> to vector<2x64xf32>
    %353 = arith.addf %351, %352 : vector<2x64xf32>
    %354 = arith.negf %353 : vector<2x64xf32>
    %355 = math.exp %354 : vector<2x64xf32>
    %cst_97 = arith.constant 1.000000e+00 : f32
    %356 = vector.broadcast %cst_97 : f32 to vector<2x64xf32>
    %357 = arith.addf %356, %355 : vector<2x64xf32>
    %358 = arith.divf %356, %357 : vector<2x64xf32>
    %359 = vector.extract_strided_slice %349 {offsets = [0, 64], sizes = [2, 32], strides = [1, 1]} : vector<2x96xf32> to vector<2x32xf32>
    %360 = vector.extract_strided_slice %358 {offsets = [0, 0], sizes = [2, 32], strides = [1, 1]} : vector<2x64xf32> to vector<2x32xf32>
    %361 = vector.extract_strided_slice %350 {offsets = [0, 64], sizes = [2, 32], strides = [1, 1]} : vector<2x96xf32> to vector<2x32xf32>
    %362 = vector.broadcast %3 : vector<1x32xf32> to vector<2x32xf32>
    %363 = arith.addf %361, %362 : vector<2x32xf32>
    %364 = arith.mulf %360, %363 : vector<2x32xf32>
    %365 = arith.addf %359, %364 : vector<2x32xf32>
    %366 = math.tanh %365 : vector<2x32xf32>
    %367 = vector.extract_strided_slice %358 {offsets = [0, 32], sizes = [2, 32], strides = [1, 1]} : vector<2x64xf32> to vector<2x32xf32>
    %cst_98 = arith.constant 1.000000e+00 : f32
    %368 = vector.broadcast %cst_98 : f32 to vector<2x32xf32>
    %369 = arith.subf %368, %367 : vector<2x32xf32>
    %370 = arith.mulf %369, %366 : vector<2x32xf32>
    %371 = vector.extract_strided_slice %358 {offsets = [0, 32], sizes = [2, 32], strides = [1, 1]} : vector<2x64xf32> to vector<2x32xf32>
    %372 = arith.mulf %371, %290 : vector<2x32xf32>
    %373 = arith.addf %370, %372 : vector<2x32xf32>
    %cst_99 = arith.constant dense<0.000000e+00> : vector<2x96xf32>
    %374 = tpu.matmul %373, %4, %cst_99 {dimension_numbers = #tpu.dot_dimension_numbers<[1], [0], [0], [1], [0, 0, 1, 1], [], []>} : vector<2x32xf32>, vector<32x96xf32>, vector<2x96xf32> -> vector<2x96xf32>
    %375 = vector.broadcast %5 : vector<1x96xf32> to vector<2x96xf32>
    %376 = arith.addf %374, %375 : vector<2x96xf32>
    %cst_100 = arith.constant dense<0.000000e+00> : vector<2x96xf32>
    %377 = tpu.matmul %317, %6, %cst_100 {dimension_numbers = #tpu.dot_dimension_numbers<[1], [0], [0], [1], [0, 0, 1, 1], [], []>} : vector<2x32xf32>, vector<32x96xf32>, vector<2x96xf32> -> vector<2x96xf32>
    %378 = vector.extract_strided_slice %376 {offsets = [0, 0], sizes = [2, 64], strides = [1, 1]} : vector<2x96xf32> to vector<2x64xf32>
    %379 = vector.extract_strided_slice %377 {offsets = [0, 0], sizes = [2, 64], strides = [1, 1]} : vector<2x96xf32> to vector<2x64xf32>
    %380 = arith.addf %378, %379 : vector<2x64xf32>
    %381 = arith.negf %380 : vector<2x64xf32>
    %382 = math.exp %381 : vector<2x64xf32>
    %cst_101 = arith.constant 1.000000e+00 : f32
    %383 = vector.broadcast %cst_101 : f32 to vector<2x64xf32>
    %384 = arith.addf %383, %382 : vector<2x64xf32>
    %385 = arith.divf %383, %384 : vector<2x64xf32>
    %386 = vector.extract_strided_slice %376 {offsets = [0, 64], sizes = [2, 32], strides = [1, 1]} : vector<2x96xf32> to vector<2x32xf32>
    %387 = vector.extract_strided_slice %385 {offsets = [0, 0], sizes = [2, 32], strides = [1, 1]} : vector<2x64xf32> to vector<2x32xf32>
    %388 = vector.extract_strided_slice %377 {offsets = [0, 64], sizes = [2, 32], strides = [1, 1]} : vector<2x96xf32> to vector<2x32xf32>
    %389 = vector.broadcast %7 : vector<1x32xf32> to vector<2x32xf32>
    %390 = arith.addf %388, %389 : vector<2x32xf32>
    %391 = arith.mulf %387, %390 : vector<2x32xf32>
    %392 = arith.addf %386, %391 : vector<2x32xf32>
    %393 = math.tanh %392 : vector<2x32xf32>
    %394 = vector.extract_strided_slice %385 {offsets = [0, 32], sizes = [2, 32], strides = [1, 1]} : vector<2x64xf32> to vector<2x32xf32>
    %cst_102 = arith.constant 1.000000e+00 : f32
    %395 = vector.broadcast %cst_102 : f32 to vector<2x32xf32>
    %396 = arith.subf %395, %394 : vector<2x32xf32>
    %397 = arith.mulf %396, %393 : vector<2x32xf32>
    %398 = vector.extract_strided_slice %385 {offsets = [0, 32], sizes = [2, 32], strides = [1, 1]} : vector<2x64xf32> to vector<2x32xf32>
    %399 = arith.mulf %398, %317 : vector<2x32xf32>
    %400 = arith.addf %397, %399 : vector<2x32xf32>
    %cst_103 = arith.constant dense<0.000000e+00> : vector<2x16xf32>
    %401 = tpu.matmul %400, %8, %cst_103 {dimension_numbers = #tpu.dot_dimension_numbers<[1], [0], [0], [1], [0, 0, 1, 1], [], []>} : vector<2x32xf32>, vector<32x16xf32>, vector<2x16xf32> -> vector<2x16xf32>
    %402 = vector.broadcast %9 : vector<1x16xf32> to vector<2x16xf32>
    %403 = arith.addf %401, %402 : vector<2x16xf32>
    %cst_104 = arith.constant 5.000000e-01 : f32
    %404 = vector.broadcast %cst_104 : f32 to vector<2x16xf32>
    %405 = arith.mulf %404, %403 : vector<2x16xf32>
    %cst_105 = arith.constant 4.471500e-02 : f32
    %406 = vector.broadcast %cst_105 : f32 to vector<2x16xf32>
    %407 = arith.mulf %406, %403 : vector<2x16xf32>
    %408 = arith.mulf %407, %403 : vector<2x16xf32>
    %409 = arith.mulf %408, %403 : vector<2x16xf32>
    %410 = arith.addf %403, %409 : vector<2x16xf32>
    %cst_106 = arith.constant 0.797884583 : f32
    %411 = vector.broadcast %cst_106 : f32 to vector<2x16xf32>
    %412 = arith.mulf %411, %410 : vector<2x16xf32>
    %413 = math.tanh %412 : vector<2x16xf32>
    %cst_107 = arith.constant 1.000000e+00 : f32
    %414 = vector.broadcast %cst_107 : f32 to vector<2x16xf32>
    %415 = arith.addf %414, %413 : vector<2x16xf32>
    %416 = arith.mulf %405, %415 : vector<2x16xf32>
    %417 = vector.broadcast %10 : vector<1x16xf32> to vector<2x16xf32>
    %418 = arith.mulf %416, %417 : vector<2x16xf32>
    %cst_108 = arith.constant dense<0.000000e+00> : vector<2xf32>
    %419 = vector.multi_reduction <add>, %418, %cst_108 [1] : vector<2x16xf32> to vector<2xf32>
    %420 = vector.shape_cast %419 : vector<2xf32> to vector<2x1xf32>
    %421 = vector.broadcast %11 : vector<1x1xf32> to vector<2x1xf32>
    %422 = arith.addf %420, %421 : vector<2x1xf32>
    %423 = arith.negf %422 : vector<2x1xf32>
    %424 = math.exp %423 : vector<2x1xf32>
    %cst_109 = arith.constant 1.000000e+00 : f32
    %425 = vector.broadcast %cst_109 : f32 to vector<2x1xf32>
    %426 = arith.addf %425, %424 : vector<2x1xf32>
    %427 = arith.divf %425, %426 : vector<2x1xf32>
    %c0_110 = arith.constant 0 : index
    %c4 = arith.constant 4 : index
    %428 = vector.load %arg14[%c0_110, %c4] : memref<2x9xf32, #tpu.memory_space<vmem>>, vector<2x1xf32>
    tpu.vector_store %arg14[%c0_110, %c4], %427 {strides = array<i32>} : memref<2x9xf32, #tpu.memory_space<vmem>>, vector<2x1xf32>,
    %c0_111 = arith.constant 0 : index
    %c80 = arith.constant 80 : index
    %429 = vector.load %arg1[%c0_111, %c80] : memref<2x160xf32, #tpu.memory_space<vmem>>, vector<2x17xf32>
    %cst_112 = arith.constant dense<0.000000e+00> : vector<2x96xf32>
    %430 = tpu.matmul %429, %0, %cst_112 {dimension_numbers = #tpu.dot_dimension_numbers<[1], [0], [0], [1], [0, 0, 1, 1], [], []>} : vector<2x17xf32>, vector<17x96xf32>, vector<2x96xf32> -> vector<2x96xf32>
    %431 = vector.broadcast %1 : vector<1x96xf32> to vector<2x96xf32>
    %432 = arith.addf %430, %431 : vector<2x96xf32>
    %cst_113 = arith.constant dense<0.000000e+00> : vector<2x96xf32>
    %433 = tpu.matmul %373, %2, %cst_113 {dimension_numbers = #tpu.dot_dimension_numbers<[1], [0], [0], [1], [0, 0, 1, 1], [], []>} : vector<2x32xf32>, vector<32x96xf32>, vector<2x96xf32> -> vector<2x96xf32>
    %434 = vector.extract_strided_slice %432 {offsets = [0, 0], sizes = [2, 64], strides = [1, 1]} : vector<2x96xf32> to vector<2x64xf32>
    %435 = vector.extract_strided_slice %433 {offsets = [0, 0], sizes = [2, 64], strides = [1, 1]} : vector<2x96xf32> to vector<2x64xf32>
    %436 = arith.addf %434, %435 : vector<2x64xf32>
    %437 = arith.negf %436 : vector<2x64xf32>
    %438 = math.exp %437 : vector<2x64xf32>
    %cst_114 = arith.constant 1.000000e+00 : f32
    %439 = vector.broadcast %cst_114 : f32 to vector<2x64xf32>
    %440 = arith.addf %439, %438 : vector<2x64xf32>
    %441 = arith.divf %439, %440 : vector<2x64xf32>
    %442 = vector.extract_strided_slice %432 {offsets = [0, 64], sizes = [2, 32], strides = [1, 1]} : vector<2x96xf32> to vector<2x32xf32>
    %443 = vector.extract_strided_slice %441 {offsets = [0, 0], sizes = [2, 32], strides = [1, 1]} : vector<2x64xf32> to vector<2x32xf32>
    %444 = vector.extract_strided_slice %433 {offsets = [0, 64], sizes = [2, 32], strides = [1, 1]} : vector<2x96xf32> to vector<2x32xf32>
    %445 = vector.broadcast %3 : vector<1x32xf32> to vector<2x32xf32>
    %446 = arith.addf %444, %445 : vector<2x32xf32>
    %447 = arith.mulf %443, %446 : vector<2x32xf32>
    %448 = arith.addf %442, %447 : vector<2x32xf32>
    %449 = math.tanh %448 : vector<2x32xf32>
    %450 = vector.extract_strided_slice %441 {offsets = [0, 32], sizes = [2, 32], strides = [1, 1]} : vector<2x64xf32> to vector<2x32xf32>
    %cst_115 = arith.constant 1.000000e+00 : f32
    %451 = vector.broadcast %cst_115 : f32 to vector<2x32xf32>
    %452 = arith.subf %451, %450 : vector<2x32xf32>
    %453 = arith.mulf %452, %449 : vector<2x32xf32>
    %454 = vector.extract_strided_slice %441 {offsets = [0, 32], sizes = [2, 32], strides = [1, 1]} : vector<2x64xf32> to vector<2x32xf32>
    %455 = arith.mulf %454, %373 : vector<2x32xf32>
    %456 = arith.addf %453, %455 : vector<2x32xf32>
    %cst_116 = arith.constant dense<0.000000e+00> : vector<2x96xf32>
    %457 = tpu.matmul %456, %4, %cst_116 {dimension_numbers = #tpu.dot_dimension_numbers<[1], [0], [0], [1], [0, 0, 1, 1], [], []>} : vector<2x32xf32>, vector<32x96xf32>, vector<2x96xf32> -> vector<2x96xf32>
    %458 = vector.broadcast %5 : vector<1x96xf32> to vector<2x96xf32>
    %459 = arith.addf %457, %458 : vector<2x96xf32>
    %cst_117 = arith.constant dense<0.000000e+00> : vector<2x96xf32>
    %460 = tpu.matmul %400, %6, %cst_117 {dimension_numbers = #tpu.dot_dimension_numbers<[1], [0], [0], [1], [0, 0, 1, 1], [], []>} : vector<2x32xf32>, vector<32x96xf32>, vector<2x96xf32> -> vector<2x96xf32>
    %461 = vector.extract_strided_slice %459 {offsets = [0, 0], sizes = [2, 64], strides = [1, 1]} : vector<2x96xf32> to vector<2x64xf32>
    %462 = vector.extract_strided_slice %460 {offsets = [0, 0], sizes = [2, 64], strides = [1, 1]} : vector<2x96xf32> to vector<2x64xf32>
    %463 = arith.addf %461, %462 : vector<2x64xf32>
    %464 = arith.negf %463 : vector<2x64xf32>
    %465 = math.exp %464 : vector<2x64xf32>
    %cst_118 = arith.constant 1.000000e+00 : f32
    %466 = vector.broadcast %cst_118 : f32 to vector<2x64xf32>
    %467 = arith.addf %466, %465 : vector<2x64xf32>
    %468 = arith.divf %466, %467 : vector<2x64xf32>
    %469 = vector.extract_strided_slice %459 {offsets = [0, 64], sizes = [2, 32], strides = [1, 1]} : vector<2x96xf32> to vector<2x32xf32>
    %470 = vector.extract_strided_slice %468 {offsets = [0, 0], sizes = [2, 32], strides = [1, 1]} : vector<2x64xf32> to vector<2x32xf32>
    %471 = vector.extract_strided_slice %460 {offsets = [0, 64], sizes = [2, 32], strides = [1, 1]} : vector<2x96xf32> to vector<2x32xf32>
    %472 = vector.broadcast %7 : vector<1x32xf32> to vector<2x32xf32>
    %473 = arith.addf %471, %472 : vector<2x32xf32>
    %474 = arith.mulf %470, %473 : vector<2x32xf32>
    %475 = arith.addf %469, %474 : vector<2x32xf32>
    %476 = math.tanh %475 : vector<2x32xf32>
    %477 = vector.extract_strided_slice %468 {offsets = [0, 32], sizes = [2, 32], strides = [1, 1]} : vector<2x64xf32> to vector<2x32xf32>
    %cst_119 = arith.constant 1.000000e+00 : f32
    %478 = vector.broadcast %cst_119 : f32 to vector<2x32xf32>
    %479 = arith.subf %478, %477 : vector<2x32xf32>
    %480 = arith.mulf %479, %476 : vector<2x32xf32>
    %481 = vector.extract_strided_slice %468 {offsets = [0, 32], sizes = [2, 32], strides = [1, 1]} : vector<2x64xf32> to vector<2x32xf32>
    %482 = arith.mulf %481, %400 : vector<2x32xf32>
    %483 = arith.addf %480, %482 : vector<2x32xf32>
    %cst_120 = arith.constant dense<0.000000e+00> : vector<2x16xf32>
    %484 = tpu.matmul %483, %8, %cst_120 {dimension_numbers = #tpu.dot_dimension_numbers<[1], [0], [0], [1], [0, 0, 1, 1], [], []>} : vector<2x32xf32>, vector<32x16xf32>, vector<2x16xf32> -> vector<2x16xf32>
    %485 = vector.broadcast %9 : vector<1x16xf32> to vector<2x16xf32>
    %486 = arith.addf %484, %485 : vector<2x16xf32>
    %cst_121 = arith.constant 5.000000e-01 : f32
    %487 = vector.broadcast %cst_121 : f32 to vector<2x16xf32>
    %488 = arith.mulf %487, %486 : vector<2x16xf32>
    %cst_122 = arith.constant 4.471500e-02 : f32
    %489 = vector.broadcast %cst_122 : f32 to vector<2x16xf32>
    %490 = arith.mulf %489, %486 : vector<2x16xf32>
    %491 = arith.mulf %490, %486 : vector<2x16xf32>
    %492 = arith.mulf %491, %486 : vector<2x16xf32>
    %493 = arith.addf %486, %492 : vector<2x16xf32>
    %cst_123 = arith.constant 0.797884583 : f32
    %494 = vector.broadcast %cst_123 : f32 to vector<2x16xf32>
    %495 = arith.mulf %494, %493 : vector<2x16xf32>
    %496 = math.tanh %495 : vector<2x16xf32>
    %cst_124 = arith.constant 1.000000e+00 : f32
    %497 = vector.broadcast %cst_124 : f32 to vector<2x16xf32>
    %498 = arith.addf %497, %496 : vector<2x16xf32>
    %499 = arith.mulf %488, %498 : vector<2x16xf32>
    %500 = vector.broadcast %10 : vector<1x16xf32> to vector<2x16xf32>
    %501 = arith.mulf %499, %500 : vector<2x16xf32>
    %cst_125 = arith.constant dense<0.000000e+00> : vector<2xf32>
    %502 = vector.multi_reduction <add>, %501, %cst_125 [1] : vector<2x16xf32> to vector<2xf32>
    %503 = vector.shape_cast %502 : vector<2xf32> to vector<2x1xf32>
    %504 = vector.broadcast %11 : vector<1x1xf32> to vector<2x1xf32>
    %505 = arith.addf %503, %504 : vector<2x1xf32>
    %506 = arith.negf %505 : vector<2x1xf32>
    %507 = math.exp %506 : vector<2x1xf32>
    %cst_126 = arith.constant 1.000000e+00 : f32
    %508 = vector.broadcast %cst_126 : f32 to vector<2x1xf32>
    %509 = arith.addf %508, %507 : vector<2x1xf32>
    %510 = arith.divf %508, %509 : vector<2x1xf32>
    %c0_127 = arith.constant 0 : index
    %c5 = arith.constant 5 : index
    %511 = vector.load %arg14[%c0_127, %c5] : memref<2x9xf32, #tpu.memory_space<vmem>>, vector<2x1xf32>
    tpu.vector_store %arg14[%c0_127, %c5], %510 {strides = array<i32>} : memref<2x9xf32, #tpu.memory_space<vmem>>, vector<2x1xf32>,
    %c0_128 = arith.constant 0 : index
    %c96 = arith.constant 96 : index
    %512 = vector.load %arg1[%c0_128, %c96] : memref<2x160xf32, #tpu.memory_space<vmem>>, vector<2x17xf32>
    %cst_129 = arith.constant dense<0.000000e+00> : vector<2x96xf32>
    %513 = tpu.matmul %512, %0, %cst_129 {dimension_numbers = #tpu.dot_dimension_numbers<[1], [0], [0], [1], [0, 0, 1, 1], [], []>} : vector<2x17xf32>, vector<17x96xf32>, vector<2x96xf32> -> vector<2x96xf32>
    %514 = vector.broadcast %1 : vector<1x96xf32> to vector<2x96xf32>
    %515 = arith.addf %513, %514 : vector<2x96xf32>
    %cst_130 = arith.constant dense<0.000000e+00> : vector<2x96xf32>
    %516 = tpu.matmul %456, %2, %cst_130 {dimension_numbers = #tpu.dot_dimension_numbers<[1], [0], [0], [1], [0, 0, 1, 1], [], []>} : vector<2x32xf32>, vector<32x96xf32>, vector<2x96xf32> -> vector<2x96xf32>
    %517 = vector.extract_strided_slice %515 {offsets = [0, 0], sizes = [2, 64], strides = [1, 1]} : vector<2x96xf32> to vector<2x64xf32>
    %518 = vector.extract_strided_slice %516 {offsets = [0, 0], sizes = [2, 64], strides = [1, 1]} : vector<2x96xf32> to vector<2x64xf32>
    %519 = arith.addf %517, %518 : vector<2x64xf32>
    %520 = arith.negf %519 : vector<2x64xf32>
    %521 = math.exp %520 : vector<2x64xf32>
    %cst_131 = arith.constant 1.000000e+00 : f32
    %522 = vector.broadcast %cst_131 : f32 to vector<2x64xf32>
    %523 = arith.addf %522, %521 : vector<2x64xf32>
    %524 = arith.divf %522, %523 : vector<2x64xf32>
    %525 = vector.extract_strided_slice %515 {offsets = [0, 64], sizes = [2, 32], strides = [1, 1]} : vector<2x96xf32> to vector<2x32xf32>
    %526 = vector.extract_strided_slice %524 {offsets = [0, 0], sizes = [2, 32], strides = [1, 1]} : vector<2x64xf32> to vector<2x32xf32>
    %527 = vector.extract_strided_slice %516 {offsets = [0, 64], sizes = [2, 32], strides = [1, 1]} : vector<2x96xf32> to vector<2x32xf32>
    %528 = vector.broadcast %3 : vector<1x32xf32> to vector<2x32xf32>
    %529 = arith.addf %527, %528 : vector<2x32xf32>
    %530 = arith.mulf %526, %529 : vector<2x32xf32>
    %531 = arith.addf %525, %530 : vector<2x32xf32>
    %532 = math.tanh %531 : vector<2x32xf32>
    %533 = vector.extract_strided_slice %524 {offsets = [0, 32], sizes = [2, 32], strides = [1, 1]} : vector<2x64xf32> to vector<2x32xf32>
    %cst_132 = arith.constant 1.000000e+00 : f32
    %534 = vector.broadcast %cst_132 : f32 to vector<2x32xf32>
    %535 = arith.subf %534, %533 : vector<2x32xf32>
    %536 = arith.mulf %535, %532 : vector<2x32xf32>
    %537 = vector.extract_strided_slice %524 {offsets = [0, 32], sizes = [2, 32], strides = [1, 1]} : vector<2x64xf32> to vector<2x32xf32>
    %538 = arith.mulf %537, %456 : vector<2x32xf32>
    %539 = arith.addf %536, %538 : vector<2x32xf32>
    %cst_133 = arith.constant dense<0.000000e+00> : vector<2x96xf32>
    %540 = tpu.matmul %539, %4, %cst_133 {dimension_numbers = #tpu.dot_dimension_numbers<[1], [0], [0], [1], [0, 0, 1, 1], [], []>} : vector<2x32xf32>, vector<32x96xf32>, vector<2x96xf32> -> vector<2x96xf32>
    %541 = vector.broadcast %5 : vector<1x96xf32> to vector<2x96xf32>
    %542 = arith.addf %540, %541 : vector<2x96xf32>
    %cst_134 = arith.constant dense<0.000000e+00> : vector<2x96xf32>
    %543 = tpu.matmul %483, %6, %cst_134 {dimension_numbers = #tpu.dot_dimension_numbers<[1], [0], [0], [1], [0, 0, 1, 1], [], []>} : vector<2x32xf32>, vector<32x96xf32>, vector<2x96xf32> -> vector<2x96xf32>
    %544 = vector.extract_strided_slice %542 {offsets = [0, 0], sizes = [2, 64], strides = [1, 1]} : vector<2x96xf32> to vector<2x64xf32>
    %545 = vector.extract_strided_slice %543 {offsets = [0, 0], sizes = [2, 64], strides = [1, 1]} : vector<2x96xf32> to vector<2x64xf32>
    %546 = arith.addf %544, %545 : vector<2x64xf32>
    %547 = arith.negf %546 : vector<2x64xf32>
    %548 = math.exp %547 : vector<2x64xf32>
    %cst_135 = arith.constant 1.000000e+00 : f32
    %549 = vector.broadcast %cst_135 : f32 to vector<2x64xf32>
    %550 = arith.addf %549, %548 : vector<2x64xf32>
    %551 = arith.divf %549, %550 : vector<2x64xf32>
    %552 = vector.extract_strided_slice %542 {offsets = [0, 64], sizes = [2, 32], strides = [1, 1]} : vector<2x96xf32> to vector<2x32xf32>
    %553 = vector.extract_strided_slice %551 {offsets = [0, 0], sizes = [2, 32], strides = [1, 1]} : vector<2x64xf32> to vector<2x32xf32>
    %554 = vector.extract_strided_slice %543 {offsets = [0, 64], sizes = [2, 32], strides = [1, 1]} : vector<2x96xf32> to vector<2x32xf32>
    %555 = vector.broadcast %7 : vector<1x32xf32> to vector<2x32xf32>
    %556 = arith.addf %554, %555 : vector<2x32xf32>
    %557 = arith.mulf %553, %556 : vector<2x32xf32>
    %558 = arith.addf %552, %557 : vector<2x32xf32>
    %559 = math.tanh %558 : vector<2x32xf32>
    %560 = vector.extract_strided_slice %551 {offsets = [0, 32], sizes = [2, 32], strides = [1, 1]} : vector<2x64xf32> to vector<2x32xf32>
    %cst_136 = arith.constant 1.000000e+00 : f32
    %561 = vector.broadcast %cst_136 : f32 to vector<2x32xf32>
    %562 = arith.subf %561, %560 : vector<2x32xf32>
    %563 = arith.mulf %562, %559 : vector<2x32xf32>
    %564 = vector.extract_strided_slice %551 {offsets = [0, 32], sizes = [2, 32], strides = [1, 1]} : vector<2x64xf32> to vector<2x32xf32>
    %565 = arith.mulf %564, %483 : vector<2x32xf32>
    %566 = arith.addf %563, %565 : vector<2x32xf32>
    %cst_137 = arith.constant dense<0.000000e+00> : vector<2x16xf32>
    %567 = tpu.matmul %566, %8, %cst_137 {dimension_numbers = #tpu.dot_dimension_numbers<[1], [0], [0], [1], [0, 0, 1, 1], [], []>} : vector<2x32xf32>, vector<32x16xf32>, vector<2x16xf32> -> vector<2x16xf32>
    %568 = vector.broadcast %9 : vector<1x16xf32> to vector<2x16xf32>
    %569 = arith.addf %567, %568 : vector<2x16xf32>
    %cst_138 = arith.constant 5.000000e-01 : f32
    %570 = vector.broadcast %cst_138 : f32 to vector<2x16xf32>
    %571 = arith.mulf %570, %569 : vector<2x16xf32>
    %cst_139 = arith.constant 4.471500e-02 : f32
    %572 = vector.broadcast %cst_139 : f32 to vector<2x16xf32>
    %573 = arith.mulf %572, %569 : vector<2x16xf32>
    %574 = arith.mulf %573, %569 : vector<2x16xf32>
    %575 = arith.mulf %574, %569 : vector<2x16xf32>
    %576 = arith.addf %569, %575 : vector<2x16xf32>
    %cst_140 = arith.constant 0.797884583 : f32
    %577 = vector.broadcast %cst_140 : f32 to vector<2x16xf32>
    %578 = arith.mulf %577, %576 : vector<2x16xf32>
    %579 = math.tanh %578 : vector<2x16xf32>
    %cst_141 = arith.constant 1.000000e+00 : f32
    %580 = vector.broadcast %cst_141 : f32 to vector<2x16xf32>
    %581 = arith.addf %580, %579 : vector<2x16xf32>
    %582 = arith.mulf %571, %581 : vector<2x16xf32>
    %583 = vector.broadcast %10 : vector<1x16xf32> to vector<2x16xf32>
    %584 = arith.mulf %582, %583 : vector<2x16xf32>
    %cst_142 = arith.constant dense<0.000000e+00> : vector<2xf32>
    %585 = vector.multi_reduction <add>, %584, %cst_142 [1] : vector<2x16xf32> to vector<2xf32>
    %586 = vector.shape_cast %585 : vector<2xf32> to vector<2x1xf32>
    %587 = vector.broadcast %11 : vector<1x1xf32> to vector<2x1xf32>
    %588 = arith.addf %586, %587 : vector<2x1xf32>
    %589 = arith.negf %588 : vector<2x1xf32>
    %590 = math.exp %589 : vector<2x1xf32>
    %cst_143 = arith.constant 1.000000e+00 : f32
    %591 = vector.broadcast %cst_143 : f32 to vector<2x1xf32>
    %592 = arith.addf %591, %590 : vector<2x1xf32>
    %593 = arith.divf %591, %592 : vector<2x1xf32>
    %c0_144 = arith.constant 0 : index
    %c6 = arith.constant 6 : index
    %594 = vector.load %arg14[%c0_144, %c6] : memref<2x9xf32, #tpu.memory_space<vmem>>, vector<2x1xf32>
    tpu.vector_store %arg14[%c0_144, %c6], %593 {strides = array<i32>} : memref<2x9xf32, #tpu.memory_space<vmem>>, vector<2x1xf32>,
    %c0_145 = arith.constant 0 : index
    %c112 = arith.constant 112 : index
    %595 = vector.load %arg1[%c0_145, %c112] : memref<2x160xf32, #tpu.memory_space<vmem>>, vector<2x17xf32>
    %cst_146 = arith.constant dense<0.000000e+00> : vector<2x96xf32>
    %596 = tpu.matmul %595, %0, %cst_146 {dimension_numbers = #tpu.dot_dimension_numbers<[1], [0], [0], [1], [0, 0, 1, 1], [], []>} : vector<2x17xf32>, vector<17x96xf32>, vector<2x96xf32> -> vector<2x96xf32>
    %597 = vector.broadcast %1 : vector<1x96xf32> to vector<2x96xf32>
    %598 = arith.addf %596, %597 : vector<2x96xf32>
    %cst_147 = arith.constant dense<0.000000e+00> : vector<2x96xf32>
    %599 = tpu.matmul %539, %2, %cst_147 {dimension_numbers = #tpu.dot_dimension_numbers<[1], [0], [0], [1], [0, 0, 1, 1], [], []>} : vector<2x32xf32>, vector<32x96xf32>, vector<2x96xf32> -> vector<2x96xf32>
    %600 = vector.extract_strided_slice %598 {offsets = [0, 0], sizes = [2, 64], strides = [1, 1]} : vector<2x96xf32> to vector<2x64xf32>
    %601 = vector.extract_strided_slice %599 {offsets = [0, 0], sizes = [2, 64], strides = [1, 1]} : vector<2x96xf32> to vector<2x64xf32>
    %602 = arith.addf %600, %601 : vector<2x64xf32>
    %603 = arith.negf %602 : vector<2x64xf32>
    %604 = math.exp %603 : vector<2x64xf32>
    %cst_148 = arith.constant 1.000000e+00 : f32
    %605 = vector.broadcast %cst_148 : f32 to vector<2x64xf32>
    %606 = arith.addf %605, %604 : vector<2x64xf32>
    %607 = arith.divf %605, %606 : vector<2x64xf32>
    %608 = vector.extract_strided_slice %598 {offsets = [0, 64], sizes = [2, 32], strides = [1, 1]} : vector<2x96xf32> to vector<2x32xf32>
    %609 = vector.extract_strided_slice %607 {offsets = [0, 0], sizes = [2, 32], strides = [1, 1]} : vector<2x64xf32> to vector<2x32xf32>
    %610 = vector.extract_strided_slice %599 {offsets = [0, 64], sizes = [2, 32], strides = [1, 1]} : vector<2x96xf32> to vector<2x32xf32>
    %611 = vector.broadcast %3 : vector<1x32xf32> to vector<2x32xf32>
    %612 = arith.addf %610, %611 : vector<2x32xf32>
    %613 = arith.mulf %609, %612 : vector<2x32xf32>
    %614 = arith.addf %608, %613 : vector<2x32xf32>
    %615 = math.tanh %614 : vector<2x32xf32>
    %616 = vector.extract_strided_slice %607 {offsets = [0, 32], sizes = [2, 32], strides = [1, 1]} : vector<2x64xf32> to vector<2x32xf32>
    %cst_149 = arith.constant 1.000000e+00 : f32
    %617 = vector.broadcast %cst_149 : f32 to vector<2x32xf32>
    %618 = arith.subf %617, %616 : vector<2x32xf32>
    %619 = arith.mulf %618, %615 : vector<2x32xf32>
    %620 = vector.extract_strided_slice %607 {offsets = [0, 32], sizes = [2, 32], strides = [1, 1]} : vector<2x64xf32> to vector<2x32xf32>
    %621 = arith.mulf %620, %539 : vector<2x32xf32>
    %622 = arith.addf %619, %621 : vector<2x32xf32>
    %cst_150 = arith.constant dense<0.000000e+00> : vector<2x96xf32>
    %623 = tpu.matmul %622, %4, %cst_150 {dimension_numbers = #tpu.dot_dimension_numbers<[1], [0], [0], [1], [0, 0, 1, 1], [], []>} : vector<2x32xf32>, vector<32x96xf32>, vector<2x96xf32> -> vector<2x96xf32>
    %624 = vector.broadcast %5 : vector<1x96xf32> to vector<2x96xf32>
    %625 = arith.addf %623, %624 : vector<2x96xf32>
    %cst_151 = arith.constant dense<0.000000e+00> : vector<2x96xf32>
    %626 = tpu.matmul %566, %6, %cst_151 {dimension_numbers = #tpu.dot_dimension_numbers<[1], [0], [0], [1], [0, 0, 1, 1], [], []>} : vector<2x32xf32>, vector<32x96xf32>, vector<2x96xf32> -> vector<2x96xf32>
    %627 = vector.extract_strided_slice %625 {offsets = [0, 0], sizes = [2, 64], strides = [1, 1]} : vector<2x96xf32> to vector<2x64xf32>
    %628 = vector.extract_strided_slice %626 {offsets = [0, 0], sizes = [2, 64], strides = [1, 1]} : vector<2x96xf32> to vector<2x64xf32>
    %629 = arith.addf %627, %628 : vector<2x64xf32>
    %630 = arith.negf %629 : vector<2x64xf32>
    %631 = math.exp %630 : vector<2x64xf32>
    %cst_152 = arith.constant 1.000000e+00 : f32
    %632 = vector.broadcast %cst_152 : f32 to vector<2x64xf32>
    %633 = arith.addf %632, %631 : vector<2x64xf32>
    %634 = arith.divf %632, %633 : vector<2x64xf32>
    %635 = vector.extract_strided_slice %625 {offsets = [0, 64], sizes = [2, 32], strides = [1, 1]} : vector<2x96xf32> to vector<2x32xf32>
    %636 = vector.extract_strided_slice %634 {offsets = [0, 0], sizes = [2, 32], strides = [1, 1]} : vector<2x64xf32> to vector<2x32xf32>
    %637 = vector.extract_strided_slice %626 {offsets = [0, 64], sizes = [2, 32], strides = [1, 1]} : vector<2x96xf32> to vector<2x32xf32>
    %638 = vector.broadcast %7 : vector<1x32xf32> to vector<2x32xf32>
    %639 = arith.addf %637, %638 : vector<2x32xf32>
    %640 = arith.mulf %636, %639 : vector<2x32xf32>
    %641 = arith.addf %635, %640 : vector<2x32xf32>
    %642 = math.tanh %641 : vector<2x32xf32>
    %643 = vector.extract_strided_slice %634 {offsets = [0, 32], sizes = [2, 32], strides = [1, 1]} : vector<2x64xf32> to vector<2x32xf32>
    %cst_153 = arith.constant 1.000000e+00 : f32
    %644 = vector.broadcast %cst_153 : f32 to vector<2x32xf32>
    %645 = arith.subf %644, %643 : vector<2x32xf32>
    %646 = arith.mulf %645, %642 : vector<2x32xf32>
    %647 = vector.extract_strided_slice %634 {offsets = [0, 32], sizes = [2, 32], strides = [1, 1]} : vector<2x64xf32> to vector<2x32xf32>
    %648 = arith.mulf %647, %566 : vector<2x32xf32>
    %649 = arith.addf %646, %648 : vector<2x32xf32>
    %cst_154 = arith.constant dense<0.000000e+00> : vector<2x16xf32>
    %650 = tpu.matmul %649, %8, %cst_154 {dimension_numbers = #tpu.dot_dimension_numbers<[1], [0], [0], [1], [0, 0, 1, 1], [], []>} : vector<2x32xf32>, vector<32x16xf32>, vector<2x16xf32> -> vector<2x16xf32>
    %651 = vector.broadcast %9 : vector<1x16xf32> to vector<2x16xf32>
    %652 = arith.addf %650, %651 : vector<2x16xf32>
    %cst_155 = arith.constant 5.000000e-01 : f32
    %653 = vector.broadcast %cst_155 : f32 to vector<2x16xf32>
    %654 = arith.mulf %653, %652 : vector<2x16xf32>
    %cst_156 = arith.constant 4.471500e-02 : f32
    %655 = vector.broadcast %cst_156 : f32 to vector<2x16xf32>
    %656 = arith.mulf %655, %652 : vector<2x16xf32>
    %657 = arith.mulf %656, %652 : vector<2x16xf32>
    %658 = arith.mulf %657, %652 : vector<2x16xf32>
    %659 = arith.addf %652, %658 : vector<2x16xf32>
    %cst_157 = arith.constant 0.797884583 : f32
    %660 = vector.broadcast %cst_157 : f32 to vector<2x16xf32>
    %661 = arith.mulf %660, %659 : vector<2x16xf32>
    %662 = math.tanh %661 : vector<2x16xf32>
    %cst_158 = arith.constant 1.000000e+00 : f32
    %663 = vector.broadcast %cst_158 : f32 to vector<2x16xf32>
    %664 = arith.addf %663, %662 : vector<2x16xf32>
    %665 = arith.mulf %654, %664 : vector<2x16xf32>
    %666 = vector.broadcast %10 : vector<1x16xf32> to vector<2x16xf32>
    %667 = arith.mulf %665, %666 : vector<2x16xf32>
    %cst_159 = arith.constant dense<0.000000e+00> : vector<2xf32>
    %668 = vector.multi_reduction <add>, %667, %cst_159 [1] : vector<2x16xf32> to vector<2xf32>
    %669 = vector.shape_cast %668 : vector<2xf32> to vector<2x1xf32>
    %670 = vector.broadcast %11 : vector<1x1xf32> to vector<2x1xf32>
    %671 = arith.addf %669, %670 : vector<2x1xf32>
    %672 = arith.negf %671 : vector<2x1xf32>
    %673 = math.exp %672 : vector<2x1xf32>
    %cst_160 = arith.constant 1.000000e+00 : f32
    %674 = vector.broadcast %cst_160 : f32 to vector<2x1xf32>
    %675 = arith.addf %674, %673 : vector<2x1xf32>
    %676 = arith.divf %674, %675 : vector<2x1xf32>
    %c0_161 = arith.constant 0 : index
    %c7 = arith.constant 7 : index
    %677 = vector.load %arg14[%c0_161, %c7] : memref<2x9xf32, #tpu.memory_space<vmem>>, vector<2x1xf32>
    tpu.vector_store %arg14[%c0_161, %c7], %676 {strides = array<i32>} : memref<2x9xf32, #tpu.memory_space<vmem>>, vector<2x1xf32>,
    %c0_162 = arith.constant 0 : index
    %c128 = arith.constant 128 : index
    %678 = vector.load %arg1[%c0_162, %c128] : memref<2x160xf32, #tpu.memory_space<vmem>>, vector<2x17xf32>
    %cst_163 = arith.constant dense<0.000000e+00> : vector<2x96xf32>
    %679 = tpu.matmul %678, %0, %cst_163 {dimension_numbers = #tpu.dot_dimension_numbers<[1], [0], [0], [1], [0, 0, 1, 1], [], []>} : vector<2x17xf32>, vector<17x96xf32>, vector<2x96xf32> -> vector<2x96xf32>
    %680 = vector.broadcast %1 : vector<1x96xf32> to vector<2x96xf32>
    %681 = arith.addf %679, %680 : vector<2x96xf32>
    %cst_164 = arith.constant dense<0.000000e+00> : vector<2x96xf32>
    %682 = tpu.matmul %622, %2, %cst_164 {dimension_numbers = #tpu.dot_dimension_numbers<[1], [0], [0], [1], [0, 0, 1, 1], [], []>} : vector<2x32xf32>, vector<32x96xf32>, vector<2x96xf32> -> vector<2x96xf32>
    %683 = vector.extract_strided_slice %681 {offsets = [0, 0], sizes = [2, 64], strides = [1, 1]} : vector<2x96xf32> to vector<2x64xf32>
    %684 = vector.extract_strided_slice %682 {offsets = [0, 0], sizes = [2, 64], strides = [1, 1]} : vector<2x96xf32> to vector<2x64xf32>
    %685 = arith.addf %683, %684 : vector<2x64xf32>
    %686 = arith.negf %685 : vector<2x64xf32>
    %687 = math.exp %686 : vector<2x64xf32>
    %cst_165 = arith.constant 1.000000e+00 : f32
    %688 = vector.broadcast %cst_165 : f32 to vector<2x64xf32>
    %689 = arith.addf %688, %687 : vector<2x64xf32>
    %690 = arith.divf %688, %689 : vector<2x64xf32>
    %691 = vector.extract_strided_slice %681 {offsets = [0, 64], sizes = [2, 32], strides = [1, 1]} : vector<2x96xf32> to vector<2x32xf32>
    %692 = vector.extract_strided_slice %690 {offsets = [0, 0], sizes = [2, 32], strides = [1, 1]} : vector<2x64xf32> to vector<2x32xf32>
    %693 = vector.extract_strided_slice %682 {offsets = [0, 64], sizes = [2, 32], strides = [1, 1]} : vector<2x96xf32> to vector<2x32xf32>
    %694 = vector.broadcast %3 : vector<1x32xf32> to vector<2x32xf32>
    %695 = arith.addf %693, %694 : vector<2x32xf32>
    %696 = arith.mulf %692, %695 : vector<2x32xf32>
    %697 = arith.addf %691, %696 : vector<2x32xf32>
    %698 = math.tanh %697 : vector<2x32xf32>
    %699 = vector.extract_strided_slice %690 {offsets = [0, 32], sizes = [2, 32], strides = [1, 1]} : vector<2x64xf32> to vector<2x32xf32>
    %cst_166 = arith.constant 1.000000e+00 : f32
    %700 = vector.broadcast %cst_166 : f32 to vector<2x32xf32>
    %701 = arith.subf %700, %699 : vector<2x32xf32>
    %702 = arith.mulf %701, %698 : vector<2x32xf32>
    %703 = vector.extract_strided_slice %690 {offsets = [0, 32], sizes = [2, 32], strides = [1, 1]} : vector<2x64xf32> to vector<2x32xf32>
    %704 = arith.mulf %703, %622 : vector<2x32xf32>
    %705 = arith.addf %702, %704 : vector<2x32xf32>
    %cst_167 = arith.constant dense<0.000000e+00> : vector<2x96xf32>
    %706 = tpu.matmul %705, %4, %cst_167 {dimension_numbers = #tpu.dot_dimension_numbers<[1], [0], [0], [1], [0, 0, 1, 1], [], []>} : vector<2x32xf32>, vector<32x96xf32>, vector<2x96xf32> -> vector<2x96xf32>
    %707 = vector.broadcast %5 : vector<1x96xf32> to vector<2x96xf32>
    %708 = arith.addf %706, %707 : vector<2x96xf32>
    %cst_168 = arith.constant dense<0.000000e+00> : vector<2x96xf32>
    %709 = tpu.matmul %649, %6, %cst_168 {dimension_numbers = #tpu.dot_dimension_numbers<[1], [0], [0], [1], [0, 0, 1, 1], [], []>} : vector<2x32xf32>, vector<32x96xf32>, vector<2x96xf32> -> vector<2x96xf32>
    %710 = vector.extract_strided_slice %708 {offsets = [0, 0], sizes = [2, 64], strides = [1, 1]} : vector<2x96xf32> to vector<2x64xf32>
    %711 = vector.extract_strided_slice %709 {offsets = [0, 0], sizes = [2, 64], strides = [1, 1]} : vector<2x96xf32> to vector<2x64xf32>
    %712 = arith.addf %710, %711 : vector<2x64xf32>
    %713 = arith.negf %712 : vector<2x64xf32>
    %714 = math.exp %713 : vector<2x64xf32>
    %cst_169 = arith.constant 1.000000e+00 : f32
    %715 = vector.broadcast %cst_169 : f32 to vector<2x64xf32>
    %716 = arith.addf %715, %714 : vector<2x64xf32>
    %717 = arith.divf %715, %716 : vector<2x64xf32>
    %718 = vector.extract_strided_slice %708 {offsets = [0, 64], sizes = [2, 32], strides = [1, 1]} : vector<2x96xf32> to vector<2x32xf32>
    %719 = vector.extract_strided_slice %717 {offsets = [0, 0], sizes = [2, 32], strides = [1, 1]} : vector<2x64xf32> to vector<2x32xf32>
    %720 = vector.extract_strided_slice %709 {offsets = [0, 64], sizes = [2, 32], strides = [1, 1]} : vector<2x96xf32> to vector<2x32xf32>
    %721 = vector.broadcast %7 : vector<1x32xf32> to vector<2x32xf32>
    %722 = arith.addf %720, %721 : vector<2x32xf32>
    %723 = arith.mulf %719, %722 : vector<2x32xf32>
    %724 = arith.addf %718, %723 : vector<2x32xf32>
    %725 = math.tanh %724 : vector<2x32xf32>
    %726 = vector.extract_strided_slice %717 {offsets = [0, 32], sizes = [2, 32], strides = [1, 1]} : vector<2x64xf32> to vector<2x32xf32>
    %cst_170 = arith.constant 1.000000e+00 : f32
    %727 = vector.broadcast %cst_170 : f32 to vector<2x32xf32>
    %728 = arith.subf %727, %726 : vector<2x32xf32>
    %729 = arith.mulf %728, %725 : vector<2x32xf32>
    %730 = vector.extract_strided_slice %717 {offsets = [0, 32], sizes = [2, 32], strides = [1, 1]} : vector<2x64xf32> to vector<2x32xf32>
    %731 = arith.mulf %730, %649 : vector<2x32xf32>
    %732 = arith.addf %729, %731 : vector<2x32xf32>
    %cst_171 = arith.constant dense<0.000000e+00> : vector<2x16xf32>
    %733 = tpu.matmul %732, %8, %cst_171 {dimension_numbers = #tpu.dot_dimension_numbers<[1], [0], [0], [1], [0, 0, 1, 1], [], []>} : vector<2x32xf32>, vector<32x16xf32>, vector<2x16xf32> -> vector<2x16xf32>
    %734 = vector.broadcast %9 : vector<1x16xf32> to vector<2x16xf32>
    %735 = arith.addf %733, %734 : vector<2x16xf32>
    %cst_172 = arith.constant 5.000000e-01 : f32
    %736 = vector.broadcast %cst_172 : f32 to vector<2x16xf32>
    %737 = arith.mulf %736, %735 : vector<2x16xf32>
    %cst_173 = arith.constant 4.471500e-02 : f32
    %738 = vector.broadcast %cst_173 : f32 to vector<2x16xf32>
    %739 = arith.mulf %738, %735 : vector<2x16xf32>
    %740 = arith.mulf %739, %735 : vector<2x16xf32>
    %741 = arith.mulf %740, %735 : vector<2x16xf32>
    %742 = arith.addf %735, %741 : vector<2x16xf32>
    %cst_174 = arith.constant 0.797884583 : f32
    %743 = vector.broadcast %cst_174 : f32 to vector<2x16xf32>
    %744 = arith.mulf %743, %742 : vector<2x16xf32>
    %745 = math.tanh %744 : vector<2x16xf32>
    %cst_175 = arith.constant 1.000000e+00 : f32
    %746 = vector.broadcast %cst_175 : f32 to vector<2x16xf32>
    %747 = arith.addf %746, %745 : vector<2x16xf32>
    %748 = arith.mulf %737, %747 : vector<2x16xf32>
    %749 = vector.broadcast %10 : vector<1x16xf32> to vector<2x16xf32>
    %750 = arith.mulf %748, %749 : vector<2x16xf32>
    %cst_176 = arith.constant dense<0.000000e+00> : vector<2xf32>
    %751 = vector.multi_reduction <add>, %750, %cst_176 [1] : vector<2x16xf32> to vector<2xf32>
    %752 = vector.shape_cast %751 : vector<2xf32> to vector<2x1xf32>
    %753 = vector.broadcast %11 : vector<1x1xf32> to vector<2x1xf32>
    %754 = arith.addf %752, %753 : vector<2x1xf32>
    %755 = arith.negf %754 : vector<2x1xf32>
    %756 = math.exp %755 : vector<2x1xf32>
    %cst_177 = arith.constant 1.000000e+00 : f32
    %757 = vector.broadcast %cst_177 : f32 to vector<2x1xf32>
    %758 = arith.addf %757, %756 : vector<2x1xf32>
    %759 = arith.divf %757, %758 : vector<2x1xf32>
    %c0_178 = arith.constant 0 : index
    %c8 = arith.constant 8 : index
    %760 = vector.load %arg14[%c0_178, %c8] : memref<2x9xf32, #tpu.memory_space<vmem>>, vector<2x1xf32>
    tpu.vector_store %arg14[%c0_178, %c8], %759 {strides = array<i32>} : memref<2x9xf32, #tpu.memory_space<vmem>>, vector<2x1xf32>,
    return
  }
  func.func @transform_0(%arg0: i32) -> (i32, i32) {
    %c0_i32 = arith.constant 0 : i32
    %c0_i32_0 = arith.constant 0 : i32
    %c0_i32_1 = arith.constant 0 : i32
    return %c0_i32, %c0_i32_0 : i32, i32
  }
  func.func @transform_1(%arg0: i32) -> (i32, i32) {
    %c0_i32 = arith.constant 0 : i32
    %c0_i32_0 = arith.constant 0 : i32
    %c0_i32_1 = arith.constant 0 : i32
    return %c0_i32, %c0_i32_0 : i32, i32
  }
  func.func @transform_2(%arg0: i32) -> (i32, i32) {
    %c0_i32 = arith.constant 0 : i32
    %c0_i32_0 = arith.constant 0 : i32
    %c0_i32_1 = arith.constant 0 : i32
    return %c0_i32, %c0_i32_0 : i32, i32
  }
  func.func @transform_3(%arg0: i32) -> (i32, i32) {
    %c0_i32 = arith.constant 0 : i32
    %c0_i32_0 = arith.constant 0 : i32
    %c0_i32_1 = arith.constant 0 : i32
    return %c0_i32, %c0_i32_0 : i32, i32
  }
  func.func @transform_4(%arg0: i32) -> (i32, i32) {
    %c0_i32 = arith.constant 0 : i32
    %c0_i32_0 = arith.constant 0 : i32
    %c0_i32_1 = arith.constant 0 : i32
    return %c0_i32, %c0_i32_0 : i32, i32
  }
  func.func @transform_5(%arg0: i32) -> (i32, i32) {
    %c0_i32 = arith.constant 0 : i32
    %c0_i32_0 = arith.constant 0 : i32
    %c0_i32_1 = arith.constant 0 : i32
    return %c0_i32, %c0_i32_0 : i32, i32
  }
  func.func @transform_6(%arg0: i32) -> (i32, i32) {
    %c0_i32 = arith.constant 0 : i32
    %c0_i32_0 = arith.constant 0 : i32
    %c0_i32_1 = arith.constant 0 : i32
    return %c0_i32, %c0_i32_0 : i32, i32
  }
  func.func @transform_7(%arg0: i32) -> (i32, i32) {
    %c0_i32 = arith.constant 0 : i32
    %c0_i32_0 = arith.constant 0 : i32
    %c0_i32_1 = arith.constant 0 : i32
    return %c0_i32, %c0_i32_0 : i32, i32
  }
  func.func @transform_8(%arg0: i32) -> (i32, i32) {
    %c0_i32 = arith.constant 0 : i32
    %c0_i32_0 = arith.constant 0 : i32
    %c0_i32_1 = arith.constant 0 : i32
    return %c0_i32, %c0_i32_0 : i32, i32
  }
  func.func @transform_9(%arg0: i32) -> (i32, i32) {
    %c0_i32 = arith.constant 0 : i32
    %c0_i32_0 = arith.constant 0 : i32
    %c0_i32_1 = arith.constant 0 : i32
    return %c0_i32, %c0_i32_0 : i32, i32
  }
  func.func @transform_10(%arg0: i32) -> (i32, i32) {
    %c0_i32 = arith.constant 0 : i32
    %c0_i32_0 = arith.constant 0 : i32
    %c0_i32_1 = arith.constant 0 : i32
    return %c0_i32, %c0_i32_0 : i32, i32
  }
  func.func @transform_11(%arg0: i32) -> (i32, i32) {
    %c0_i32 = arith.constant 0 : i32
    %c0_i32_0 = arith.constant 0 : i32
    %c0_i32_1 = arith.constant 0 : i32
    return %c0_i32, %c0_i32_0 : i32, i32
  }
  func.func @transform_12(%arg0: i32) -> (i32, i32) {
    %c0_i32 = arith.constant 0 : i32
    %c0_i32_0 = arith.constant 0 : i32
    %c0_i32_1 = arith.constant 0 : i32
    return %c0_i32, %c0_i32_0 : i32, i32
  }
  func.func @transform_13(%arg0: i32) -> (i32, i32) {
    %c0_i32 = arith.constant 0 : i32
    %c0_i32_0 = arith.constant 0 : i32
    %c0_i32_1 = arith.constant 0 : i32
    return %c0_i32, %c0_i32_0 : i32, i32
  }
}

</mosaic_0001>

<bundles_post_ra>
// kernel: fr_model_forward.1
= control target key start
LH: loop header
LB: loop body
LE: loop exit
PB: predicated region body
PF: predicated region fallthrough
CT: control target
= control target key end

     0   :  { %s6516_s0 = inlined_call_operand.vmem [shape: f32[2,160], index: 0, kind: input, shape index: {}]   ;;  %s6517_s1 = inlined_call_operand.hbm [shape: f32[17,96], index: 1, kind: input, shape index: {}]   ;;  %s6518_s2 = inlined_call_operand.vmem [shape: f32[1,96], index: 2, kind: input, shape index: {}]   ;;  %s6519_s3 = inlined_call_operand.vmem [shape: f32[32,96], index: 3, kind: input, shape index: {}]   ;;  %s6520_s4 = inlined_call_operand.vmem [shape: f32[1,32], index: 4, kind: input, shape index: {}]   ;;  %s6521_s5 = inlined_call_operand.vmem [shape: f32[32,96], index: 5, kind: input, shape index: {}]   ;;  %s6522_s6 = inlined_call_operand.hbm [shape: f32[1,96], index: 6, kind: input, shape index: {}]   ;;  %s6523_s7 = inlined_call_operand.hbm [shape: f32[32,96], index: 7, kind: input, shape index: {}]   ;;  %s6524_s8 = inlined_call_operand.hbm [shape: f32[1,32], index: 8, kind: input, shape index: {}]   ;;  %s6525_s9 = inlined_call_operand.vmem [shape: f32[32,16], index: 9, kind: input, shape index: {}]   ;;  %s6526_s10 = inlined_call_operand.hbm [shape: f32[1,16], index: 10, kind: input, shape index: {}]   ;;  %s6527_s11 = inlined_call_operand.hbm [shape: f32[1,16], index: 11, kind: input, shape index: {}]   ;;  %s6528_s12 = inlined_call_operand.<no memory space> [shape: f32[1,1], index: 12, kind: input, shape index: {}]   ;;  %s6529_s13 = inlined_call_operand.hbm [shape: f32[2,9], index: 13, kind: output, shape index: {}]  }
   0x1   :  { %v18_v0 = vstv %s6528_s12 }
   0x2   :  { %19 = vst [vmem:[#allocation2] sm:$0x1] %v18_v0 }
   0x3   :  { %20 = vsyncpa [#allocation4], 0 }
   0x4   :  { %21 = vsyncpa [#allocation7], 0 }
   0x5   :  { %22 = vsyncpa [#allocation10], 0 }
   0x6   :  { %23 = vsyncpa [#allocation13], 0 }
   0x7   :  { %24 = vsyncpa [#allocation5], 0  ;;  %s5665_s27 = smov [#allocation6]   ;;  %s5666_s29 = smov [#allocation9]  }
   0x8   :  { %s53_s28 = sshll.u32 %s5665_s27, 4  ;;  %s75_s30 = sshll.u32 %s5666_s29, 4  ;;  %s54_s28 = int_to_ptr.vmem [resolvable:$true] %s53_s28  ;;  %s76_s30 = int_to_ptr.vmem [resolvable:$true] %s75_s30 }
   0x9   :  { %s5501_s16 = scalar_lea.hbm %s6522_s6, 16 }
   0xa   :  { %p5502_p0 = scmp.ne.s32.totalorder %s6522_s6, %s5501_s16  ;;  %p5505_p1 = scmp.lt.u32.totalorder %s5501_s16, %s6522_s6 }
   0xc   :  { %p5507_p2 = pnand %p5505_p1, %p5502_p0 }
   0xe   :  { %5510 = shalt.err (!%p5507_p2)
}
   0xf   :  { %s5511_s20 = scalar_lea.vmem %s54_s28, 16  ;;  %s5515_s21 = scalar_lea.vmem %s54_s28, 32 }
  0x10   :  { %p5512_p3 = scmp.ne.s32.totalorder %s54_s28, %s5511_s20  ;;  %p5516_p4 = scmp.lt.s32.totalorder %s54_s28, %s54_s28 }
  0x11   :  { %p5517_p5 = scmp.lt.s32.totalorder %s5515_s21, %s5511_s20 }
  0x13   :  { %p5518_p6 = por %p5517_p5, %p5516_p4 }
  0x15   :  { %p5519_p7 = pnand %p5518_p6, %p5512_p3 }
  0x17   :  { %5522 = shalt.err (!%p5519_p7)
}
  0x18   :  { %56 = dma.hbm_to_vmem [thread:$0]  %s6522_s6, 16, %s54_s28, [#allocation7]  }
  0x19   :  { %s5523_s26 = scalar_lea.hbm %s6524_s8, 16 }
  0x1a   :  { %p5524_p8 = scmp.ne.s32.totalorder %s6524_s8, %s5523_s26  ;;  %p5527_p9 = scmp.lt.u32.totalorder %s5523_s26, %s6524_s8 }
  0x1c   :  { %p5529_p10 = pnand %p5527_p9, %p5524_p8 }
  0x1e   :  { %5532 = shalt.err (!%p5529_p10)
}
  0x1f   :  { %s5533_s16 = scalar_lea.vmem %s76_s30, 16  ;;  %s5537_s17 = scalar_lea.vmem %s76_s30, 32 }
  0x20   :  { %p5534_p11 = scmp.ne.s32.totalorder %s76_s30, %s5533_s16  ;;  %p5538_p12 = scmp.lt.s32.totalorder %s76_s30, %s76_s30 }
  0x21   :  { %p5539_p13 = scmp.lt.s32.totalorder %s5537_s17, %s5533_s16 }
  0x23   :  { %p5540_p0 = por %p5539_p13, %p5538_p12 }
  0x25   :  { %p5541_p1 = pnand %p5540_p0, %p5534_p11 }
  0x27   :  { %5544 = shalt.err (!%p5541_p1)
}
  0x28   :  { %78 = dma.hbm_to_vmem [thread:$0]  %s6524_s8, 16, %s76_s30, [#allocation10]  }
  0x29   :  { %s5667_s18 = smov [#allocation3]   ;;  %s5545_s21 = scalar_lea.hbm %s6517_s1, 384 }
  0x2a   :  { %s32_s12 = sshll.u32 %s5667_s18, 4  ;;  %p5546_p2 = scmp.ne.s32.totalorder %s6517_s1, %s5545_s21  ;;  %s33_s12 = int_to_ptr.vmem [resolvable:$true] %s32_s12 }
  0x2b   :  { %p5549_p3 = scmp.lt.u32.totalorder %s5545_s21, %s6517_s1 }
  0x2d   :  { %p5551_p4 = pnand %p5549_p3, %p5546_p2 }
  0x2f   :  { %5554 = shalt.err (!%p5551_p4)
}
  0x30   :  { %s5555_s26 = scalar_lea.vmem %s33_s12, 384  ;;  %p5560_p6 = scmp.lt.s32.totalorder %s33_s12, %s33_s12 }
  0x31   :  { %p5556_p5 = scmp.ne.s32.totalorder %s33_s12, %s5555_s26  ;;  %p5561_p7 = scmp.lt.s32.totalorder %s5555_s26, %s5555_s26 }
  0x33   :  { %p5562_p8 = por %p5561_p7, %p5560_p6 }
  0x35   :  { %p5563_p9 = pnand %p5562_p8, %p5556_p5 }
  0x37   :  { %5566 = shalt.err (!%p5563_p9)
}
  0x38   :  { %s5668_s8 = smov 128   ;;  %s5669_s30 = smov 8  }
  0x39   :  { %38 = dma.hbm_to_vmem [thread:$0]  %s6517_s1, 384, %s33_s12, [#allocation4], %s5668_s8, %s5668_s8, %s5669_s30  }
  0x3a   :  { %s5670_s14 = smov [#allocation8]   ;;  %s5671_s16 = smov [#allocation11]  }
  0x3b   :  { %s62_s15 = sshll.u32 %s5670_s14, 4  ;;  %s87_s17 = sshll.u32 %s5671_s16, 4  ;;  %s63_s15 = int_to_ptr.vmem [resolvable:$true] %s62_s15  ;;  %s88_s17 = int_to_ptr.vmem [resolvable:$true] %s87_s17 }
  0x3c   :  { %s5567_s18 = scalar_lea.hbm %s6523_s7, 512 }
  0x3d   :  { %p5568_p10 = scmp.ne.s32.totalorder %s6523_s7, %s5567_s18  ;;  %p5571_p11 = scmp.lt.u32.totalorder %s5567_s18, %s6523_s7 }
  0x3f   :  { %p5573_p12 = pnand %p5571_p11, %p5568_p10 }
  0x41   :  { %5576 = shalt.err (!%p5573_p12)
}
  0x42   :  { %s5577_s1 = scalar_lea.vmem %s63_s15, 512  ;;  %p5582_p0 = scmp.lt.s32.totalorder %s63_s15, %s63_s15 }
  0x43   :  { %p5578_p13 = scmp.ne.s32.totalorder %s63_s15, %s5577_s1  ;;  %p5583_p1 = scmp.lt.s32.totalorder %s5577_s1, %s5577_s1 }
  0x45   :  { %p5584_p2 = por %p5583_p1, %p5582_p0 }
  0x47   :  { %p5585_p3 = pnand %p5584_p2, %p5578_p13 }
  0x49   :  { %5588 = shalt.err (!%p5585_p3)
}
  0x4a   :  { %68 = dma.hbm_to_vmem [thread:$0]  %s6523_s7, 512, %s63_s15, [#allocation7], %s5668_s8, %s5668_s8, %s5669_s30  }
  0x4b   :  { %s5589_s26 = scalar_lea.hbm %s6526_s10, 16 }
  0x4c   :  { %p5590_p4 = scmp.ne.s32.totalorder %s6526_s10, %s5589_s26  ;;  %p5593_p5 = scmp.lt.u32.totalorder %s5589_s26, %s6526_s10 }
  0x4e   :  { %p5595_p6 = pnand %p5593_p5, %p5590_p4 }
  0x50   :  { %5598 = shalt.err (!%p5595_p6)
}
  0x51   :  { %s5599_s6 = scalar_lea.vmem %s88_s17, 16  ;;  %s5603_s28 = scalar_lea.vmem %s88_s17, 32 }
  0x52   :  { %p5600_p7 = scmp.ne.s32.totalorder %s88_s17, %s5599_s6  ;;  %p5604_p8 = scmp.lt.s32.totalorder %s88_s17, %s88_s17 }
  0x53   :  { %p5605_p9 = scmp.lt.s32.totalorder %s5603_s28, %s5599_s6 }
  0x55   :  { %p5606_p10 = por %p5605_p9, %p5604_p8 }
  0x57   :  { %p5607_p11 = pnand %p5606_p10, %p5600_p7 }
  0x59   :  { %5610 = shalt.err (!%p5607_p11)
}
  0x5a   :  { %90 = dma.hbm_to_vmem [thread:$0]  %s6526_s10, 16, %s88_s17, [#allocation10]  }
  0x5b   :  { %s5672_s15 = smov [#allocation12]   ;;  %s5611_s21 = scalar_lea.hbm %s6527_s11, 16 }
  0x5c   :  { %s97_s18 = sshll.u32 %s5672_s15, 4  ;;  %p5612_p12 = scmp.ne.s32.totalorder %s6527_s11, %s5611_s21  ;;  %s98_s18 = int_to_ptr.vmem [resolvable:$true] %s97_s18 }
  0x5d   :  { %p5615_p13 = scmp.lt.u32.totalorder %s5611_s21, %s6527_s11 }
  0x5f   :  { %p5617_p0 = pnand %p5615_p13, %p5612_p12 }
  0x61   :  { %5620 = shalt.err (!%p5617_p0)
}
  0x62   :  { %s5621_s24 = scalar_lea.vmem %s98_s18, 16  ;;  %s5625_s10 = scalar_lea.vmem %s98_s18, 32 }
  0x63   :  { %p5622_p1 = scmp.ne.s32.totalorder %s98_s18, %s5621_s24  ;;  %p5626_p2 = scmp.lt.s32.totalorder %s98_s18, %s98_s18 }
  0x64   :  { %p5627_p3 = scmp.lt.s32.totalorder %s5625_s10, %s5621_s24 }
  0x66   :  { %p5628_p4 = por %p5627_p3, %p5626_p2 }
  0x68   :  { %p5629_p5 = pnand %p5628_p4, %p5622_p1 }
  0x6a   :  { %5632 = shalt.err (!%p5629_p5)
}
  0x6b   :  { %100 = dma.hbm_to_vmem [thread:$0]  %s6527_s11, 16, %s98_s18, [#allocation13]  }
  0x6c   :  { %5655 = dma.done.wait [#allocation4], 384  }
  0x6d   :  { %5656 = vsyncadd [#allocation4], 4294966912 }
  0x6e   :  { %5657 = dma.done.wait [#allocation7], 528  }
  0x6f   :  { %5658 = vsyncadd [#allocation7], 4294966768 }
  0x70   :  { %5659 = dma.done.wait [#allocation10], 32  }
  0x71   :  { %5660 = vsyncadd [#allocation10], 4294967264 }
  0x72   :  { %5661 = dma.done.wait [#allocation13], 16  }
  0x73   :  { %5662 = vsyncadd [#allocation13], 4294967280  ;;  %v5673_v1 = vmov 0.0|0.0   ;;  %vm5674_vm0 = vmmov 0   ;;  %v5675_v2 = vmov 0.0   ;;  %v121_v3 = vld [vmem:[#allocation3] sm:$0xff] }
  0x74   :  { %5067 = vmatprep.subr.bf16.mxu0 %v5673_v1  ;;  %5070 = vmatprep.subr.bf16.mxu1 %v5673_v1  ;;  %v122_v4 = vld [vmem:[#allocation3 + $0x8] sm:$0xff]  ;;  %v125_v5 = vld [vmem:[%s6519_s3] sm:$0xff]  ;;  %v128_v10 = vld [vmem:[%s6519_s3 + $0x18] sm:$0xff]  ;;  %s5676_s15 = smov 64   ;;  %vm158_vm1 = vcmask 1040384   ;;  %vm154_vm2 = vcmask 138240  }
  0x75   :  { %4596 = vmatprep.mubr.msk.f32.mxu0 %vm5674_vm0, %v5675_v2  ;;  %4607 = vmatprep.mubr.msk.f32.mxu1 %vm5674_vm0, %v5675_v2  ;;  %v5847_v6 = vpack.c.bf16 %v122_v4, %v121_v3  ;;  %v126_v7 = vld [vmem:[%s6519_s3 + $0x8] sm:$0xff]  ;;  %v127_v8 = vld [vmem:[%s6519_s3 + $0x10] sm:$0xff]  ;;  %v4285_v11 = vld [vmem:[%s6520_s4] ss:$0 sm:$0xff]  ;;  %vm232_vm3 = vcmask 261120   ;;  %s5679_s7 = smov 80  }
  0x76   :  { %v5855_v9 = vpack.c.bf16 %v126_v7, %v125_v5  ;;  %318 = vrot.lane.b32.xlu0 %v4285_v11, %s5676_s15  ;;  %v5867_v12 = vld [vmem:[#allocation3 + $0x10] sm:$0x1]  ;;  %v5869_v13 = vpack.c.bf16 %v128_v10, %v127_v8  ;;  %v147_v14 = vld [vmem:[%s6516_s0] sm:$0x3]  ;;  %v136_v33 = vld [vmem:[#allocation8 + $0x8] sm:$0xff]  ;;  %s5680_s8 = smov 48  }
  0x77   :  { %5069 = vmatpush3.bf16.msra.mxu0 %v5847_v6  ;;  %v5893_v21 = vld [vmem:[%s6518_s2] ss:$0 sm:$0xff]  ;;  %v137_v34 = vld [vmem:[#allocation8 + $0x10] sm:$0xff]  ;;  %v138_v36 = vld [vmem:[#allocation8 + $0x18] sm:$0xff]  ;;  %s5681_s3 = smov 32   ;;  %s5682_s20 = smov 16  }
  0x78   :  { %5072 = vmatpush3.bf16.msra.mxu1 %v5855_v9  ;;  %4594 = vmatprep.subr.mxu0 %v5675_v2  ;;  %v135_v32 = vld [vmem:[#allocation8] sm:$0xff]  ;;  %v131_v38 = vld [vmem:[%s6521_s5 + $0x8] sm:$0xff]  ;;  %v132_v40 = vld [vmem:[%s6521_s5 + $0x10] sm:$0xff]  ;;  %v5914_v42 = vpack.c.bf16 %v138_v36, %v137_v34  ;;  %vm3375_vm4 = vcmask 130048   ;;  %vm624_vm5 = vcmask 123904   ;;  %vm641_vm6 = vcmask 1024  }
  0x79   :  { %5073 = vmatprep.subr.bf16.mxu1 %v5673_v1  ;;  %v5897_v35 = vpack.c.bf16 %v136_v33, %v135_v32  ;;  %v130_v37 = vld [vmem:[%s6521_s5] sm:$0xff]  ;;  %v133_v41 = vld [vmem:[%s6521_s5 + $0x18] sm:$0xff]  ;;  %s5677_s5 = smov 96   ;;  %v141_v10 = vld [vmem:[%s6525_s9 + $0x8] sm:$0xff]  ;;  %vm1094_vm7 = vcmask 9224   ;;  %vm1547_vm8 = vcmask 17424  }
  0x7a   :  { %v5905_v39 = vpack.c.bf16 %v131_v38, %v130_v37  ;;  %v5918_v43 = vpack.c.bf16 %v133_v41, %v132_v40  ;;  %v4289_v45 = vld [vmem:[#allocation9] ss:$0 sm:$0xff]  ;;  %v5946_v56 = vld [vmem:[#allocation6] ss:$0 sm:$0xff]  ;;  %v140_v8 = vld [vmem:[%s6525_s9] sm:$0xff]  ;;  %s5685_s1 = smov 3  }
  0x7b   :  { %4595 = vmatpush3.msk.msra.mxu0 %vm158_vm1, %v5867_v12  ;;  %v142_v11 = vld [vmem:[%s6525_s9 + $0x10] sm:$0xff]  ;;  %s5686_s12 = smov 5   ;;  %vm2000_vm9 = vcmask 25624   ;;  %s5688_s23 = smov 6   ;;  %vm2453_vm10 = vcmask 33824   ;;  %vm2906_vm11 = vcmask 42024  }
  0x7c   :  { %5075 = vmatpush3.bf16.msra.mxu1 %v5869_v13  ;;  %4597 = vmatmul.mubr.msk.f32.vlgmr.msra.gmra.mrb[0].mxu0 %vm154_vm2, %v147_v14  ;;  %v143_v14 = vld [vmem:[%s6525_s9 + $0x18] sm:$0xff]  ;;  %s5678_s9 = smov 112   ;;  %s5689_s24 = smov 7   ;;  %vm3359_vm12 = vcmask 50224   ;;  %vm3817_vm13 = vcmask 58424   ;;  %vm4261_vm14 = vcmask 66624  }
  0x7d   :  { %5082 = vmatprep.subr.bf16.mxu1 %v5673_v1  ;;  %5076 = vmatprep.subr.bf16.mxu0 %v5673_v1  ;;  %s5690_s10 = smov [#allocation14]  }
  0x7e   :  { %4618 = vmatprep.mubr.msk.f32.mxu0 %vm5674_vm0, %v5675_v2  ;;  %5078 = vmatpush3.bf16.msra.mxu0 %v5905_v39 }
  0x7f   :  { %4608 = vmatmul.mubr.f32.vlgmr.msra.gmra.mrb[0].mxu1 %v5675_v2  ;;  %5079 = vmatprep.subr.bf16.mxu0 %v5673_v1 }
  0x80   :  { %4629 = vmatprep.mubr.msk.f32.mxu1 %vm5674_vm0, %v5675_v2  ;;  %5084 = vmatpush3.bf16.msra.mxu1 %v5897_v35 }
  0x81   :  { %5085 = vmatprep.subr.bf16.mxu1 %v5673_v1 }
  0x82   :  { %5081 = vmatpush3.bf16.msra.mxu0 %v5918_v43 }
  0x83   :  { %5088 = vmatprep.subr.bf16.mxu0 %v5673_v1 }
  0x84   :  { %5087 = vmatpush3.bf16.msra.mxu1 %v5914_v42 }
  0x85   :  { %5094 = vmatprep.subr.bf16.mxu1 %v5673_v1 }
  0x87   :  { %4630 = vmatmul.mubr.f32.vlgmr.msra.gmra.mrb[2].mxu1 %v5675_v2 }
  0x88   :  { %5096 = vmatpush3.bf16.msra.mxu1 %v5847_v6  ;;  %4649 = vmatprep.mubr.msk.f32.mxu1 %vm5674_vm0, %v5675_v2 }
  0x89   :  { %4647 = vmatprep.subr.mxu1 %v5675_v2 }
  0x8c   :  { %4648 = vmatpush3.msk.msra.mxu1 %vm158_vm1, %v5867_v12 }
  0x8d   :  { %5103 = vmatprep.subr.bf16.mxu1 %v5673_v1 }
  0xe8   :  { %v5886_v16 = vpop.permute.xlu0 %318 }
 0x14f   :  { %v228_v15 = vpop.f32.mrb[0].mxu0 }
 0x150   :  { %v4598_v17 = vpop.f32.mrb[1].mxu0  ;;  %v229_v22 = vadd.f32 %v5893_v21, %v228_v15  ;;  %v5962_v15 = vpack.c.bf16 %v141_v10, %v140_v8 }
 0x151   :  { %v5965_v17 = vpack.c.bf16 %v143_v14, %v142_v11 }
 0x152   :  { %v302_v18 = vpop.f32.mrb[0].mxu1 }
 0x153   :  { %v321_v19 = vadd.f32 %v5886_v16, %v302_v18  ;;  %v4609_v20 = vpop.f32.mrb[1].mxu1  ;;  %v306_v23 = vadd.f32 %v302_v18, %v229_v22 }
 0x155   :  { %323 = vrot.lane.b32.xlu0 %v321_v19, %s5676_s15  ;;  %v4284_v24 = vmul.f32 -1.442695, %v306_v23  ;;  %v5974_v19 = vld.sshfl [vmem:[%s6516_s0] sm:$0x3 pattern:$0x76325410] }
 0x157   :  { %5336 = vpow2.f32 %v4284_v24 }
 0x15a   :  { %v488_v51 = vpop.f32.mrb[2].mxu1 }
 0x15b   :  { %v4631_v52 = vpop.f32.mrb[3].mxu1 }
 0x161   :  { %v5337_v25 = vpop.eup %5336 }
 0x162   :  { %v310_v26 = vadd.f32 1.0, %v5337_v25 }
 0x164   :  { %5338 = vrcp.f32 %v310_v26 }
 0x16e   :  { %v5339_v27 = vpop.eup %5338 }
 0x16f   :  { %v333_v46 = vsub.f32 1.0, %v5339_v27  ;;  %v339_v48 = vmul.f32 0.0, %v5339_v27 }
 0x1c7   :  { %v324_v28 = vpop.permute.xlu0 %323 }
 0x1c8   :  { %v326_v29 = vmul.f32 %v5339_v27, %v324_v28 }
 0x1ca   :  { %328 = vrot.lane.b32.xlu1 %v326_v29, %s5676_s15 }
 0x23c   :  { %v329_v30 = vpop.permute.xlu1 %328 }
 0x23d   :  { %v331_v31 = vadd.f32 %v329_v30, %v229_v22 }
 0x23f   :  { %5340 = vtanh.f32 %v331_v31 }
 0x249   :  { %v5341_v44 = vpop.eup %5340 }
 0x24a   :  { %335 = vrot.lane.b32.xlu1 %v5341_v44, %s5677_s5 }
 0x24e   :  { %504 = vrot.lane.b32.xlu1 %v4289_v45, %s5676_s15 }
 0x2bc   :  { %v336_v47 = vpop.permute.xlu1 %335 }
 0x2bd   :  { %v338_v49 = vmul.f32 %v336_v47, %v333_v46 }
 0x2bf   :  { %v5935_v50 = vadd.f32 %v339_v48, %v338_v49 }
 0x2c0   :  { %v5939_v53 = vpop.permute.xlu1 %504 }
 0x2c1   :  { %348 = vrot.lane.b32.xlu0 %v5935_v50, %s5677_s5  ;;  %v507_v54 = vadd.f32 %v5939_v53, %v488_v51 }
 0x2c5   :  { %509 = vrot.lane.b32.xlu0 %v507_v54, %s5676_s15 }
 0x333   :  { %v349_v55 = vpop.permute.xlu0 %348 }
 0x334   :  { %4619 = vmatmul.mubr.msk.f32.vlgmr.msra.gmra.mrb[2].mxu0 %vm232_vm3, %v349_v55 }
 0x335   :  { %4640 = vmatprep.mubr.msk.f32.mxu0 %vm5674_vm0, %v5675_v2  ;;  %5090 = vmatpush3.bf16.msra.mxu0 %v5962_v15 }
 0x336   :  { %5091 = vmatprep.subr.bf16.mxu0 %v5673_v1 }
 0x337   :  { %v510_v0 = vpop.permute.xlu0 %509 }
 0x339   :  { %5093 = vmatpush3.bf16.msra.mxu0 %v5965_v17 }
 0x33a   :  { %5097 = vmatprep.subr.bf16.mxu0 %v5673_v1 }
 0x407   :  { %v418_v57 = vpop.f32.mrb[2].mxu0 }
 0x408   :  { %v419_v58 = vadd.f32 %v5946_v56, %v418_v57  ;;  %v4620_v59 = vpop.f32.mrb[3].mxu0 }
 0x40a   :  { %v492_v60 = vadd.f32 %v488_v51, %v419_v58 }
 0x40c   :  { %v4288_v61 = vmul.f32 -1.442695, %v492_v60 }
 0x40e   :  { %5342 = vpow2.f32 %v4288_v61 }
 0x418   :  { %v5343_v62 = vpop.eup %5342 }
 0x419   :  { %v496_v63 = vadd.f32 1.0, %v5343_v62 }
 0x41b   :  { %5344 = vrcp.f32 %v496_v63 }
 0x425   :  { %v5345_v3 = vpop.eup %5344 }
 0x426   :  { %v512_v4 = vmul.f32 %v5345_v3, %v510_v0  ;;  %v519_v20 = vsub.f32 1.0, %v5345_v3  ;;  %v525_v23 = vmul.f32 0.0, %v5345_v3 }
 0x428   :  { %514 = vrot.lane.b32.xlu1 %v512_v4, %s5676_s15 }
 0x49a   :  { %v515_v5 = vpop.permute.xlu1 %514 }
 0x49b   :  { %v517_v7 = vadd.f32 %v515_v5, %v419_v58 }
 0x49d   :  { %5346 = vtanh.f32 %v517_v7 }
 0x4a7   :  { %v5347_v18 = vpop.eup %5346 }
 0x4a8   :  { %521 = vrot.lane.b32.xlu0 %v5347_v18, %s5677_s5 }
 0x4ac   :  { %652 = vrot.lane.b32.xlu0 %v5974_v19, %s5678_s9 }
 0x51a   :  { %v522_v22 = vpop.permute.xlu0 %521 }
 0x51b   :  { %v524_v24 = vmul.f32 %v522_v22, %v519_v20 }
 0x51d   :  { %v5977_v25 = vadd.f32 %v525_v23, %v524_v24 }
 0x51e   :  { %v653_v26 = vpop.permute.xlu0 %652 }
 0x51f   :  { %534 = vrot.lane.b32.xlu1 %v5977_v25, %s5677_s5  ;;  %4650 = vmatmul.mubr.msk.f32.vlgmr.msra.gmra.mrb[4].mxu1 %vm154_vm2, %v653_v26 }
 0x520   :  { %5105 = vmatpush3.bf16.msra.mxu1 %v5905_v39  ;;  %4671 = vmatprep.mubr.msk.f32.mxu1 %vm5674_vm0, %v5675_v2 }
 0x521   :  { %5106 = vmatprep.subr.bf16.mxu1 %v5673_v1 }
 0x524   :  { %5108 = vmatpush3.bf16.msra.mxu1 %v5918_v43 }
 0x525   :  { %5115 = vmatprep.subr.bf16.mxu1 %v5673_v1 }
 0x591   :  { %v535_v27 = vpop.permute.xlu1 %534 }
 0x592   :  { %4641 = vmatmul.mubr.msk.f32.vlgmr.msra.gmra.mrb[4].mxu0 %vm232_vm3, %v535_v27 }
 0x593   :  { %5099 = vmatpush3.bf16.msra.mxu0 %v5855_v9  ;;  %4660 = vmatprep.mubr.msk.f32.mxu0 %vm5674_vm0, %v5675_v2 }
 0x594   :  { %5100 = vmatprep.subr.bf16.mxu0 %v5673_v1 }
 0x597   :  { %5102 = vmatpush3.bf16.msra.mxu0 %v5869_v13 }
 0x598   :  { %5109 = vmatprep.subr.bf16.mxu0 %v5673_v1 }
 0x59a   :  { %4661 = vmatmul.mubr.msk.f32.vlgmr.msra.gmra.mrb[6].mxu0 %vm232_vm3, %v349_v55 }
 0x59b   :  { %5111 = vmatpush3.bf16.msra.mxu0 %v5897_v35  ;;  %4682 = vmatprep.mubr.msk.f32.mxu0 %vm5674_vm0, %v5675_v2 }
 0x59c   :  { %5112 = vmatprep.subr.bf16.mxu0 %v5673_v1 }
 0x59f   :  { %5114 = vmatpush3.bf16.msra.mxu0 %v5914_v42 }
 0x5a0   :  { %5121 = vmatprep.subr.bf16.mxu0 %v5673_v1 }
 0x5a2   :  { %4683 = vmatmul.mubr.msk.f32.vlgmr.msra.gmra.mrb[8].mxu0 %vm232_vm3, %v535_v27 }
 0x5a3   :  { %5123 = vmatpush3.bf16.msra.mxu0 %v5847_v6  ;;  %4702 = vmatprep.mubr.msk.f32.mxu0 %vm5674_vm0, %v5675_v2 }
 0x5a4   :  { %4700 = vmatprep.subr.mxu0 %v5675_v2 }
 0x5a7   :  { %4701 = vmatpush3.msk.msra.mxu0 %vm158_vm1, %v5867_v12 }
 0x5a8   :  { %5130 = vmatprep.subr.bf16.mxu0 %v5673_v1 }
 0x5f2   :  { %v722_v28 = vpop.f32.mrb[4].mxu1 }
 0x5f3   :  { %v4651_v29 = vpop.f32.mrb[5].mxu1  ;;  %v723_v38 = vadd.f32 %v5893_v21, %v722_v28 }
 0x665   :  { %v6010_v30 = vpop.f32.mrb[4].mxu0 }
 0x666   :  { %v4642_v31 = vpop.f32.mrb[5].mxu0 }
 0x66d   :  { %v792_v32 = vpop.f32.mrb[6].mxu0 }
 0x66e   :  { %v803_v33 = vadd.f32 %v792_v32, %v5886_v16  ;;  %v4662_v34 = vpop.f32.mrb[7].mxu0  ;;  %v796_v40 = vadd.f32 %v792_v32, %v723_v38 }
 0x670   :  { %805 = vrot.lane.b32.xlu1 %v803_v33, %s5676_s15  ;;  %v4299_v41 = vmul.f32 -1.442695, %v796_v40 }
 0x672   :  { %5348 = vpow2.f32 %v4299_v41 }
 0x675   :  { %v964_v36 = vpop.f32.mrb[8].mxu0 }
 0x676   :  { %v4684_v37 = vpop.f32.mrb[9].mxu0  ;;  %v975_v54 = vadd.f32 %v964_v36, %v5939_v53 }
 0x67c   :  { %v5349_v44 = vpop.eup %5348 }
 0x67d   :  { %v800_v45 = vadd.f32 1.0, %v5349_v44 }
 0x67f   :  { %5350 = vrcp.f32 %v800_v45 }
 0x689   :  { %v5351_v46 = vpop.eup %5350 }
 0x68a   :  { %v815_v55 = vsub.f32 1.0, %v5351_v46  ;;  %v821_v58 = vmul.f32 %v5351_v46, %v5935_v50 }
 0x6e2   :  { %v806_v47 = vpop.permute.xlu1 %805 }
 0x6e3   :  { %v808_v48 = vmul.f32 %v5351_v46, %v806_v47 }
 0x6e5   :  { %810 = vrot.lane.b32.xlu0 %v808_v48, %s5676_s15 }
 0x757   :  { %v811_v49 = vpop.permute.xlu0 %810 }
 0x758   :  { %v813_v51 = vadd.f32 %v811_v49, %v723_v38 }
 0x75a   :  { %5352 = vtanh.f32 %v813_v51 }
 0x764   :  { %v5353_v52 = vpop.eup %5352 }
 0x765   :  { %817 = vrot.lane.b32.xlu1 %v5353_v52, %s5677_s5 }
 0x769   :  { %977 = vrot.lane.b32.xlu1 %v975_v54, %s5676_s15 }
 0x7d7   :  { %v818_v57 = vpop.permute.xlu1 %817 }
 0x7d8   :  { %v820_v59 = vmul.f32 %v818_v57, %v815_v55 }
 0x7da   :  { %v6020_v60 = vadd.f32 %v821_v58, %v820_v59 }
 0x7db   :  { %v978_v8 = vpop.permute.xlu1 %977 }
 0x7dc   :  { %824 = vrot.lane.b32.xlu0 %v6020_v60, %s5677_s5 }
 0x84e   :  { %v825_v61 = vpop.permute.xlu0 %824 }
 0x84f   :  { %4672 = vmatmul.mubr.msk.f32.vlgmr.msra.gmra.mrb[6].mxu1 %vm232_vm3, %v825_v61 }
 0x850   :  { %5117 = vmatpush3.bf16.msra.mxu1 %v5962_v15  ;;  %4693 = vmatprep.mubr.msk.f32.mxu1 %vm5674_vm0, %v5675_v2 }
 0x851   :  { %5118 = vmatprep.subr.bf16.mxu1 %v5673_v1 }
 0x854   :  { %5120 = vmatpush3.bf16.msra.mxu1 %v5965_v17 }
 0x855   :  { %5124 = vmatprep.subr.bf16.mxu1 %v5673_v1 }
 0x922   :  { %v894_v50 = vpop.f32.mrb[6].mxu1 }
 0x923   :  { %v895_v62 = vadd.f32 %v5946_v56, %v894_v50  ;;  %v4673_v63 = vpop.f32.mrb[7].mxu1 }
 0x925   :  { %v968_v0 = vadd.f32 %v964_v36, %v895_v62 }
 0x927   :  { %v4302_v3 = vmul.f32 -1.442695, %v968_v0 }
 0x929   :  { %5354 = vpow2.f32 %v4302_v3 }
 0x933   :  { %v5355_v4 = vpop.eup %5354 }
 0x934   :  { %v972_v5 = vadd.f32 1.0, %v5355_v4 }
 0x936   :  { %5356 = vrcp.f32 %v972_v5 }
 0x940   :  { %v5357_v7 = vpop.eup %5356 }
 0x941   :  { %v980_v10 = vmul.f32 %v5357_v7, %v978_v8  ;;  %v987_v20 = vsub.f32 1.0, %v5357_v7  ;;  %v993_v23 = vmul.f32 %v5357_v7, %v5977_v25 }
 0x943   :  { %982 = vrot.lane.b32.xlu0 %v980_v10, %s5676_s15 }
 0x9b5   :  { %v983_v11 = vpop.permute.xlu0 %982 }
 0x9b6   :  { %v985_v14 = vadd.f32 %v983_v11, %v895_v62 }
 0x9b8   :  { %5358 = vtanh.f32 %v985_v14 }
 0x9c2   :  { %v5359_v18 = vpop.eup %5358 }
 0x9c3   :  { %989 = vrot.lane.b32.xlu1 %v5359_v18, %s5677_s5 }
 0x9c7   :  { %1105 = vrot.lane.b32.xlu1 %v5974_v19, %s5677_s5 }
 0xa35   :  { %v990_v22 = vpop.permute.xlu1 %989 }
 0xa36   :  { %v992_v24 = vmul.f32 %v990_v22, %v987_v20 }
 0xa38   :  { %v6037_v26 = vadd.f32 %v993_v23, %v992_v24 }
 0xa39   :  { %v1106_v27 = vpop.permute.xlu1 %1105 }
 0xa3a   :  { %996 = vrot.lane.b32.xlu0 %v6037_v26, %s5677_s5  ;;  %4703 = vmatmul.mubr.msk.f32.vlgmr.msra.gmra.mrb[10].mxu0 %vm154_vm2, %v1106_v27 }
 0xa3b   :  { %5132 = vmatpush3.bf16.msra.mxu0 %v5905_v39  ;;  %4724 = vmatprep.mubr.msk.f32.mxu0 %vm5674_vm0, %v5675_v2 }
 0xa3c   :  { %5133 = vmatprep.subr.bf16.mxu0 %v5673_v1 }
 0xa3f   :  { %5135 = vmatpush3.bf16.msra.mxu0 %v5918_v43 }
 0xa40   :  { %5142 = vmatprep.subr.bf16.mxu0 %v5673_v1 }
 0xaac   :  { %v997_v25 = vpop.permute.xlu0 %996 }
 0xaad   :  { %4694 = vmatmul.mubr.msk.f32.vlgmr.msra.gmra.mrb[8].mxu1 %vm232_vm3, %v997_v25 }
 0xaae   :  { %5126 = vmatpush3.bf16.msra.mxu1 %v5855_v9  ;;  %4713 = vmatprep.mubr.msk.f32.mxu1 %vm5674_vm0, %v5675_v2 }
 0xaaf   :  { %5127 = vmatprep.subr.bf16.mxu1 %v5673_v1 }
 0xab2   :  { %5129 = vmatpush3.bf16.msra.mxu1 %v5869_v13 }
 0xab3   :  { %5136 = vmatprep.subr.bf16.mxu1 %v5673_v1 }
 0xab5   :  { %4714 = vmatmul.mubr.msk.f32.vlgmr.msra.gmra.mrb[10].mxu1 %vm232_vm3, %v825_v61 }
 0xab6   :  { %5138 = vmatpush3.bf16.msra.mxu1 %v5897_v35  ;;  %4735 = vmatprep.mubr.msk.f32.mxu1 %vm5674_vm0, %v5675_v2 }
 0xab7   :  { %5139 = vmatprep.subr.bf16.mxu1 %v5673_v1 }
 0xaba   :  { %5141 = vmatpush3.bf16.msra.mxu1 %v5914_v42 }
 0xabb   :  { %5148 = vmatprep.subr.bf16.mxu1 %v5673_v1 }
 0xabd   :  { %4736 = vmatmul.mubr.msk.f32.vlgmr.msra.gmra.mrb[12].mxu1 %vm232_vm3, %v997_v25 }
 0xabe   :  { %5150 = vmatpush3.bf16.msra.mxu1 %v5847_v6  ;;  %4755 = vmatprep.mubr.msk.f32.mxu1 %vm5674_vm0, %v5675_v2 }
 0xabf   :  { %4753 = vmatprep.subr.mxu1 %v5675_v2 }
 0xac2   :  { %4754 = vmatpush3.msk.msra.mxu1 %vm158_vm1, %v5867_v12 }
 0xac3   :  { %5157 = vmatprep.subr.bf16.mxu1 %v5673_v1 }
 0xb0d   :  { %v1175_v28 = vpop.f32.mrb[10].mxu0 }
 0xb0e   :  { %v4704_v29 = vpop.f32.mrb[11].mxu0  ;;  %v1176_v40 = vadd.f32 %v5893_v21, %v1175_v28 }
 0xb80   :  { %v6070_v31 = vpop.f32.mrb[8].mxu1 }
 0xb81   :  { %v4695_v32 = vpop.f32.mrb[9].mxu1 }
 0xb88   :  { %v1245_v33 = vpop.f32.mrb[10].mxu1 }
 0xb89   :  { %v1256_v34 = vadd.f32 %v1245_v33, %v5886_v16  ;;  %v4715_v36 = vpop.f32.mrb[11].mxu1  ;;  %v1249_v41 = vadd.f32 %v1245_v33, %v1176_v40 }
 0xb8b   :  { %1258 = vrot.lane.b32.xlu0 %v1256_v34, %s5676_s15  ;;  %v4309_v44 = vmul.f32 -1.442695, %v1249_v41 }
 0xb8d   :  { %5360 = vpow2.f32 %v4309_v44 }
 0xb90   :  { %v1417_v37 = vpop.f32.mrb[12].mxu1 }
 0xb91   :  { %v4737_v38 = vpop.f32.mrb[13].mxu1  ;;  %v1428_v55 = vadd.f32 %v1417_v37, %v5939_v53 }
 0xb97   :  { %v5361_v45 = vpop.eup %5360 }
 0xb98   :  { %v1253_v46 = vadd.f32 1.0, %v5361_v45 }
 0xb9a   :  { %5362 = vrcp.f32 %v1253_v46 }
 0xba4   :  { %v5363_v47 = vpop.eup %5362 }
 0xba5   :  { %v1268_v57 = vsub.f32 1.0, %v5363_v47  ;;  %v1274_v59 = vmul.f32 %v5363_v47, %v6020_v60 }
 0xbfd   :  { %v1259_v48 = vpop.permute.xlu0 %1258 }
 0xbfe   :  { %v1261_v49 = vmul.f32 %v5363_v47, %v1259_v48 }
 0xc00   :  { %1263 = vrot.lane.b32.xlu1 %v1261_v49, %s5676_s15 }
 0xc72   :  { %v1264_v51 = vpop.permute.xlu1 %1263 }
 0xc73   :  { %v1266_v52 = vadd.f32 %v1264_v51, %v1176_v40 }
 0xc75   :  { %5364 = vtanh.f32 %v1266_v52 }
 0xc7f   :  { %v5365_v54 = vpop.eup %5364 }
 0xc80   :  { %1270 = vrot.lane.b32.xlu0 %v5365_v54, %s5677_s5 }
 0xc84   :  { %1430 = vrot.lane.b32.xlu0 %v1428_v55, %s5676_s15 }
 0xcf2   :  { %v1271_v58 = vpop.permute.xlu0 %1270 }
 0xcf3   :  { %v1273_v61 = vmul.f32 %v1271_v58, %v1268_v57 }
 0xcf5   :  { %v6080_v50 = vadd.f32 %v1274_v59, %v1273_v61 }
 0xcf6   :  { %v1431_v10 = vpop.permute.xlu0 %1430 }
 0xcf7   :  { %1277 = vrot.lane.b32.xlu1 %v6080_v50, %s5677_s5 }
 0xd69   :  { %v1278_v62 = vpop.permute.xlu1 %1277 }
 0xd6a   :  { %4725 = vmatmul.mubr.msk.f32.vlgmr.msra.gmra.mrb[12].mxu0 %vm232_vm3, %v1278_v62 }
 0xd6b   :  { %5144 = vmatpush3.bf16.msra.mxu0 %v5962_v15  ;;  %4746 = vmatprep.mubr.msk.f32.mxu0 %vm5674_vm0, %v5675_v2 }
 0xd6c   :  { %5145 = vmatprep.subr.bf16.mxu0 %v5673_v1 }
 0xd6f   :  { %5147 = vmatpush3.bf16.msra.mxu0 %v5965_v17 }
 0xd70   :  { %5151 = vmatprep.subr.bf16.mxu0 %v5673_v1 }
 0xe3d   :  { %v1347_v60 = vpop.f32.mrb[12].mxu0 }
 0xe3e   :  { %v1348_v63 = vadd.f32 %v5946_v56, %v1347_v60  ;;  %v4726_v0 = vpop.f32.mrb[13].mxu0 }
 0xe40   :  { %v1421_v3 = vadd.f32 %v1417_v37, %v1348_v63 }
 0xe42   :  { %v4312_v4 = vmul.f32 -1.442695, %v1421_v3 }
 0xe44   :  { %5366 = vpow2.f32 %v4312_v4 }
 0xe4e   :  { %v5367_v5 = vpop.eup %5366 }
 0xe4f   :  { %v1425_v7 = vadd.f32 1.0, %v5367_v5 }
 0xe51   :  { %5368 = vrcp.f32 %v1425_v7 }
 0xe5b   :  { %v5369_v8 = vpop.eup %5368 }
 0xe5c   :  { %v1433_v11 = vmul.f32 %v5369_v8, %v1431_v10  ;;  %v1440_v22 = vsub.f32 1.0, %v5369_v8  ;;  %v1446_v24 = vmul.f32 %v5369_v8, %v6037_v26 }
 0xe5e   :  { %1435 = vrot.lane.b32.xlu1 %v1433_v11, %s5676_s15 }
 0xed0   :  { %v1436_v14 = vpop.permute.xlu1 %1435 }
 0xed1   :  { %v1438_v18 = vadd.f32 %v1436_v14, %v1348_v63 }
 0xed3   :  { %5370 = vtanh.f32 %v1438_v18 }
 0xedd   :  { %v5371_v20 = vpop.eup %5370 }
 0xede   :  { %1442 = vrot.lane.b32.xlu0 %v5371_v20, %s5677_s5 }
 0xee2   :  { %1558 = vrot.lane.b32.xlu0 %v5974_v19, %s5679_s7 }
 0xf50   :  { %v1443_v23 = vpop.permute.xlu0 %1442 }
 0xf51   :  { %v1445_v27 = vmul.f32 %v1443_v23, %v1440_v22 }
 0xf53   :  { %v6096_v25 = vadd.f32 %v1446_v24, %v1445_v27 }
 0xf54   :  { %v1559_v28 = vpop.permute.xlu0 %1558 }
 0xf55   :  { %1449 = vrot.lane.b32.xlu1 %v6096_v25, %s5677_s5  ;;  %4756 = vmatmul.mubr.msk.f32.vlgmr.msra.gmra.mrb[14].mxu1 %vm154_vm2, %v1559_v28 }
 0xf56   :  { %5159 = vmatpush3.bf16.msra.mxu1 %v5905_v39  ;;  %4777 = vmatprep.mubr.msk.f32.mxu1 %vm5674_vm0, %v5675_v2 }
 0xf57   :  { %5160 = vmatprep.subr.bf16.mxu1 %v5673_v1 }
 0xf5a   :  { %5162 = vmatpush3.bf16.msra.mxu1 %v5918_v43 }
 0xf5b   :  { %5169 = vmatprep.subr.bf16.mxu1 %v5673_v1 }
 0xfc7   :  { %v1450_v26 = vpop.permute.xlu1 %1449 }
 0xfc8   :  { %4747 = vmatmul.mubr.msk.f32.vlgmr.msra.gmra.mrb[14].mxu0 %vm232_vm3, %v1450_v26 }
 0xfc9   :  { %5153 = vmatpush3.bf16.msra.mxu0 %v5855_v9  ;;  %4766 = vmatprep.mubr.msk.f32.mxu0 %vm5674_vm0, %v5675_v2 }
 0xfca   :  { %5154 = vmatprep.subr.bf16.mxu0 %v5673_v1 }
 0xfcd   :  { %5156 = vmatpush3.bf16.msra.mxu0 %v5869_v13 }
 0xfce   :  { %5163 = vmatprep.subr.bf16.mxu0 %v5673_v1 }
 0xfd0   :  { %4767 = vmatmul.mubr.msk.f32.vlgmr.msra.gmra.mrb[16].mxu0 %vm232_vm3, %v1278_v62 }
 0xfd1   :  { %5165 = vmatpush3.bf16.msra.mxu0 %v5897_v35  ;;  %4788 = vmatprep.mubr.msk.f32.mxu0 %vm5674_vm0, %v5675_v2 }
 0xfd2   :  { %5166 = vmatprep.subr.bf16.mxu0 %v5673_v1 }
 0xfd5   :  { %5168 = vmatpush3.bf16.msra.mxu0 %v5914_v42 }
 0xfd6   :  { %5175 = vmatprep.subr.bf16.mxu0 %v5673_v1 }
 0xfd8   :  { %4789 = vmatmul.mubr.msk.f32.vlgmr.msra.gmra.mrb[18].mxu0 %vm232_vm3, %v1450_v26 }
 0xfd9   :  { %5177 = vmatpush3.bf16.msra.mxu0 %v5847_v6  ;;  %4808 = vmatprep.mubr.msk.f32.mxu0 %vm5674_vm0, %v5675_v2 }
 0xfda   :  { %4806 = vmatprep.subr.mxu0 %v5675_v2 }
 0xfdd   :  { %4807 = vmatpush3.msk.msra.mxu0 %vm158_vm1, %v5867_v12 }
 0xfde   :  { %5184 = vmatprep.subr.bf16.mxu0 %v5673_v1 }
0x1028   :  { %v1628_v29 = vpop.f32.mrb[14].mxu1 }
0x1029   :  { %v4757_v32 = vpop.f32.mrb[15].mxu1  ;;  %v1629_v44 = vadd.f32 %v5893_v21, %v1628_v29 }
0x109b   :  { %v6129_v33 = vpop.f32.mrb[14].mxu0 }
0x109c   :  { %v4748_v34 = vpop.f32.mrb[15].mxu0 }
0x10a3   :  { %v1698_v36 = vpop.f32.mrb[16].mxu0 }
0x10a4   :  { %v1709_v37 = vadd.f32 %v1698_v36, %v5886_v16  ;;  %v4768_v38 = vpop.f32.mrb[17].mxu0  ;;  %v1702_v45 = vadd.f32 %v1698_v36, %v1629_v44 }
0x10a6   :  { %1711 = vrot.lane.b32.xlu1 %v1709_v37, %s5676_s15  ;;  %v4319_v46 = vmul.f32 -1.442695, %v1702_v45 }
0x10a8   :  { %5372 = vpow2.f32 %v4319_v46 }
0x10ab   :  { %v1870_v40 = vpop.f32.mrb[18].mxu0 }
0x10ac   :  { %v4790_v41 = vpop.f32.mrb[19].mxu0  ;;  %v1881_v58 = vadd.f32 %v1870_v40, %v5939_v53 }
0x10b2   :  { %v5373_v47 = vpop.eup %5372 }
0x10b3   :  { %v1706_v48 = vadd.f32 1.0, %v5373_v47 }
0x10b5   :  { %5374 = vrcp.f32 %v1706_v48 }
0x10bf   :  { %v5375_v49 = vpop.eup %5374 }
0x10c0   :  { %v1721_v59 = vsub.f32 1.0, %v5375_v49  ;;  %v1727_v62 = vmul.f32 %v5375_v49, %v6080_v50 }
0x1118   :  { %v1712_v51 = vpop.permute.xlu1 %1711 }
0x1119   :  { %v1714_v52 = vmul.f32 %v5375_v49, %v1712_v51 }
0x111b   :  { %1716 = vrot.lane.b32.xlu0 %v1714_v52, %s5676_s15 }
0x118d   :  { %v1717_v54 = vpop.permute.xlu0 %1716 }
0x118e   :  { %v1719_v55 = vadd.f32 %v1717_v54, %v1629_v44 }
0x1190   :  { %5376 = vtanh.f32 %v1719_v55 }
0x119a   :  { %v5377_v57 = vpop.eup %5376 }
0x119b   :  { %1723 = vrot.lane.b32.xlu1 %v5377_v57, %s5677_s5 }
0x119f   :  { %1883 = vrot.lane.b32.xlu1 %v1881_v58, %s5676_s15 }
0x120d   :  { %v1724_v61 = vpop.permute.xlu1 %1723 }
0x120e   :  { %v1726_v60 = vmul.f32 %v1724_v61, %v1721_v59 }
0x1210   :  { %v6139_v63 = vadd.f32 %v1727_v62, %v1726_v60 }
0x1211   :  { %v1884_v14 = vpop.permute.xlu1 %1883 }
0x1212   :  { %1730 = vrot.lane.b32.xlu0 %v6139_v63, %s5677_s5 }
0x1284   :  { %v1731_v0 = vpop.permute.xlu0 %1730 }
0x1285   :  { %4778 = vmatmul.mubr.msk.f32.vlgmr.msra.gmra.mrb[16].mxu1 %vm232_vm3, %v1731_v0 }
0x1286   :  { %5171 = vmatpush3.bf16.msra.mxu1 %v5962_v15  ;;  %4799 = vmatprep.mubr.msk.f32.mxu1 %vm5674_vm0, %v5675_v2 }
0x1287   :  { %5172 = vmatprep.subr.bf16.mxu1 %v5673_v1 }
0x128a   :  { %5174 = vmatpush3.bf16.msra.mxu1 %v5965_v17 }
0x128b   :  { %5178 = vmatprep.subr.bf16.mxu1 %v5673_v1 }
0x1358   :  { %v1800_v50 = vpop.f32.mrb[16].mxu1 }
0x1359   :  { %v1801_v3 = vadd.f32 %v5946_v56, %v1800_v50  ;;  %v4779_v4 = vpop.f32.mrb[17].mxu1 }
0x135b   :  { %v1874_v5 = vadd.f32 %v1870_v40, %v1801_v3 }
0x135d   :  { %v4322_v7 = vmul.f32 -1.442695, %v1874_v5 }
0x135f   :  { %5378 = vpow2.f32 %v4322_v7 }
0x1369   :  { %v5379_v8 = vpop.eup %5378 }
0x136a   :  { %v1878_v10 = vadd.f32 1.0, %v5379_v8 }
0x136c   :  { %5380 = vrcp.f32 %v1878_v10 }
0x1376   :  { %v5381_v11 = vpop.eup %5380 }
0x1377   :  { %v1886_v18 = vmul.f32 %v5381_v11, %v1884_v14  ;;  %v1893_v24 = vsub.f32 1.0, %v5381_v11  ;;  %v1899_v28 = vmul.f32 %v5381_v11, %v6096_v25 }
0x1379   :  { %1888 = vrot.lane.b32.xlu0 %v1886_v18, %s5676_s15 }
0x13eb   :  { %v1889_v20 = vpop.permute.xlu0 %1888 }
0x13ec   :  { %v1891_v22 = vadd.f32 %v1889_v20, %v1801_v3 }
0x13ee   :  { %5382 = vtanh.f32 %v1891_v22 }
0x13f8   :  { %v5383_v23 = vpop.eup %5382 }
0x13f9   :  { %1895 = vrot.lane.b32.xlu1 %v5383_v23, %s5677_s5 }
0x13fd   :  { %2011 = vrot.lane.b32.xlu1 %v5974_v19, %s5676_s15 }
0x146b   :  { %v1896_v27 = vpop.permute.xlu1 %1895 }
0x146c   :  { %v1898_v26 = vmul.f32 %v1896_v27, %v1893_v24 }
0x146e   :  { %v6156_v29 = vadd.f32 %v1899_v28, %v1898_v26 }
0x146f   :  { %v2012_v32 = vpop.permute.xlu1 %2011 }
0x1470   :  { %1902 = vrot.lane.b32.xlu0 %v6156_v29, %s5677_s5  ;;  %4809 = vmatmul.mubr.msk.f32.vlgmr.msra.gmra.mrb[20].mxu0 %vm154_vm2, %v2012_v32 }
0x1471   :  { %5186 = vmatpush3.bf16.msra.mxu0 %v5905_v39  ;;  %4830 = vmatprep.mubr.msk.f32.mxu0 %vm5674_vm0, %v5675_v2 }
0x1472   :  { %5187 = vmatprep.subr.bf16.mxu0 %v5673_v1 }
0x1475   :  { %5189 = vmatpush3.bf16.msra.mxu0 %v5918_v43 }
0x1476   :  { %5196 = vmatprep.subr.bf16.mxu0 %v5673_v1 }
0x14e2   :  { %v1903_v25 = vpop.permute.xlu0 %1902 }
0x14e3   :  { %4800 = vmatmul.mubr.msk.f32.vlgmr.msra.gmra.mrb[18].mxu1 %vm232_vm3, %v1903_v25 }
0x14e4   :  { %5180 = vmatpush3.bf16.msra.mxu1 %v5855_v9  ;;  %4819 = vmatprep.mubr.msk.f32.mxu1 %vm5674_vm0, %v5675_v2 }
0x14e5   :  { %5181 = vmatprep.subr.bf16.mxu1 %v5673_v1 }
0x14e8   :  { %5183 = vmatpush3.bf16.msra.mxu1 %v5869_v13 }
0x14e9   :  { %5190 = vmatprep.subr.bf16.mxu1 %v5673_v1 }
0x14eb   :  { %4820 = vmatmul.mubr.msk.f32.vlgmr.msra.gmra.mrb[20].mxu1 %vm232_vm3, %v1731_v0 }
0x14ec   :  { %5192 = vmatpush3.bf16.msra.mxu1 %v5897_v35  ;;  %4841 = vmatprep.mubr.msk.f32.mxu1 %vm5674_vm0, %v5675_v2 }
0x14ed   :  { %5193 = vmatprep.subr.bf16.mxu1 %v5673_v1 }
0x14f0   :  { %5195 = vmatpush3.bf16.msra.mxu1 %v5914_v42 }
0x14f1   :  { %5202 = vmatprep.subr.bf16.mxu1 %v5673_v1 }
0x14f3   :  { %4842 = vmatmul.mubr.msk.f32.vlgmr.msra.gmra.mrb[22].mxu1 %vm232_vm3, %v1903_v25 }
0x14f4   :  { %5204 = vmatpush3.bf16.msra.mxu1 %v5847_v6  ;;  %4861 = vmatprep.mubr.msk.f32.mxu1 %vm5674_vm0, %v5675_v2 }
0x14f5   :  { %4859 = vmatprep.subr.mxu1 %v5675_v2 }
0x14f8   :  { %4860 = vmatpush3.msk.msra.mxu1 %vm158_vm1, %v5867_v12 }
0x14f9   :  { %5211 = vmatprep.subr.bf16.mxu1 %v5673_v1 }
0x1543   :  { %v2081_v34 = vpop.f32.mrb[20].mxu0 }
0x1544   :  { %v4810_v36 = vpop.f32.mrb[21].mxu0  ;;  %v2082_v47 = vadd.f32 %v5893_v21, %v2081_v34 }
0x15b6   :  { %v6189_v37 = vpop.f32.mrb[18].mxu1 }
0x15b7   :  { %v4801_v38 = vpop.f32.mrb[19].mxu1 }
0x15b8   :  { %v6245_v38 = vld [vmem:[#allocation3 + $0x10] sm:$0x1] }
0x15be   :  { %v2151_v40 = vpop.f32.mrb[20].mxu1 }
0x15bf   :  { %v2162_v41 = vadd.f32 %v2151_v40, %v5886_v16  ;;  %v4821_v44 = vpop.f32.mrb[21].mxu1  ;;  %v2155_v48 = vadd.f32 %v2151_v40, %v2082_v47 }
0x15c1   :  { %2164 = vrot.lane.b32.xlu0 %v2162_v41, %s5676_s15  ;;  %v4329_v49 = vmul.f32 -1.442695, %v2155_v48 }
0x15c3   :  { %5384 = vpow2.f32 %v4329_v49 }
0x15c6   :  { %v2323_v45 = vpop.f32.mrb[22].mxu1 }
0x15c7   :  { %v4843_v46 = vpop.f32.mrb[23].mxu1  ;;  %v2334_v61 = vadd.f32 %v2323_v45, %v5939_v53 }
0x15cd   :  { %v5385_v12 = vpop.eup %5384 }
0x15ce   :  { %v2159_v51 = vadd.f32 1.0, %v5385_v12 }
0x15d0   :  { %5386 = vrcp.f32 %v2159_v51 }
0x15da   :  { %v5387_v52 = vpop.eup %5386 }
0x15db   :  { %v2174_v62 = vsub.f32 1.0, %v5387_v52  ;;  %v2180_v0 = vmul.f32 %v5387_v52, %v6139_v63 }
0x1633   :  { %v2165_v54 = vpop.permute.xlu0 %2164 }
0x1634   :  { %v2167_v55 = vmul.f32 %v5387_v52, %v2165_v54 }
0x1636   :  { %2169 = vrot.lane.b32.xlu1 %v2167_v55, %s5676_s15 }
0x16a8   :  { %v2170_v57 = vpop.permute.xlu1 %2169 }
0x16a9   :  { %v2172_v58 = vadd.f32 %v2170_v57, %v2082_v47 }
0x16ab   :  { %5388 = vtanh.f32 %v2172_v58 }
0x16b5   :  { %v5389_v59 = vpop.eup %5388 }
0x16b6   :  { %2176 = vrot.lane.b32.xlu0 %v5389_v59, %s5677_s5 }
0x16ba   :  { %2336 = vrot.lane.b32.xlu0 %v2334_v61, %s5676_s15 }
0x1728   :  { %v2177_v60 = vpop.permute.xlu0 %2176 }
0x1729   :  { %v2179_v50 = vmul.f32 %v2177_v60, %v2174_v62 }
0x172b   :  { %v6199_v3 = vadd.f32 %v2180_v0, %v2179_v50 }
0x172c   :  { %v2337_v20 = vpop.permute.xlu0 %2336 }
0x172d   :  { %2183 = vrot.lane.b32.xlu1 %v6199_v3, %s5677_s5 }
0x179f   :  { %v2184_v4 = vpop.permute.xlu1 %2183 }
0x17a0   :  { %4831 = vmatmul.mubr.msk.f32.vlgmr.msra.gmra.mrb[22].mxu0 %vm232_vm3, %v2184_v4 }
0x17a1   :  { %5198 = vmatpush3.bf16.msra.mxu0 %v5962_v15  ;;  %4852 = vmatprep.mubr.msk.f32.mxu0 %vm5674_vm0, %v5675_v2 }
0x17a2   :  { %5199 = vmatprep.subr.bf16.mxu0 %v5673_v1 }
0x17a5   :  { %5201 = vmatpush3.bf16.msra.mxu0 %v5965_v17 }
0x17a6   :  { %5205 = vmatprep.subr.bf16.mxu0 %v5673_v1 }
0x1873   :  { %v2253_v63 = vpop.f32.mrb[22].mxu0 }
0x1874   :  { %v2254_v5 = vadd.f32 %v5946_v56, %v2253_v63  ;;  %v4832_v7 = vpop.f32.mrb[23].mxu0 }
0x1876   :  { %v2327_v8 = vadd.f32 %v2323_v45, %v2254_v5 }
0x1878   :  { %v4332_v10 = vmul.f32 -1.442695, %v2327_v8 }
0x187a   :  { %5390 = vpow2.f32 %v4332_v10 }
0x1884   :  { %v5391_v11 = vpop.eup %5390 }
0x1885   :  { %v2331_v14 = vadd.f32 1.0, %v5391_v11 }
0x1887   :  { %5392 = vrcp.f32 %v2331_v14 }
0x1891   :  { %v5393_v18 = vpop.eup %5392 }
0x1892   :  { %v2339_v22 = vmul.f32 %v5393_v18, %v2337_v20  ;;  %v2346_v28 = vsub.f32 1.0, %v5393_v18  ;;  %v2352_v32 = vmul.f32 %v5393_v18, %v6156_v29 }
0x1894   :  { %2341 = vrot.lane.b32.xlu1 %v2339_v22, %s5676_s15 }
0x1906   :  { %v2342_v23 = vpop.permute.xlu1 %2341 }
0x1907   :  { %v2344_v24 = vadd.f32 %v2342_v23, %v2254_v5 }
0x1909   :  { %5394 = vtanh.f32 %v2344_v24 }
0x1913   :  { %v5395_v27 = vpop.eup %5394 }
0x1914   :  { %2348 = vrot.lane.b32.xlu0 %v5395_v27, %s5677_s5 }
0x1918   :  { %2464 = vrot.lane.b32.xlu0 %v5974_v19, %s5680_s8 }
0x1986   :  { %v2349_v26 = vpop.permute.xlu0 %2348 }
0x1987   :  { %v2351_v25 = vmul.f32 %v2349_v26, %v2346_v28 }
0x1989   :  { %v6215_v34 = vadd.f32 %v2352_v32, %v2351_v25 }
0x198a   :  { %v2465_v36 = vpop.permute.xlu0 %2464 }
0x198b   :  { %2355 = vrot.lane.b32.xlu1 %v6215_v34, %s5677_s5  ;;  %4862 = vmatmul.mubr.msk.f32.vlgmr.msra.gmra.mrb[24].mxu1 %vm154_vm2, %v2465_v36 }
0x198c   :  { %5213 = vmatpush3.bf16.msra.mxu1 %v5905_v39  ;;  %4883 = vmatprep.mubr.msk.f32.mxu1 %vm5674_vm0, %v5675_v2 }
0x198d   :  { %5214 = vmatprep.subr.bf16.mxu1 %v5673_v1 }
0x1990   :  { %5216 = vmatpush3.bf16.msra.mxu1 %v5918_v43 }
0x1991   :  { %5223 = vmatprep.subr.bf16.mxu1 %v5673_v1 }
0x19fd   :  { %v2356_v29 = vpop.permute.xlu1 %2355 }
0x19fe   :  { %4853 = vmatmul.mubr.msk.f32.vlgmr.msra.gmra.mrb[24].mxu0 %vm232_vm3, %v2356_v29 }
0x19ff   :  { %5207 = vmatpush3.bf16.msra.mxu0 %v5855_v9  ;;  %4872 = vmatprep.mubr.msk.f32.mxu0 %vm5674_vm0, %v5675_v2 }
0x1a00   :  { %5208 = vmatprep.subr.bf16.mxu0 %v5673_v1 }
0x1a03   :  { %5210 = vmatpush3.bf16.msra.mxu0 %v5869_v13 }
0x1a04   :  { %5217 = vmatprep.subr.bf16.mxu0 %v5673_v1 }
0x1a06   :  { %4873 = vmatmul.mubr.msk.f32.vlgmr.msra.gmra.mrb[26].mxu0 %vm232_vm3, %v2184_v4 }
0x1a07   :  { %5219 = vmatpush3.bf16.msra.mxu0 %v5897_v35  ;;  %4894 = vmatprep.mubr.msk.f32.mxu0 %vm5674_vm0, %v5675_v2 }
0x1a08   :  { %5220 = vmatprep.subr.bf16.mxu0 %v5673_v1 }
0x1a0b   :  { %5222 = vmatpush3.bf16.msra.mxu0 %v5914_v42 }
0x1a0c   :  { %5229 = vmatprep.subr.bf16.mxu0 %v5673_v1 }
0x1a0e   :  { %4895 = vmatmul.mubr.msk.f32.vlgmr.msra.gmra.mrb[28].mxu0 %vm232_vm3, %v2356_v29 }
0x1a0f   :  { %5231 = vmatpush3.bf16.msra.mxu0 %v5847_v6  ;;  %4914 = vmatprep.mubr.msk.f32.mxu0 %vm5674_vm0, %v5675_v2 }
0x1a10   :  { %4912 = vmatprep.subr.mxu0 %v5675_v2 }
0x1a13   :  { %4913 = vmatpush3.msk.msra.mxu0 %vm158_vm1, %v6245_v38 }
0x1a14   :  { %5238 = vmatprep.subr.bf16.mxu0 %v5673_v1 }
0x1a5e   :  { %v2534_v40 = vpop.f32.mrb[24].mxu1 }
0x1a5f   :  { %v4863_v41 = vpop.f32.mrb[25].mxu1  ;;  %v2535_v51 = vadd.f32 %v5893_v21, %v2534_v40 }
0x1ad1   :  { %v6250_v44 = vpop.f32.mrb[24].mxu0 }
0x1ad2   :  { %v4854_v45 = vpop.f32.mrb[25].mxu0 }
0x1ad9   :  { %v2604_v46 = vpop.f32.mrb[26].mxu0 }
0x1ada   :  { %v2615_v47 = vadd.f32 %v2604_v46, %v5886_v16  ;;  %v4874_v48 = vpop.f32.mrb[27].mxu0  ;;  %v2608_v52 = vadd.f32 %v2604_v46, %v2535_v51 }
0x1adc   :  { %2617 = vrot.lane.b32.xlu1 %v2615_v47, %s5676_s15  ;;  %v4339_v54 = vmul.f32 -1.442695, %v2608_v52 }
0x1ade   :  { %5396 = vpow2.f32 %v4339_v54  ;;  %v6316_v54 = vld [vmem:[%s6518_s2] ss:$0 sm:$0xff] }
0x1ae1   :  { %v2776_v49 = vpop.f32.mrb[28].mxu0 }
0x1ae2   :  { %v4896_v12 = vpop.f32.mrb[29].mxu0  ;;  %v2787_v50 = vadd.f32 %v2776_v49, %v5939_v53 }
0x1ae8   :  { %v5397_v55 = vpop.eup %5396 }
0x1ae9   :  { %v2612_v57 = vadd.f32 1.0, %v5397_v55 }
0x1aeb   :  { %5398 = vrcp.f32 %v2612_v57 }
0x1af5   :  { %v5399_v58 = vpop.eup %5398 }
0x1af6   :  { %v2627_v21 = vsub.f32 1.0, %v5399_v58  ;;  %v2633_v63 = vmul.f32 %v5399_v58, %v6199_v3 }
0x1b4e   :  { %v2618_v59 = vpop.permute.xlu1 %2617 }
0x1b4f   :  { %v2620_v61 = vmul.f32 %v5399_v58, %v2618_v59 }
0x1b51   :  { %2622 = vrot.lane.b32.xlu0 %v2620_v61, %s5676_s15 }
0x1bc3   :  { %v2623_v62 = vpop.permute.xlu0 %2622 }
0x1bc4   :  { %v2625_v60 = vadd.f32 %v2623_v62, %v2535_v51 }
0x1bc6   :  { %5400 = vtanh.f32 %v2625_v60 }
0x1bd0   :  { %v5401_v0 = vpop.eup %5400 }
0x1bd1   :  { %2629 = vrot.lane.b32.xlu1 %v5401_v0, %s5677_s5 }
0x1bd5   :  { %2789 = vrot.lane.b32.xlu1 %v2787_v50, %s5676_s15 }
0x1c43   :  { %v2630_v4 = vpop.permute.xlu1 %2629 }
0x1c44   :  { %v2632_v5 = vmul.f32 %v2630_v4, %v2627_v21 }
0x1c46   :  { %v6260_v7 = vadd.f32 %v2633_v63, %v2632_v5 }
0x1c47   :  { %v2790_v24 = vpop.permute.xlu1 %2789 }
0x1c48   :  { %2636 = vrot.lane.b32.xlu0 %v6260_v7, %s5677_s5 }
0x1cba   :  { %v2637_v8 = vpop.permute.xlu0 %2636 }
0x1cbb   :  { %4884 = vmatmul.mubr.msk.f32.vlgmr.msra.gmra.mrb[26].mxu1 %vm232_vm3, %v2637_v8 }
0x1cbc   :  { %5225 = vmatpush3.bf16.msra.mxu1 %v5962_v15  ;;  %4905 = vmatprep.mubr.msk.f32.mxu1 %vm5674_vm0, %v5675_v2 }
0x1cbd   :  { %5226 = vmatprep.subr.bf16.mxu1 %v5673_v1 }
0x1cc0   :  { %5228 = vmatpush3.bf16.msra.mxu1 %v5965_v17 }
0x1cc1   :  { %5232 = vmatprep.subr.bf16.mxu1 %v5673_v1 }
0x1d8e   :  { %v2706_v3 = vpop.f32.mrb[26].mxu1 }
0x1d8f   :  { %v2707_v10 = vadd.f32 %v5946_v56, %v2706_v3  ;;  %v4885_v11 = vpop.f32.mrb[27].mxu1 }
0x1d91   :  { %v2780_v14 = vadd.f32 %v2776_v49, %v2707_v10 }
0x1d93   :  { %v4342_v18 = vmul.f32 -1.442695, %v2780_v14 }
0x1d95   :  { %5402 = vpow2.f32 %v4342_v18  ;;  %v6335_v18 = vld [vmem:[#allocation6] ss:$0 sm:$0xff] }
0x1d9f   :  { %v5403_v20 = vpop.eup %5402 }
0x1da0   :  { %v2784_v22 = vadd.f32 1.0, %v5403_v20 }
0x1da2   :  { %5404 = vrcp.f32 %v2784_v22 }
0x1dac   :  { %v5405_v23 = vpop.eup %5404 }
0x1dad   :  { %v2792_v27 = vmul.f32 %v5405_v23, %v2790_v24  ;;  %v2799_v56 = vsub.f32 1.0, %v5405_v23  ;;  %v2805_v36 = vmul.f32 %v5405_v23, %v6215_v34 }
0x1daf   :  { %2794 = vrot.lane.b32.xlu0 %v2792_v27, %s5676_s15 }
0x1e21   :  { %v2795_v28 = vpop.permute.xlu0 %2794 }
0x1e22   :  { %v2797_v26 = vadd.f32 %v2795_v28, %v2707_v10 }
0x1e24   :  { %5406 = vtanh.f32 %v2797_v26 }
0x1e2e   :  { %v5407_v32 = vpop.eup %5406 }
0x1e2f   :  { %2801 = vrot.lane.b32.xlu1 %v5407_v32, %s5677_s5 }
0x1e33   :  { %2917 = vrot.lane.b32.xlu1 %v5974_v19, %s5681_s3 }
0x1ea1   :  { %v2802_v25 = vpop.permute.xlu1 %2801 }
0x1ea2   :  { %v2804_v29 = vmul.f32 %v2802_v25, %v2799_v56 }
0x1ea4   :  { %v6276_v40 = vadd.f32 %v2805_v36, %v2804_v29 }
0x1ea5   :  { %v2918_v41 = vpop.permute.xlu1 %2917 }
0x1ea6   :  { %2808 = vrot.lane.b32.xlu0 %v6276_v40, %s5677_s5  ;;  %4915 = vmatmul.mubr.msk.f32.vlgmr.msra.gmra.mrb[30].mxu0 %vm154_vm2, %v2918_v41  ;;  %v4355_v41 = vld.sshfl [vmem:[%s6516_s0] sm:$0x33 pattern:$0x76325410] }
0x1ea7   :  { %5240 = vmatpush3.bf16.msra.mxu0 %v5905_v39  ;;  %4936 = vmatprep.mubr.msk.f32.mxu0 %vm5674_vm0, %v5675_v2 }
0x1ea8   :  { %5241 = vmatprep.subr.bf16.mxu0 %v5673_v1 }
0x1eab   :  { %5243 = vmatpush3.bf16.msra.mxu0 %v5918_v43 }
0x1eac   :  { %5250 = vmatprep.subr.bf16.mxu0 %v5673_v1 }
0x1f18   :  { %v2809_v19 = vpop.permute.xlu0 %2808 }
0x1f19   :  { %4906 = vmatmul.mubr.msk.f32.vlgmr.msra.gmra.mrb[28].mxu1 %vm232_vm3, %v2809_v19 }
0x1f1a   :  { %5234 = vmatpush3.bf16.msra.mxu1 %v5855_v9  ;;  %4925 = vmatprep.mubr.msk.f32.mxu1 %vm5674_vm0, %v5675_v2 }
0x1f1b   :  { %5235 = vmatprep.subr.bf16.mxu1 %v5673_v1 }
0x1f1e   :  { %5237 = vmatpush3.bf16.msra.mxu1 %v5869_v13 }
0x1f1f   :  { %5244 = vmatprep.subr.bf16.mxu1 %v5673_v1 }
0x1f21   :  { %4926 = vmatmul.mubr.msk.f32.vlgmr.msra.gmra.mrb[30].mxu1 %vm232_vm3, %v2637_v8 }
0x1f22   :  { %5246 = vmatpush3.bf16.msra.mxu1 %v5897_v35  ;;  %4947 = vmatprep.mubr.msk.f32.mxu1 %vm5674_vm0, %v5675_v2 }
0x1f23   :  { %5247 = vmatprep.subr.bf16.mxu1 %v5673_v1 }
0x1f26   :  { %5249 = vmatpush3.bf16.msra.mxu1 %v5914_v42 }
0x1f27   :  { %5256 = vmatprep.subr.bf16.mxu1 %v5673_v1 }
0x1f29   :  { %4948 = vmatmul.mubr.msk.f32.vlgmr.msra.gmra.mrb[32].mxu1 %vm232_vm3, %v2809_v19 }
0x1f2a   :  { %5258 = vmatpush3.bf16.msra.mxu1 %v5847_v6  ;;  %4967 = vmatprep.mubr.msk.f32.mxu1 %vm5674_vm0, %v5675_v2 }
0x1f2b   :  { %4965 = vmatprep.subr.mxu1 %v5675_v2 }
0x1f2e   :  { %4966 = vmatpush3.msk.msra.mxu1 %vm158_vm1, %v6245_v38 }
0x1f2f   :  { %5265 = vmatprep.subr.bf16.mxu1 %v5673_v1 }
0x1f79   :  { %v2987_v34 = vpop.f32.mrb[30].mxu0 }
0x1f7a   :  { %v4916_v45 = vpop.f32.mrb[31].mxu0  ;;  %v2988_v55 = vadd.f32 %v6316_v54, %v2987_v34 }
0x1fec   :  { %v6309_v46 = vpop.f32.mrb[28].mxu1 }
0x1fed   :  { %v4907_v47 = vpop.f32.mrb[29].mxu1 }
0x1ff4   :  { %v3057_v48 = vpop.f32.mrb[30].mxu1 }
0x1ff5   :  { %v3068_v49 = vadd.f32 %v3057_v48, %v5886_v16  ;;  %v4927_v12 = vpop.f32.mrb[31].mxu1  ;;  %v3061_v57 = vadd.f32 %v3057_v48, %v2988_v55 }
0x1ff7   :  { %3070 = vrot.lane.b32.xlu0 %v3068_v49, %s5676_s15  ;;  %v4349_v58 = vmul.f32 -1.442695, %v3061_v57  ;;  %v3370_v49 = vcombine.high %v4355_v41, %v4355_v41 }
0x1ff9   :  { %5408 = vpow2.f32 %v4349_v58 }
0x1ffc   :  { %v3229_v51 = vpop.f32.mrb[32].mxu1 }
0x1ffd   :  { %v4949_v52 = vpop.f32.mrb[33].mxu1  ;;  %v3240_v63 = vadd.f32 %v3229_v51, %v5939_v53 }
0x2003   :  { %v5409_v59 = vpop.eup %5408 }
0x2004   :  { %v3065_v61 = vadd.f32 1.0, %v5409_v59 }
0x2006   :  { %5410 = vrcp.f32 %v3065_v61 }
0x2010   :  { %v5411_v62 = vpop.eup %5410 }
0x2011   :  { %v3080_v5 = vsub.f32 1.0, %v5411_v62  ;;  %v3086_v3 = vmul.f32 %v5411_v62, %v6260_v7 }
0x2069   :  { %v3071_v60 = vpop.permute.xlu0 %3070 }
0x206a   :  { %v3073_v0 = vmul.f32 %v5411_v62, %v3071_v60 }
0x206c   :  { %3075 = vrot.lane.b32.xlu1 %v3073_v0, %s5676_s15 }
0x20de   :  { %v3076_v50 = vpop.permute.xlu1 %3075 }
0x20df   :  { %v3078_v21 = vadd.f32 %v3076_v50, %v2988_v55 }
0x20e1   :  { %5412 = vtanh.f32 %v3078_v21 }
0x20eb   :  { %v5413_v4 = vpop.eup %5412 }
0x20ec   :  { %3082 = vrot.lane.b32.xlu0 %v5413_v4, %s5677_s5 }
0x20f0   :  { %3242 = vrot.lane.b32.xlu0 %v3240_v63, %s5676_s15 }
0x215e   :  { %v3083_v8 = vpop.permute.xlu0 %3082 }
0x215f   :  { %v3085_v10 = vmul.f32 %v3083_v8, %v3080_v5 }
0x2161   :  { %v6324_v11 = vadd.f32 %v3086_v3, %v3085_v10 }
0x2162   :  { %v3243_v32 = vpop.permute.xlu0 %3242 }
0x2163   :  { %3089 = vrot.lane.b32.xlu1 %v6324_v11, %s5677_s5 }
0x21d5   :  { %v3090_v14 = vpop.permute.xlu1 %3089 }
0x21d6   :  { %4937 = vmatmul.mubr.msk.f32.vlgmr.msra.gmra.mrb[32].mxu0 %vm232_vm3, %v3090_v14 }
0x21d7   :  { %5252 = vmatpush3.bf16.msra.mxu0 %v5962_v15  ;;  %4958 = vmatprep.mubr.msk.f32.mxu0 %vm5674_vm0, %v5675_v2 }
0x21d8   :  { %5253 = vmatprep.subr.bf16.mxu0 %v5673_v1 }
0x21db   :  { %5255 = vmatpush3.bf16.msra.mxu0 %v5965_v17 }
0x21dc   :  { %5259 = vmatprep.subr.bf16.mxu0 %v5673_v1 }
0x22a9   :  { %v3159_v7 = vpop.f32.mrb[32].mxu0 }
0x22aa   :  { %v3160_v20 = vadd.f32 %v6335_v18, %v3159_v7  ;;  %v4938_v22 = vpop.f32.mrb[33].mxu0 }
0x22ac   :  { %v3233_v23 = vadd.f32 %v3229_v51, %v3160_v20 }
0x22ae   :  { %v4352_v24 = vmul.f32 -1.442695, %v3233_v23 }
0x22b0   :  { %5414 = vpow2.f32 %v4352_v24 }
0x22ba   :  { %v5415_v27 = vpop.eup %5414 }
0x22bb   :  { %v3237_v28 = vadd.f32 1.0, %v5415_v27 }
0x22bd   :  { %5416 = vrcp.f32 %v3237_v28 }
0x22c7   :  { %v5417_v26 = vpop.eup %5416 }
0x22c8   :  { %v3245_v56 = vmul.f32 %v5417_v26, %v3243_v32  ;;  %v3252_v19 = vsub.f32 1.0, %v5417_v26  ;;  %v3258_v45 = vmul.f32 %v5417_v26, %v6276_v40 }
0x22ca   :  { %3247 = vrot.lane.b32.xlu1 %v3245_v56, %s5676_s15 }
0x233c   :  { %v3248_v25 = vpop.permute.xlu1 %3247 }
0x233d   :  { %v3250_v36 = vadd.f32 %v3248_v25, %v3160_v20 }
0x233f   :  { %5418 = vtanh.f32 %v3250_v36 }
0x2349   :  { %v5419_v29 = vpop.eup %5418 }
0x234a   :  { %3254 = vrot.lane.b32.xlu0 %v5419_v29, %s5677_s5 }
0x234e   :  { %3371 = vrot.lane.b32.xlu0 %v4355_v41, %s5682_s20 }
0x23bc   :  { %v3255_v34 = vpop.permute.xlu0 %3254 }
0x23bd   :  { %v3257_v47 = vmul.f32 %v3255_v34, %v3252_v19 }
0x23bf   :  { %v6344_v48 = vadd.f32 %v3258_v45, %v3257_v47 }
0x23c0   :  { %v3372_v51 = vpop.permute.xlu0 %3371 }
0x23c1   :  { %3261 = vrot.lane.b32.xlu1 %v6344_v48, %s5677_s5 }
0x23c5   :  { %3373 = vrot.lane.b32.xlu1 %v3370_v49, %s5682_s20 }
0x2433   :  { %v3262_v12 = vpop.permute.xlu1 %3261 }
0x2434   :  { %4959 = vmatmul.mubr.msk.f32.vlgmr.msra.gmra.mrb[34].mxu0 %vm232_vm3, %v3262_v12 }
0x2435   :  { %5261 = vmatpush3.bf16.msra.mxu0 %v5855_v9  ;;  %4978 = vmatprep.mubr.msk.f32.mxu0 %vm5674_vm0, %v5675_v2 }
0x2436   :  { %5262 = vmatprep.subr.bf16.mxu0 %v5673_v1 }
0x2437   :  { %v3374_v40 = vpop.permute.xlu1 %3373 }
0x2438   :  { %v3376_v52 = vsel %vm3375_vm4, %v3372_v51, %v3374_v40  ;;  %v3819_v51 = vld [vmem:[%s6516_s0 + $0x2] sm:$0x3]  ;;  %s5683_s0 = smov 1  }
0x2439   :  { %5264 = vmatpush3.bf16.msra.mxu0 %v5869_v13  ;;  %4968 = vmatmul.mubr.msk.f32.vlgmr.msra.gmra.mrb[34].mxu1 %vm154_vm2, %v3376_v52 }
0x243a   :  { %5271 = vmatprep.subr.bf16.mxu0 %v5673_v1  ;;  %5267 = vmatpush3.bf16.msra.mxu1 %v5905_v39 }
0x243b   :  { %5268 = vmatprep.subr.bf16.mxu1 %v5673_v1  ;;  %4989 = vmatprep.mubr.msk.f32.mxu1 %vm5674_vm0, %v5675_v2 }
0x243c   :  { %4979 = vmatmul.mubr.msk.f32.vlgmr.msra.gmra.mrb[36].mxu0 %vm232_vm3, %v3090_v14 }
0x243d   :  { %5273 = vmatpush3.bf16.msra.mxu0 %v5897_v35  ;;  %5000 = vmatprep.mubr.msk.f32.mxu0 %vm5674_vm0, %v5675_v2 }
0x243e   :  { %5274 = vmatprep.subr.bf16.mxu0 %v5673_v1  ;;  %5270 = vmatpush3.bf16.msra.mxu1 %v5918_v43 }
0x243f   :  { %5277 = vmatprep.subr.bf16.mxu1 %v5673_v1 }
0x2441   :  { %5276 = vmatpush3.bf16.msra.mxu0 %v5914_v42 }
0x2442   :  { %5283 = vmatprep.subr.bf16.mxu0 %v5673_v1 }
0x2444   :  { %5001 = vmatmul.mubr.msk.f32.vlgmr.msra.gmra.mrb[38].mxu0 %vm232_vm3, %v3262_v12 }
0x2445   :  { %5285 = vmatpush3.bf16.msra.mxu0 %v5847_v6  ;;  %5020 = vmatprep.mubr.msk.f32.mxu0 %vm5674_vm0, %v5675_v2 }
0x2446   :  { %5018 = vmatprep.subr.mxu0 %v5675_v2 }
0x2449   :  { %5019 = vmatpush3.msk.msra.mxu0 %vm158_vm1, %v6245_v38 }
0x244a   :  { %5292 = vmatprep.subr.bf16.mxu0 %v5673_v1  ;;  %5021 = vmatmul.mubr.msk.f32.vlgmr.msra.gmra.mrb[40].mxu0 %vm154_vm2, %v3819_v51 }
0x244b   :  { %5294 = vmatpush3.bf16.msra.mxu0 %v5905_v39  ;;  %5042 = vmatprep.mubr.msk.f32.mxu0 %vm5674_vm0, %v5675_v2 }
0x244c   :  { %5295 = vmatprep.subr.bf16.mxu0 %v5673_v1 }
0x244f   :  { %5297 = vmatpush3.bf16.msra.mxu0 %v5918_v43 }
0x2450   :  { %5304 = vmatprep.subr.bf16.mxu0 %v5673_v1 }
0x2507   :  { %v6377_v55 = vpop.f32.mrb[34].mxu0 }
0x2508   :  { %v4960_v57 = vpop.f32.mrb[35].mxu0 }
0x250c   :  { %v3445_v58 = vpop.f32.mrb[34].mxu1 }
0x250d   :  { %v4969_v59 = vpop.f32.mrb[35].mxu1  ;;  %v3446_v50 = vadd.f32 %v6316_v54, %v3445_v58 }
0x250f   :  { %v3515_v61 = vpop.f32.mrb[36].mxu0 }
0x2510   :  { %v3526_v62 = vadd.f32 %v3515_v61, %v5886_v16  ;;  %v4980_v60 = vpop.f32.mrb[37].mxu0  ;;  %v3519_v21 = vadd.f32 %v3515_v61, %v3446_v50 }
0x2512   :  { %3528 = vrot.lane.b32.xlu0 %v3526_v62, %s5676_s15  ;;  %v4359_v4 = vmul.f32 -1.442695, %v3519_v21 }
0x2514   :  { %5420 = vpow2.f32 %v4359_v4 }
0x2517   :  { %v3687_v6 = vpop.f32.mrb[38].mxu0 }
0x2518   :  { %v5002_v0 = vpop.f32.mrb[39].mxu0  ;;  %v3698_v20 = vadd.f32 %v3687_v6, %v5939_v53 }
0x251e   :  { %v5421_v38 = vpop.eup %5420 }
0x251f   :  { %v3523_v63 = vadd.f32 1.0, %v5421_v38 }
0x2521   :  { %5422 = vrcp.f32 %v3523_v63 }
0x252b   :  { %v5423_v5 = vpop.eup %5422 }
0x252c   :  { %v3538_v22 = vsub.f32 1.0, %v5423_v5  ;;  %v3544_v24 = vmul.f32 %v5423_v5, %v6324_v11 }
0x2584   :  { %v3529_v8 = vpop.permute.xlu0 %3528 }
0x2585   :  { %v3531_v3 = vmul.f32 %v5423_v5, %v3529_v8 }
0x2587   :  { %3533 = vrot.lane.b32.xlu1 %v3531_v3, %s5676_s15 }
0x25f9   :  { %v3534_v10 = vpop.permute.xlu1 %3533 }
0x25fa   :  { %v3536_v14 = vadd.f32 %v3534_v10, %v3446_v50 }
0x25fc   :  { %5424 = vtanh.f32 %v3536_v14 }
0x2606   :  { %v5425_v7 = vpop.eup %5424 }
0x2607   :  { %3540 = vrot.lane.b32.xlu0 %v5425_v7, %s5677_s5 }
0x260b   :  { %3700 = vrot.lane.b32.xlu0 %v3698_v20, %s5676_s15 }
0x2679   :  { %v3541_v23 = vpop.permute.xlu0 %3540 }
0x267a   :  { %v3543_v27 = vmul.f32 %v3541_v23, %v3538_v22 }
0x267c   :  { %v6387_v28 = vadd.f32 %v3544_v24, %v3543_v27 }
0x267d   :  { %v3701_v34 = vpop.permute.xlu0 %3700 }
0x267e   :  { %3547 = vrot.lane.b32.xlu1 %v6387_v28, %s5677_s5 }
0x26f0   :  { %v3548_v26 = vpop.permute.xlu1 %3547 }
0x26f1   :  { %4990 = vmatmul.mubr.msk.f32.vlgmr.msra.gmra.mrb[36].mxu1 %vm232_vm3, %v3548_v26 }
0x26f2   :  { %5279 = vmatpush3.bf16.msra.mxu1 %v5962_v15  ;;  %5011 = vmatprep.mubr.msk.f32.mxu1 %vm5674_vm0, %v5675_v2 }
0x26f3   :  { %5280 = vmatprep.subr.bf16.mxu1 %v5673_v1 }
0x26f6   :  { %5282 = vmatpush3.bf16.msra.mxu1 %v5965_v17 }
0x26f7   :  { %5286 = vmatprep.subr.bf16.mxu1 %v5673_v1 }
0x27c4   :  { %v3617_v11 = vpop.f32.mrb[36].mxu1 }
0x27c5   :  { %v3618_v32 = vadd.f32 %v6335_v18, %v3617_v11  ;;  %v4991_v56 = vpop.f32.mrb[37].mxu1 }
0x27c7   :  { %v3691_v25 = vadd.f32 %v3687_v6, %v3618_v32 }
0x27c9   :  { %v4362_v36 = vmul.f32 -1.442695, %v3691_v25 }
0x27cb   :  { %5426 = vpow2.f32 %v4362_v36 }
0x27d5   :  { %v5427_v29 = vpop.eup %5426 }
0x27d6   :  { %v3695_v41 = vadd.f32 1.0, %v5427_v29 }
0x27d8   :  { %5428 = vrcp.f32 %v3695_v41 }
0x27e2   :  { %v5429_v19 = vpop.eup %5428 }
0x27e3   :  { %v3703_v45 = vmul.f32 %v5429_v19, %v3701_v34  ;;  %v3710_v40 = vsub.f32 1.0, %v5429_v19  ;;  %v3716_v57 = vmul.f32 %v5429_v19, %v6344_v48 }
0x27e5   :  { %3705 = vrot.lane.b32.xlu1 %v3703_v45, %s5676_s15 }
0x2857   :  { %v3706_v47 = vpop.permute.xlu1 %3705 }
0x2858   :  { %v3708_v49 = vadd.f32 %v3706_v47, %v3618_v32 }
0x285a   :  { %5430 = vtanh.f32 %v3708_v49 }
0x2864   :  { %v5431_v12 = vpop.eup %5430 }
0x2865   :  { %3712 = vrot.lane.b32.xlu0 %v5431_v12, %s5677_s5 }
0x28d7   :  { %v3713_v52 = vpop.permute.xlu0 %3712 }
0x28d8   :  { %v3715_v58 = vmul.f32 %v3713_v52, %v3710_v40  ;;  %v6454_v40 = vld [vmem:[#allocation12] ss:$0 sm:$0xff] }
0x28da   :  { %v6410_v59 = vadd.f32 %v3716_v57, %v3715_v58 }
0x28dc   :  { %3719 = vrot.lane.b32.xlu1 %v6410_v59, %s5677_s5 }
0x294e   :  { %v3720_v61 = vpop.permute.xlu1 %3719 }
0x294f   :  { %5012 = vmatmul.mubr.msk.f32.vlgmr.msra.gmra.mrb[38].mxu1 %vm232_vm3, %v3720_v61 }
0x2950   :  { %5288 = vmatpush3.bf16.msra.mxu1 %v5855_v9  ;;  %5031 = vmatprep.mubr.msk.f32.mxu1 %vm5674_vm0, %v5675_v2  ;;  %v3889_v9 = vpop.f32.mrb[40].mxu0 }
0x2951   :  { %5289 = vmatprep.subr.bf16.mxu1 %v5673_v1  ;;  %v5022_v39 = vpop.f32.mrb[41].mxu0  ;;  %v3890_v0 = vadd.f32 %v6316_v54, %v3889_v9 }
0x2954   :  { %5291 = vmatpush3.bf16.msra.mxu1 %v5869_v13 }
0x2955   :  { %5298 = vmatprep.subr.bf16.mxu1 %v5673_v1 }
0x2957   :  { %5032 = vmatmul.mubr.msk.f32.vlgmr.msra.gmra.mrb[40].mxu1 %vm232_vm3, %v3548_v26 }
0x2958   :  { %5300 = vmatpush3.bf16.msra.mxu1 %v5897_v35  ;;  %5053 = vmatprep.mubr.msk.f32.mxu1 %vm5674_vm0, %v5675_v2 }
0x2959   :  { %5301 = vmatprep.subr.bf16.mxu1 %v5673_v1 }
0x295c   :  { %5303 = vmatpush3.bf16.msra.mxu1 %v5914_v42 }
0x295f   :  { %5054 = vmatmul.mubr.msk.f32.vlgmr.msra.gmra.mrb[42].mxu1 %vm232_vm3, %v3720_v61 }
0x2a22   :  { %v6430_v43 = vpop.f32.mrb[38].mxu1 }
0x2a23   :  { %v5013_v13 = vpop.f32.mrb[39].mxu1 }
0x2a2a   :  { %v3959_v48 = vpop.f32.mrb[40].mxu1 }
0x2a2b   :  { %v3970_v62 = vadd.f32 %v3959_v48, %v5886_v16  ;;  %v5033_v60 = vpop.f32.mrb[41].mxu1  ;;  %v3963_v50 = vadd.f32 %v3959_v48, %v3890_v0 }
0x2a2d   :  { %3972 = vrot.lane.b32.xlu0 %v3970_v62, %s5676_s15  ;;  %v4368_v21 = vmul.f32 -1.442695, %v3963_v50 }
0x2a2f   :  { %5432 = vpow2.f32 %v4368_v21 }
0x2a32   :  { %v4131_v35 = vpop.f32.mrb[42].mxu1 }
0x2a33   :  { %v5055_v6 = vpop.f32.mrb[43].mxu1  ;;  %v4142_v10 = vadd.f32 %v4131_v35, %v5939_v53 }
0x2a39   :  { %v5433_v42 = vpop.eup %5432 }
0x2a3a   :  { %v3967_v4 = vadd.f32 1.0, %v5433_v42 }
0x2a3c   :  { %5434 = vrcp.f32 %v3967_v4 }
0x2a46   :  { %v5435_v38 = vpop.eup %5434 }
0x2a47   :  { %v3982_v54 = vsub.f32 1.0, %v5435_v38  ;;  %v3988_v7 = vmul.f32 %v5435_v38, %v6387_v28 }
0x2a9f   :  { %v3973_v63 = vpop.permute.xlu0 %3972 }
0x2aa0   :  { %v3975_v5 = vmul.f32 %v5435_v38, %v3973_v63 }
0x2aa2   :  { %3977 = vrot.lane.b32.xlu1 %v3975_v5, %s5676_s15 }
0x2b14   :  { %v3978_v8 = vpop.permute.xlu1 %3977 }
0x2b15   :  { %v3980_v16 = vadd.f32 %v3978_v8, %v3890_v0 }
0x2b17   :  { %5436 = vtanh.f32 %v3980_v16 }
0x2b21   :  { %v5437_v3 = vpop.eup %5436 }
0x2b22   :  { %3984 = vrot.lane.b32.xlu0 %v5437_v3, %s5677_s5 }
0x2b26   :  { %4144 = vrot.lane.b32.xlu0 %v4142_v10, %s5676_s15 }
0x2b94   :  { %v3985_v14 = vpop.permute.xlu0 %3984 }
0x2b95   :  { %v3987_v20 = vmul.f32 %v3985_v14, %v3982_v54 }
0x2b97   :  { %v3989_v22 = vadd.f32 %v3988_v7, %v3987_v20  ;;  %v6468_v20 = vld [vmem:[#allocation2] ss:$0 sm:$0xff] }
0x2b98   :  { %v4145_v25 = vpop.permute.xlu0 %4144 }
0x2b99   :  { %3991 = vrot.lane.b32.xlu1 %v3989_v22, %s5677_s5 }
0x2c0b   :  { %v3992_v23 = vpop.permute.xlu1 %3991 }
0x2c0c   :  { %5043 = vmatmul.mubr.msk.f32.vlgmr.msra.gmra.mrb[42].mxu0 %vm232_vm3, %v3992_v23 }
0x2c0d   :  { %5306 = vmatpush3.bf16.msra.mxu0 %v5962_v15  ;;  %5064 = vmatprep.mubr.msk.f32.mxu0 %vm5674_vm0, %v5675_v2  ;;  %v6449_v2 = vld [vmem:[#allocation11] ss:$0 sm:$0xff] }
0x2c0e   :  { %5307 = vmatprep.subr.bf16.mxu0 %v5673_v1  ;;  %v605_v1 = vadd.f32 %v6449_v2, %v6010_v30  ;;  %v1067_v57 = vadd.f32 %v6449_v2, %v6070_v31  ;;  %v1520_v61 = vadd.f32 %v6449_v2, %v6129_v33 }
0x2c10   :  { %v608_v12 = vmul.f32 0.5, %v605_v1  ;;  %v1071_v58 = vmul.f32 0.044715, %v1067_v57  ;;  %v1524_v39 = vmul.f32 0.044715, %v1520_v61  ;;  %v1070_v5 = vmul.f32 0.5, %v1067_v57 }
0x2c11   :  { %5309 = vmatpush3.bf16.msra.mxu0 %v5965_v17  ;;  %v609_v17 = vmul.f32 0.044715, %v605_v1 }
0x2c12   :  { %v1072_v9 = vmul.f32 %v1071_v58, %v1067_v57 }
0x2c13   :  { %v610_v29 = vmul.f32 %v609_v17, %v605_v1  ;;  %v1973_v17 = vadd.f32 %v6449_v2, %v6189_v37  ;;  %v3790_v37 = vadd.f32 %v6449_v2, %v6430_v43 }
0x2c14   :  { %v1073_v0 = vmul.f32 %v1072_v9, %v1067_v57 }
0x2c15   :  { %v611_v41 = vmul.f32 %v610_v29, %v605_v1 }
0x2c16   :  { %v1074_v50 = vadd.f32 %v1073_v0, %v1067_v57  ;;  %v3794_v57 = vmul.f32 0.044715, %v3790_v37 }
0x2c17   :  { %v612_v19 = vadd.f32 %v611_v41, %v605_v1 }
0x2c18   :  { %v1075_v42 = vmul.f32 0.7978846, %v1074_v50  ;;  %v3795_v9 = vmul.f32 %v3794_v57, %v3790_v37 }
0x2c19   :  { %v613_v45 = vmul.f32 0.7978846, %v612_v19 }
0x2cdf   :  { %v4061_v53 = vpop.f32.mrb[42].mxu0 }
0x2ce0   :  { %v4062_v24 = vadd.f32 %v6335_v18, %v4061_v53  ;;  %v5044_v27 = vpop.f32.mrb[43].mxu0 }
0x2ce2   :  { %v4135_v28 = vadd.f32 %v4131_v35, %v4062_v24  ;;  %v1525_v35 = vmul.f32 %v1524_v39, %v1520_v61 }
0x2ce4   :  { %v4371_v26 = vmul.f32 -1.442695, %v4135_v28  ;;  %v1526_v21 = vmul.f32 %v1525_v35, %v1520_v61  ;;  %v3796_v35 = vmul.f32 %v3795_v9, %v3790_v37 }
0x2ce6   :  { %5438 = vpow2.f32 %v4371_v26  ;;  %v1527_v31 = vadd.f32 %v1526_v21, %v1520_v61 }
0x2ce8   :  { %v1528_v4 = vmul.f32 0.7978846, %v1527_v31  ;;  %v1976_v31 = vmul.f32 0.5, %v1973_v17 }
0x2cf0   :  { %v5439_v11 = vpop.eup %5438 }
0x2cf1   :  { %v4139_v32 = vadd.f32 1.0, %v5439_v11 }
0x2cf3   :  { %5440 = vrcp.f32 %v4139_v32 }
0x2cfd   :  { %v5441_v56 = vpop.eup %5440 }
0x2cfe   :  { %v4147_v15 = vmul.f32 %v5441_v56, %v4145_v25  ;;  %v4154_v13 = vsub.f32 1.0, %v5441_v56  ;;  %v4160_v62 = vmul.f32 %v5441_v56, %v6410_v59  ;;  %v1523_v59 = vmul.f32 0.5, %v1520_v61 }
0x2d00   :  { %4149 = vrot.lane.b32.xlu1 %v4147_v15, %s5676_s15  ;;  %s5684_s15 = smov 2  }
0x2d72   :  { %v4150_v36 = vpop.permute.xlu1 %4149 }
0x2d73   :  { %v4152_v18 = vadd.f32 %v4150_v36, %v4062_v24  ;;  %v1977_v36 = vmul.f32 0.044715, %v1973_v17 }
0x2d75   :  { %5442 = vtanh.f32 %v4152_v18  ;;  %v2879_v18 = vadd.f32 %v6449_v2, %v6309_v46  ;;  %v1978_v19 = vmul.f32 %v1977_v36, %v1973_v17 }
0x2d76   :  { %5444 = vtanh.f32 %v613_v45  ;;  %v3332_v45 = vadd.f32 %v6449_v2, %v6377_v55 }
0x2d77   :  { %5446 = vtanh.f32 %v1075_v42 }
0x2d78   :  { %5448 = vtanh.f32 %v1528_v4 }
0x2d7f   :  { %v5443_v34 = vpop.eup %5442 }
0x2d80   :  { %4156 = vrot.lane.b32.xlu0 %v5443_v34, %s5677_s5  ;;  %v5445_v47 = vpop.eup %5444  ;;  %v2883_v34 = vmul.f32 0.044715, %v2879_v18 }
0x2d81   :  { %v615_v49 = vadd.f32 1.0, %v5445_v47  ;;  %v5447_v33 = vpop.eup %5446 }
0x2d82   :  { %v1077_v38 = vadd.f32 1.0, %v5447_v33  ;;  %v5449_v63 = vpop.eup %5448 }
0x2d83   :  { %v616_v51 = vmul.f32 %v615_v49, %v608_v12  ;;  %v1530_v16 = vadd.f32 1.0, %v5449_v63  ;;  %v1979_v12 = vmul.f32 %v1978_v19, %v1973_v17  ;;  %v2882_v63 = vmul.f32 0.5, %v2879_v18 }
0x2d84   :  { %v1078_v8 = vmul.f32 %v1077_v38, %v1070_v5 }
0x2d85   :  { %v623_v30 = vmul.f32 %v6454_v40, %v616_v51  ;;  %v1531_v10 = vmul.f32 %v1530_v16, %v1523_v59  ;;  %v2884_v51 = vmul.f32 %v2883_v34, %v2879_v18  ;;  %v1980_v46 = vadd.f32 %v1979_v12, %v1973_v17 }
0x2d86   :  { %v1079_v3 = vmul.f32 %v6454_v40, %v1078_v8 }
0x2d87   :  { %v625_v52 = vsel %vm624_vm5, %v623_v30, 0.0  ;;  %v1532_v14 = vmul.f32 %v6454_v40, %v1531_v10  ;;  %v3336_v30 = vmul.f32 0.044715, %v3332_v45  ;;  %v2885_v58 = vmul.f32 %v2884_v51, %v2879_v18 }
0x2d88   :  { %v1080_v54 = vsel %vm624_vm5, %v1079_v3, 0.0  ;;  %v1981_v39 = vmul.f32 0.7978846, %v1980_v46  ;;  %v3335_v3 = vmul.f32 0.5, %v3332_v45 }
0x2d89   :  { %v1533_v7 = vsel %vm624_vm5, %v1532_v14, 0.0  ;;  %v2886_v55 = vadd.f32 %v2885_v58, %v2879_v18  ;;  %v2426_v58 = vadd.f32 %v6449_v2, %v6250_v44 }
0x2d8b   :  { %v2429_v44 = vmul.f32 0.5, %v2426_v58 }
0x2d9f   :  { %626 = vadd.xlane.f32.xlu0 %v625_v52  ;;  %v3337_v52 = vmul.f32 %v3336_v30, %v3332_v45 }
0x2df2   :  { %v4157_v48 = vpop.permute.xlu0 %4156 }
0x2df3   :  { %v4159_v60 = vmul.f32 %v4157_v48, %v4154_v13  ;;  %v3338_v13 = vmul.f32 %v3337_v52, %v3332_v45 }
0x2df5   :  { %v4161_v6 = vadd.f32 %v4160_v62, %v4159_v60  ;;  %v2887_v62 = vmul.f32 0.7978846, %v2886_v55  ;;  %v3339_v60 = vadd.f32 %v3338_v13, %v3332_v45 }
0x2df7   :  { %4163 = vrot.lane.b32.xlu1 %v4161_v6, %s5677_s5  ;;  %v3340_v43 = vmul.f32 0.7978846, %v3339_v60  ;;  %v3797_v6 = vadd.f32 %v3796_v35, %v3790_v37  ;;  %s4269_s5 = sshll.u32 %s5690_s10, 4  ;;  %s4270_s5 = int_to_ptr.vmem [resolvable:$true] %s4269_s5 }
0x2df8   :  { %s5633_s17 = scalar_lea.vmem %s4270_s5, 32  ;;  %p5638_p7 = scmp.lt.s32.totalorder %s4270_s5, %s4270_s5 }
0x2df9   :  { %v3798_v0 = vmul.f32 0.7978846, %v3797_v6  ;;  %p5634_p6 = scmp.ne.s32.totalorder %s4270_s5, %s5633_s17  ;;  %p5639_p8 = scmp.lt.s32.totalorder %s5633_s17, %s5633_s17 }
0x2dfb   :  { %p5640_p9 = por %p5639_p8, %p5638_p7 }
0x2dfd   :  { %p5641_p10 = pnand %p5640_p9, %p5634_p6 }
0x2e1b   :  { %1081 = vadd.xlane.f32.xlu1 %v1080_v54 }
0x2e1f   :  { %1534 = vadd.xlane.f32.xlu1 %v1533_v7 }
0x2e2c   :  { %v627_v22 = vpop.xlane.xlu0 %626 }
0x2e2d   :  { %v634_v23 = vadd.f32 %v6468_v20, %v627_v22  ;;  %v3793_v22 = vmul.f32 0.5, %v3790_v37 }
0x2e2f   :  { %v4294_v53 = vmul.f32 -1.442695, %v634_v23 }
0x2e31   :  { %5450 = vpow2.f32 %v4294_v53 }
0x2e3b   :  { %v5451_v24 = vpop.eup %5450 }
0x2e3c   :  { %v638_v27 = vadd.f32 1.0, %v5451_v24 }
0x2e3e   :  { %5452 = vrcp.f32 %v638_v27 }
0x2e48   :  { %v5453_v28 = vpop.eup %5452 }
0x2e49   :  { %642 = vst.msk [vmem:[#allocation14] sm:$0x3] %vm641_vm6, %v5453_v28 }
0x2e69   :  { %v4164_v26 = vpop.permute.xlu1 %4163 }
0x2e6a   :  { %5065 = vmatmul.mubr.msk.f32.vlgmr.msra.gmra.mrb[44].mxu0 %vm232_vm3, %v4164_v26 }
0x2ea8   :  { %v1082_v11 = vpop.xlane.xlu1 %1081 }
0x2ea9   :  { %v1083_v32 = vadd.f32 %v6468_v20, %v1082_v11 }
0x2eab   :  { %v4304_v56 = vmul.f32 -1.442695, %v1083_v32 }
0x2eac   :  { %v1535_v25 = vpop.xlane.xlu1 %1534 }
0x2ead   :  { %5454 = vpow2.f32 %v4304_v56  ;;  %v1536_v15 = vadd.f32 %v6468_v20, %v1535_v25 }
0x2eaf   :  { %v4314_v1 = vmul.f32 -1.442695, %v1536_v15 }
0x2eb1   :  { %5456 = vpow2.f32 %v4314_v1 }
0x2eb7   :  { %v5455_v29 = vpop.eup %5454 }
0x2eb8   :  { %v1087_v41 = vadd.f32 1.0, %v5455_v29 }
0x2eba   :  { %5458 = vrcp.f32 %v1087_v41 }
0x2ebb   :  { %v5457_v47 = vpop.eup %5456 }
0x2ebc   :  { %v1540_v49 = vadd.f32 1.0, %v5457_v47 }
0x2ebe   :  { %5460 = vrcp.f32 %v1540_v49 }
0x2ebf   :  { %5462 = vtanh.f32 %v1981_v39  ;;  %v2430_v39 = vmul.f32 0.044715, %v2426_v58 }
0x2ec0   :  { %5464 = vtanh.f32 %v2887_v62 }
0x2ec1   :  { %5466 = vtanh.f32 %v3340_v43  ;;  %v2431_v13 = vmul.f32 %v2430_v39, %v2426_v58 }
0x2ec2   :  { %5468 = vtanh.f32 %v3798_v0 }
0x2ec4   :  { %v5459_v61 = vpop.eup %5458 }
0x2ec5   :  { %1091 = vrot.lane.b32.xlu0 %v5459_v61, %s5683_s0 }
0x2ec8   :  { %v5461_v48 = vpop.eup %5460 }
0x2ec9   :  { %1544 = vrot.lane.b32.xlu1 %v5461_v48, %s5684_s15  ;;  %v5463_v50 = vpop.eup %5462  ;;  %v2432_v48 = vmul.f32 %v2431_v13, %v2426_v58 }
0x2eca   :  { %v1983_v21 = vadd.f32 1.0, %v5463_v50  ;;  %v5465_v42 = vpop.eup %5464 }
0x2ecb   :  { %v2889_v33 = vadd.f32 1.0, %v5465_v42  ;;  %v5467_v38 = vpop.eup %5466  ;;  %v2433_v60 = vadd.f32 %v2432_v48, %v2426_v58 }
0x2ecc   :  { %v1984_v4 = vmul.f32 %v1983_v21, %v1976_v31  ;;  %v3342_v16 = vadd.f32 1.0, %v5467_v38  ;;  %v5469_v59 = vpop.eup %5468 }
0x2ecd   :  { %v2890_v8 = vmul.f32 %v2889_v33, %v2882_v63  ;;  %v3800_v7 = vadd.f32 1.0, %v5469_v59  ;;  %v2434_v43 = vmul.f32 0.7978846, %v2433_v60 }
0x2ece   :  { %v1985_v5 = vmul.f32 %v6454_v40, %v1984_v4  ;;  %v3343_v14 = vmul.f32 %v3342_v16, %v3335_v3 }
0x2ecf   :  { %v2891_v54 = vmul.f32 %v6454_v40, %v2890_v8  ;;  %v3801_v24 = vmul.f32 %v3800_v7, %v3793_v22 }
0x2ed0   :  { %v1986_v10 = vsel %vm624_vm5, %v1985_v5, 0.0  ;;  %v3344_v53 = vmul.f32 %v6454_v40, %v3343_v14 }
0x2ed1   :  { %v2892_v23 = vsel %vm624_vm5, %v2891_v54, 0.0  ;;  %v3802_v28 = vmul.f32 %v6454_v40, %v3801_v24 }
0x2ed2   :  { %v3345_v27 = vsel %vm624_vm5, %v3344_v53, 0.0 }
0x2ed3   :  { %v3803_v26 = vsel %vm624_vm5, %v3802_v28, 0.0 }
0x2ee4   :  { %1987 = vadd.xlane.f32.xlu0 %v1986_v10 }
0x2ee8   :  { %2893 = vadd.xlane.f32.xlu0 %v2892_v23 }
0x2eec   :  { %3346 = vadd.xlane.f32.xlu0 %v3345_v27 }
0x2ef0   :  { %3804 = vadd.xlane.f32.xlu0 %v3803_v26 }
0x2f37   :  { %v1092_v11 = vpop.permute.xlu0 %1091 }
0x2f38   :  { %1095 = vst.msk [vmem:[#allocation14] sm:$0x3] %vm1094_vm7, %v1092_v11 }
0x2f3b   :  { %v1545_v32 = vpop.permute.xlu1 %1544 }
0x2f3c   :  { %1548 = vst.msk [vmem:[#allocation14] sm:$0x3] %vm1547_vm8, %v1545_v32 }
0x2f3d   :  { %v4233_v56 = vpop.f32.mrb[44].mxu0 }
0x2f3e   :  { %v4234_v25 = vadd.f32 %v6449_v2, %v4233_v56  ;;  %v5066_v15 = vpop.f32.mrb[45].mxu0 }
0x2f40   :  { %v4238_v1 = vmul.f32 0.044715, %v4234_v25  ;;  %v4237_v19 = vmul.f32 0.5, %v4234_v25 }
0x2f42   :  { %v4239_v17 = vmul.f32 %v4238_v1, %v4234_v25 }
0x2f44   :  { %v4240_v36 = vmul.f32 %v4239_v17, %v4234_v25 }
0x2f46   :  { %v4241_v18 = vadd.f32 %v4240_v36, %v4234_v25 }
0x2f48   :  { %v4242_v29 = vmul.f32 0.7978846, %v4241_v18 }
0x2f4a   :  { %5470 = vtanh.f32 %v4242_v29 }
0x2f54   :  { %v5471_v41 = vpop.eup %5470 }
0x2f55   :  { %v4244_v34 = vadd.f32 1.0, %v5471_v41 }
0x2f57   :  { %v4245_v45 = vmul.f32 %v4244_v34, %v4237_v19 }
0x2f59   :  { %v4246_v47 = vmul.f32 %v6454_v40, %v4245_v45 }
0x2f5b   :  { %v4247_v49 = vsel %vm624_vm5, %v4246_v47, 0.0 }
0x2f5c   :  { %4248 = vadd.xlane.f32.xlu0 %v4247_v49 }
0x2f71   :  { %v1988_v12 = vpop.xlane.xlu0 %1987 }
0x2f72   :  { %v1989_v51 = vadd.f32 %v6468_v20, %v1988_v12 }
0x2f74   :  { %v4324_v30 = vmul.f32 -1.442695, %v1989_v51 }
0x2f75   :  { %v2894_v37 = vpop.xlane.xlu0 %2893 }
0x2f76   :  { %5472 = vpow2.f32 %v4324_v30  ;;  %v2895_v52 = vadd.f32 %v6468_v20, %v2894_v37 }
0x2f78   :  { %v4344_v57 = vmul.f32 -1.442695, %v2895_v52 }
0x2f79   :  { %v3347_v42 = vpop.xlane.xlu0 %3346 }
0x2f7a   :  { %5474 = vpow2.f32 %v4344_v57 }
0x2f7d   :  { %v3805_v31 = vpop.xlane.xlu0 %3804 }
0x2f7e   :  { %v3806_v10 = vadd.f32 %v6468_v20, %v3805_v31 }
0x2f80   :  { %v5473_v46 = vpop.eup %5472  ;;  %v4364_v7 = vmul.f32 -1.442695, %v3806_v10 }
0x2f81   :  { %v1993_v61 = vadd.f32 1.0, %v5473_v46 }
0x2f83   :  { %5476 = vrcp.f32 %v1993_v61 }
0x2f84   :  { %v5475_v9 = vpop.eup %5474 }
0x2f85   :  { %v2899_v55 = vadd.f32 1.0, %v5475_v9 }
0x2f87   :  { %5478 = vrcp.f32 %v2899_v55 }
0x2f88   :  { %5480 = vtanh.f32 %v2434_v43 }
0x2f8d   :  { %v5477_v62 = vpop.eup %5476 }
0x2f8e   :  { %1997 = vrot.lane.b32.xlu1 %v5477_v62, %s5685_s1 }
0x2f91   :  { %v5479_v35 = vpop.eup %5478 }
0x2f92   :  { %2903 = vrot.lane.b32.xlu0 %v5479_v35, %s5686_s12  ;;  %v5481_v6 = vpop.eup %5480 }
0x2f93   :  { %v2436_v0 = vadd.f32 1.0, %v5481_v6 }
0x2f95   :  { %v2437_v2 = vmul.f32 %v2436_v0, %v2429_v44 }
0x2f97   :  { %v2438_v50 = vmul.f32 %v6454_v40, %v2437_v2  ;;  %v3348_v40 = vadd.f32 %v6468_v20, %v3347_v42 }
0x2f99   :  { %v2439_v21 = vsel %vm624_vm5, %v2438_v50, 0.0  ;;  %v4354_v59 = vmul.f32 -1.442695, %v3348_v40 }
0x2fb2   :  { %2440 = vadd.xlane.f32.xlu1 %v2439_v21 }
0x2fe9   :  { %v4249_v4 = vpop.xlane.xlu0 %4248 }
0x2fea   :  { %v4250_v33 = vadd.f32 %v6468_v20, %v4249_v4 }
0x2fec   :  { %v4373_v38 = vmul.f32 -1.442695, %v4250_v33 }
0x2fee   :  { %5482 = vpow2.f32 %v4373_v38 }
0x2ff8   :  { %v5483_v63 = vpop.eup %5482 }
0x2ff9   :  { %v4254_v5 = vadd.f32 1.0, %v5483_v63 }
0x2ffb   :  { %5484 = vrcp.f32 %v4254_v5 }
0x2ffc   :  { %5486 = vpow2.f32 %v4354_v59 }
0x3000   :  { %v1998_v8 = vpop.permute.xlu1 %1997 }
0x3001   :  { %2001 = vst.msk [vmem:[#allocation14] sm:$0x3] %vm2000_vm9, %v1998_v8 }
0x3004   :  { %v2904_v56 = vpop.permute.xlu0 %2903 }
0x3005   :  { %v5485_v16 = vpop.eup %5484 }
0x3006   :  { %4258 = vrot.lane.b32.xlu0 %v5485_v16, %s5669_s30  ;;  %v5487_v22 = vpop.eup %5486  ;;  %s5687_s30 = smov 4  }
0x3007   :  { %v3352_v24 = vadd.f32 1.0, %v5487_v22 }
0x303f   :  { %v2441_v3 = vpop.xlane.xlu1 %2440 }
0x3040   :  { %v2442_v54 = vadd.f32 %v6468_v20, %v2441_v3 }
0x3042   :  { %v4334_v14 = vmul.f32 -1.442695, %v2442_v54 }
0x3044   :  { %5488 = vpow2.f32 %v4334_v14 }
0x3045   :  { %5490 = vpow2.f32 %v4364_v7 }
0x304e   :  { %v5489_v23 = vpop.eup %5488 }
0x304f   :  { %v2446_v53 = vadd.f32 1.0, %v5489_v23  ;;  %v5491_v27 = vpop.eup %5490 }
0x3050   :  { %v3810_v28 = vadd.f32 1.0, %v5491_v27 }
0x3051   :  { %5492 = vrcp.f32 %v2446_v53 }
0x3052   :  { %5494 = vrcp.f32 %v3352_v24 }
0x3053   :  { %5496 = vrcp.f32 %v3810_v28 }
0x305b   :  { %v5493_v26 = vpop.eup %5492 }
0x305c   :  { %2450 = vrot.lane.b32.xlu1 %v5493_v26, %s5687_s30  ;;  %v5495_v11 = vpop.eup %5494 }
0x305d   :  { %v5497_v20 = vpop.eup %5496 }
0x3060   :  { %3356 = vrot.lane.b32.xlu1 %v5495_v11, %s5688_s23 }
0x3064   :  { %3814 = vrot.lane.b32.xlu1 %v5497_v20, %s5689_s24 }
0x3078   :  { %v4259_v1 = vpop.permute.xlu0 %4258 }
0x30ce   :  { %v2451_v32 = vpop.permute.xlu1 %2450 }
0x30cf   :  { %2454 = vst.msk [vmem:[#allocation14] sm:$0x3] %vm2453_vm10, %v2451_v32 }
0x30d0   :  { %2907 = vst.msk [vmem:[#allocation14] sm:$0x3] %vm2906_vm11, %v2904_v56 }
0x30d2   :  { %v3357_v25 = vpop.permute.xlu1 %3356 }
0x30d3   :  { %3360 = vst.msk [vmem:[#allocation14] sm:$0x3] %vm3359_vm12, %v3357_v25 }
0x30d6   :  { %v3815_v15 = vpop.permute.xlu1 %3814 }
0x30d7   :  { %3818 = vst.msk [vmem:[#allocation14] sm:$0x3] %vm3817_vm13, %v3815_v15 }
0x30d8   :  { %4262 = vst.msk [vmem:[#allocation14] sm:$0x3] %vm4261_vm14, %v4259_v1 }
0x30d9   :  { %5644 = shalt.err (!%p5641_p10)
}
0x30da   :  { %s5645_s26 = scalar_lea.hbm %s6529_s13, 32 }
0x30db   :  { %p5646_p11 = scmp.ne.s32.totalorder %s6529_s13, %s5645_s26  ;;  %p5649_p12 = scmp.lt.u32.totalorder %s5645_s26, %s6529_s13 }
0x30dd   :  { %p5651_p13 = pnand %p5649_p12, %p5646_p11 }
0x30df   :  { %5654 = shalt.err (!%p5651_p13)
}
0x30e0   :  { %4272 = dma.vmem_to_hbm [thread:$0]  %s4270_s5, 32, %s6529_s13, [#allocation5]  }
0x30e1   :  { %5663 = dma.done.wait [#allocation5], 32  }
0x30e2   :  { %5664 = vsyncadd [#allocation5], 4294967264 }
0x30e3   :  { %4276 = vsyncpa [#allocation4], 1 }
0x30e4   :  { %4277 = vsyncpa [#allocation7], 1 }
0x30e5   :  { %4278 = vsyncpa [#allocation10], 1 }
0x30e6   :  { %4279 = vsyncpa [#allocation13], 1 }
0x30e7   :  { %4280 = vsyncpa [#allocation5], 1 }

</bundles_post_ra>
